<compile_context>
chip_gen: v5e
topology: v5e:2x2
jax: 0.10.0
libtpu: 0.0.40
codegen_flags: <defaults>
</compile_context>

<pallas_src>
import functools

import jax
import jax.numpy as jnp
from jax import lax
from jax.experimental import pallas as pl
from jax.experimental.pallas import tpu as pltpu


def _round_up(x, m):
    return (x + m - 1) // m * m


def _softmax_plus_one(mred):
    z = mred * (1.0 / 0.05)
    z = z - jnp.max(z, axis=-1, keepdims=True)
    e = jnp.exp(z)
    return e / jnp.sum(e, axis=-1, keepdims=True) + 1.0


# -----------------------------------------------------------------------------
# Kernels (single fused pallas_call, no grid: total work is tens of KiB)
# -----------------------------------------------------------------------------
def _make_kernel_conv(b1, b2, psize, n2p):
    n2 = b1 + b2

    def kernel(f1t_ref, f2t_ref, w1_ref, c1b_ref, g_ref, bt_ref, w2_ref,
               c2b_ref, attn_ref, a3_scr, af_scr):
        # ---- 1) channel-L2 normalization --------------------------------------
        # Inputs are (b, P, C): the reduction is over the lane dim and the
        # clamped rsqrt runs on the EUP.
        f1t = f1t_ref[...]
        f2t = f2t_ref[...]
        f1n = f1t * lax.rsqrt(
            jnp.maximum(jnp.sum(f1t * f1t, axis=-1, keepdims=True), 1e-24))
        f2n = f2t * lax.rsqrt(
            jnp.maximum(jnp.sum(f2t * f2t, axis=-1, keepdims=True), 1e-24))

        # ---- 2) batched cross-similarity on the MXU ---------------------------
        # a1[i] = f1n[i] @ f2n[i].T ; a2[i] = a1[i].T via swapped operands.
        dn = (((2,), (2,)), ((0,), (0,)))          # 'bpc,bqc->bpq' (trans-B)
        a1 = lax.dot_general(f1n, f2n, dn, preferred_element_type=jnp.float32)
        a2 = lax.dot_general(f2n, f1n, dn, preferred_element_type=jnp.float32)
        a3_scr[pl.ds(0, b1), :, :] = a1
        a3_scr[pl.ds(b1, b2), :, :] = a2

        # ---- 3) flatten to the lane-dense (n2p, P*P) layout --------------------
        # Pad rows are zeroed so the conv matmuls contract over an 8-aligned,
        # explicitly-zeroed K (no reliance on masking of unaligned K).
        if n2p != n2:
            af_scr[...] = jnp.zeros_like(af_scr)
        # TODO(synk): for large P (e.g. 18*9 = 162) tile the P axis with a grid
        # and online BN stats instead of this unrolled copy.
        for r in range(psize):
            af_scr[pl.ds(0, n2), pl.ds(r * psize, psize)] = a3_scr[:, r, :]

        # ---- 4) 1x1 conv -> BatchNorm (training batch stats) -> ReLU -> 1x1 conv
        # Each conv is a single MXU matmul on the flat layout.
        # TODO(synk): BatchNorm2d running_mean/running_var updates (training
        # side effect) are not modeled; only the forward output is computed.
        t = jnp.dot(w1_ref[...], af_scr[...],
                    preferred_element_type=jnp.float32) + c1b_ref[...]
        mu = jnp.mean(t, axis=-1, keepdims=True)
        d = t - mu
        var = jnp.mean(d * d, axis=-1, keepdims=True)
        t = d * lax.rsqrt(var + 1e-5) * g_ref[...] + bt_ref[...]
        t = jnp.maximum(t, 0.0)
        u = jnp.dot(w2_ref[...], t,
                    preferred_element_type=jnp.float32) + c2b_ref[...]   # (n2, P*P)

        # ---- 5) attn = softmax(mean_q(a * u) / 0.05) + 1 (exact f32) ----------
        prod = af_scr[pl.ds(0, n2), :] * u                               # (n2, P*P)
        for r in range(psize):        # fold back to (n2, P, P), reusing a3_scr
            a3_scr[:, r, :] = prod[:, r * psize:(r + 1) * psize]
        mred = jnp.mean(a3_scr[...], axis=-1)                            # (n2, P)
        attn_ref[...] = _softmax_plus_one(mred)

    return kernel


def _make_kernel_noconv(b1, b2, psize):
    del psize

    def kernel(f1t_ref, f2t_ref, attn_ref):
        f1t = f1t_ref[...]
        f2t = f2t_ref[...]
        f1n = f1t * lax.rsqrt(
            jnp.maximum(jnp.sum(f1t * f1t, axis=-1, keepdims=True), 1e-24))
        f2n = f2t * lax.rsqrt(
            jnp.maximum(jnp.sum(f2t * f2t, axis=-1, keepdims=True), 1e-24))
        dn = (((2,), (2,)), ((0,), (0,)))
        a1 = lax.dot_general(f1n, f2n, dn, preferred_element_type=jnp.float32)
        a2 = lax.dot_general(f2n, f1n, dn, preferred_element_type=jnp.float32)
        mred = jnp.concatenate(
            [jnp.mean(a1 * a1, axis=-1), jnp.mean(a2 * a2, axis=-1)], axis=0)
        attn_ref[...] = _softmax_plus_one(mred)

    return kernel


# -----------------------------------------------------------------------------
# Pallas wrapper
# -----------------------------------------------------------------------------
def _feat_cross_attention(f1t, f2t, conv_params):
    b1, psize, _ = f1t.shape
    b2 = f2t.shape[0]
    n2 = b1 + b2
    vmem = functools.partial(pl.BlockSpec, memory_space=pltpu.MemorySpace.VMEM)

    if conv_params is not None:
        w1, c1b, g, bt, w2, c2b = conv_params
        cmid = w1.shape[0]
        cmid_p = _round_up(cmid, 8)
        n2p = _round_up(n2, 8)

        def pad2(x, rows, cols):
            return jnp.zeros((rows, cols), x.dtype).at[
                :x.shape[0], :x.shape[1]].set(x)

        args = [f1t, f2t,
                pad2(w1, cmid_p, n2p),
                pad2(c1b.reshape(-1, 1), cmid_p, 1),
                pad2(g.reshape(-1, 1), cmid_p, 1),
                pad2(bt.reshape(-1, 1), cmid_p, 1),
                pad2(w2, n2, cmid_p),
                c2b.reshape(n2, 1)]
        kernel = _make_kernel_conv(b1, b2, psize, n2p)
        scratch = [pltpu.VMEM((n2, psize, psize), jnp.float32),
                   pltpu.VMEM((n2p, psize * psize), jnp.float32)]
    else:
        args = [f1t, f2t]
        kernel = _make_kernel_noconv(b1, b2, psize)
        scratch = []

    # TODO(synk): when many (f1, f2) pairs are processed per step, batch them
    # into one gridded pallas_call (dimension_semantics=("parallel",)) to use
    # both TensorCores on v7x and amortize launch overhead.
    return pl.pallas_call(
        kernel,
        out_shape=jax.ShapeDtypeStruct((n2, psize), jnp.float32),
        in_specs=[vmem() for _ in args],
        out_specs=vmem(),
        scratch_shapes=scratch,
    )(*args)


# -----------------------------------------------------------------------------
# Full forward
# -----------------------------------------------------------------------------
def feat_cross_forward(f1, f2, params):
    b1, c, h, w = f1.shape
    b2 = f2.shape[0]
    assert b1 == b2, "feat_cross requires b1 == b2"
    p = h * w
    n2 = b1 + b2
    # Lane-denser (b, P, C) input layout: channel contraction lands on the last
    # dim so the kernel's batched dots are plain trans-B matmuls.
    f1t = jnp.transpose(f1.reshape(b1, c, p), (0, 2, 1))
    f2t = jnp.transpose(f2.reshape(b2, c, p), (0, 2, 1))
    if n2 == 64:
        cp = (params['conv1_w'], params['conv1_b'], params['bn1_g'],
              params['bn1_b'], params['conv2_w'], params['conv2_b'])
    elif n2 == 12:
        cp = (params['conv3_w'], params['conv3_b'], params['bn3_g'],
              params['bn3_b'], params['conv4_w'], params['conv4_b'])
    else:
        cp = None   # PyTorch forward applies no conv in this case
    attn = _feat_cross_attention(f1t, f2t, cp)                  # (n2, P)
    # Feature scaling by attn is left to XLA (lane-dense, removes the largest
    # HBM write and all narrow masked stores from the kernel).
    out1 = f1 * attn[:b1].reshape(b1, 1, h, w)
    out2 = f2 * attn[b1:].reshape(b2, 1, h, w)
    return out1, out2


# -----------------------------------------------------------------------------
# Parameters (deterministic, synthetic)
# -----------------------------------------------------------------------------
def init_params(key):
    ks = jax.random.split(key, 8)
    p = {}
    # conv1/bn1/conv2: used when b1 + b2 == 64
    p['conv1_w'] = 0.2 * jax.random.normal(ks[0], (32, 64), jnp.float32)
    p['conv1_b'] = 0.1 * jax.random.normal(ks[1], (32,), jnp.float32)
    p['bn1_g'] = jnp.ones((32,), jnp.float32)
    p['bn1_b'] = jnp.zeros((32,), jnp.float32)
    p['conv2_w'] = 0.2 * jax.random.normal(ks[2], (64, 32), jnp.float32)
    p['conv2_b'] = 0.1 * jax.random.normal(ks[3], (64,), jnp.float32)
    # conv3/bn3/conv4: used when b1 + b2 == 12
    p['conv3_w'] = 0.2 * jax.random.normal(ks[4], (6, 12), jnp.float32)
    p['conv3_b'] = 0.1 * jax.random.normal(ks[5], (6,), jnp.float32)
    p['bn3_g'] = jnp.ones((6,), jnp.float32)
    p['bn3_b'] = jnp.zeros((6,), jnp.float32)
    p['conv4_w'] = 0.2 * jax.random.normal(ks[6], (12, 6), jnp.float32)
    p['conv4_b'] = 0.1 * jax.random.normal(ks[7], (12,), jnp.float32)
    # TODO(synk): conv5/conv6 are defined in __init__ but never used in forward;
    # they are intentionally not instantiated here.
    return p


# -----------------------------------------------------------------------------
# Pure-JAX reference (mirrors the PyTorch forward)
# -----------------------------------------------------------------------------
def reference_forward(f1, f2, params):
    b1, c, h, w = f1.shape
    b2 = f2.shape[0]
    feat = jnp.concatenate([f1.reshape(b1, c, -1), f2.reshape(b2, c, -1)], axis=0)
    norm = jnp.sqrt(jnp.sum(feat * feat, axis=1, keepdims=True))
    feat_norm = feat / jnp.maximum(norm, 1e-12)
    f1n, f2n = feat_norm[:b1], feat_norm[b1:]
    a1 = jnp.einsum('ncp,ncq->npq', f1n, f2n)
    a2 = jnp.transpose(a1, (0, 2, 1))
    a = jnp.concatenate([a1, a2], axis=0)
    n2 = a.shape[0]
    if n2 == 64:
        w1, c1b, g, bt = params['conv1_w'], params['conv1_b'], params['bn1_g'], params['bn1_b']
        w2, c2b = params['conv2_w'], params['conv2_b']
        apply_conv = True
    elif n2 == 12:
        w1, c1b, g, bt = params['conv3_w'], params['conv3_b'], params['bn3_g'], params['bn3_b']
        w2, c2b = params['conv4_w'], params['conv4_b']
        apply_conv = True
    else:
        apply_conv = False
    if apply_conv:
        t = jnp.einsum('oc,cpq->opq', w1, a) + c1b[:, None, None]
        mu = jnp.mean(t, axis=(1, 2), keepdims=True)
        var = jnp.mean((t - mu) ** 2, axis=(1, 2), keepdims=True)
        t = g[:, None, None] * (t - mu) / jnp.sqrt(var + 1e-5) + bt[:, None, None]
        t = jnp.maximum(t, 0.0)
        u = jnp.einsum('oc,cpq->opq', w2, t) + c2b[:, None, None]
    else:
        u = a
    m = jnp.mean(a * u, axis=-1)
    attn = jax.nn.softmax(m / 0.05, axis=-1) + 1.0
    out = feat * attn[:, None, :]
    return out[:b1].reshape(b1, c, h, w), out[b1:].reshape(b2, c, h, w)


if __name__ == "__main__":
    key = jax.random.PRNGKey(0)
    k1, k2, kp = jax.random.split(key, 3)
    # b1 + b2 == 12 so the conv3/conv4 (ConvBlock) attention branch is exercised.
    b1 = b2 = 6
    c, h, w = 32, 4, 4
    f1 = jax.random.normal(k1, (b1, c, h, w), jnp.float32)
    f2 = jax.random.normal(k2, (b2, c, h, w), jnp.float32)
    params = init_params(kp)

    fwd = jax.jit(feat_cross_forward)
    out1, out2 = fwd(f1, f2, params)
    jax.block_until_ready((out1, out2))

    r1, r2 = reference_forward(f1, f2, params)
    assert out1.shape == (b1, c, h, w) and out2.shape == (b2, c, h, w)
    assert bool(jnp.allclose(out1, r1, atol=1e-2, rtol=1e-2))
    assert bool(jnp.allclose(out2, r2, atol=1e-2, rtol=1e-2))
    print("KERNEL_OK")
</pallas_src>

<mosaic_0001>
module attributes {stable_mosaic.version = 11 : i64} {
  func.func @kernel(%arg0: memref<6x16x32xf32, #tpu.memory_space<vmem>>, %arg1: memref<6x16x32xf32, #tpu.memory_space<vmem>>, %arg2: memref<8x16xf32, #tpu.memory_space<vmem>>, %arg3: memref<8x1xf32, #tpu.memory_space<vmem>>, %arg4: memref<8x1xf32, #tpu.memory_space<vmem>>, %arg5: memref<8x1xf32, #tpu.memory_space<vmem>>, %arg6: memref<12x8xf32, #tpu.memory_space<vmem>>, %arg7: memref<12x1xf32, #tpu.memory_space<vmem>>, %arg8: memref<12x16xf32, #tpu.memory_space<vmem>>, %arg9: memref<12x16x16xf32, #tpu.memory_space<vmem>>, %arg10: memref<16x256xf32, #tpu.memory_space<vmem>>) attributes {dimension_semantics = [], scalar_prefetch = 0 : i64, scratch_operands = 2 : i64, tpu.core_type = #tpu.core_type<tc>} {
    %c0 = arith.constant 0 : index
    %c0_0 = arith.constant 0 : index
    %c0_1 = arith.constant 0 : index
    %0 = vector.load %arg0[%c0, %c0_0, %c0_1] : memref<6x16x32xf32, #tpu.memory_space<vmem>>, vector<6x16x32xf32>
    %c0_2 = arith.constant 0 : index
    %c0_3 = arith.constant 0 : index
    %c0_4 = arith.constant 0 : index
    %1 = vector.load %arg1[%c0_2, %c0_3, %c0_4] : memref<6x16x32xf32, #tpu.memory_space<vmem>>, vector<6x16x32xf32>
    %2 = arith.mulf %0, %0 : vector<6x16x32xf32>
    %cst = arith.constant dense<0.000000e+00> : vector<6x16xf32>
    %3 = vector.multi_reduction <add>, %2, %cst [2] : vector<6x16x32xf32> to vector<6x16xf32>
    %4 = vector.shape_cast %3 : vector<6x16xf32> to vector<6x16x1xf32>
    %cst_5 = arith.constant 1.000000e-24 : f32
    %5 = vector.broadcast %cst_5 : f32 to vector<6x16x1xf32>
    %6 = arith.maximumf %4, %5 : vector<6x16x1xf32>
    %7 = math.rsqrt %6 : vector<6x16x1xf32>
    %8 = vector.broadcast %7 : vector<6x16x1xf32> to vector<6x16x32xf32>
    %9 = arith.mulf %0, %8 : vector<6x16x32xf32>
    %10 = arith.mulf %1, %1 : vector<6x16x32xf32>
    %cst_6 = arith.constant dense<0.000000e+00> : vector<6x16xf32>
    %11 = vector.multi_reduction <add>, %10, %cst_6 [2] : vector<6x16x32xf32> to vector<6x16xf32>
    %12 = vector.shape_cast %11 : vector<6x16xf32> to vector<6x16x1xf32>
    %cst_7 = arith.constant 1.000000e-24 : f32
    %13 = vector.broadcast %cst_7 : f32 to vector<6x16x1xf32>
    %14 = arith.maximumf %12, %13 : vector<6x16x1xf32>
    %15 = math.rsqrt %14 : vector<6x16x1xf32>
    %16 = vector.broadcast %15 : vector<6x16x1xf32> to vector<6x16x32xf32>
    %17 = arith.mulf %1, %16 : vector<6x16x32xf32>
    %cst_8 = arith.constant dense<0.000000e+00> : vector<6x16x16xf32>
    %18 = tpu.matmul %9, %17, %cst_8 {dimension_numbers = #tpu.dot_dimension_numbers<[2], [2], [1], [1], [0, 0, 0, 1, 1, 1], [0], [0]>} : vector<6x16x32xf32>, vector<6x16x32xf32>, vector<6x16x16xf32> -> vector<6x16x16xf32>
    %cst_9 = arith.constant dense<0.000000e+00> : vector<6x16x16xf32>
    %19 = tpu.matmul %17, %9, %cst_9 {dimension_numbers = #tpu.dot_dimension_numbers<[2], [2], [1], [1], [0, 0, 0, 1, 1, 1], [0], [0]>} : vector<6x16x32xf32>, vector<6x16x32xf32>, vector<6x16x16xf32> -> vector<6x16x16xf32>
    %c0_10 = arith.constant 0 : index
    %c0_11 = arith.constant 0 : index
    %c0_12 = arith.constant 0 : index
    %20 = vector.load %arg9[%c0_10, %c0_11, %c0_12] : memref<12x16x16xf32, #tpu.memory_space<vmem>>, vector<6x16x16xf32>
    tpu.vector_store %arg9[%c0_10, %c0_11, %c0_12], %18 {strides = array<i32>} : memref<12x16x16xf32, #tpu.memory_space<vmem>>, vector<6x16x16xf32>,
    %c6 = arith.constant 6 : index
    %c0_13 = arith.constant 0 : index
    %c0_14 = arith.constant 0 : index
    %21 = vector.load %arg9[%c6, %c0_13, %c0_14] : memref<12x16x16xf32, #tpu.memory_space<vmem>>, vector<6x16x16xf32>
    tpu.vector_store %arg9[%c6, %c0_13, %c0_14], %19 {strides = array<i32>} : memref<12x16x16xf32, #tpu.memory_space<vmem>>, vector<6x16x16xf32>,
    %cst_15 = arith.constant 0.000000e+00 : f32
    %22 = vector.broadcast %cst_15 : f32 to vector<16x256xf32>
    %c0_16 = arith.constant 0 : index
    %c0_17 = arith.constant 0 : index
    %23 = vector.load %arg10[%c0_16, %c0_17] : memref<16x256xf32, #tpu.memory_space<vmem>>, vector<16x256xf32>
    tpu.vector_store %arg10[%c0_16, %c0_17], %22 {strides = array<i32>} : memref<16x256xf32, #tpu.memory_space<vmem>>, vector<16x256xf32>,
    %c0_18 = arith.constant 0 : index
    %c0_19 = arith.constant 0 : index
    %c0_20 = arith.constant 0 : index
    %24 = vector.load %arg9[%c0_18, %c0_19, %c0_20] : memref<12x16x16xf32, #tpu.memory_space<vmem>>, vector<12x1x16xf32>
    %25 = vector.shape_cast %24 : vector<12x1x16xf32> to vector<12x16xf32>
    %c0_21 = arith.constant 0 : index
    %c0_22 = arith.constant 0 : index
    %26 = vector.load %arg10[%c0_21, %c0_22] : memref<16x256xf32, #tpu.memory_space<vmem>>, vector<12x16xf32>
    tpu.vector_store %arg10[%c0_21, %c0_22], %25 {strides = array<i32>} : memref<16x256xf32, #tpu.memory_space<vmem>>, vector<12x16xf32>,
    %c0_23 = arith.constant 0 : index
    %c1 = arith.constant 1 : index
    %c0_24 = arith.constant 0 : index
    %27 = vector.load %arg9[%c0_23, %c1, %c0_24] : memref<12x16x16xf32, #tpu.memory_space<vmem>>, vector<12x1x16xf32>
    %28 = vector.shape_cast %27 : vector<12x1x16xf32> to vector<12x16xf32>
    %c0_25 = arith.constant 0 : index
    %c16 = arith.constant 16 : index
    %29 = vector.load %arg10[%c0_25, %c16] : memref<16x256xf32, #tpu.memory_space<vmem>>, vector<12x16xf32>
    tpu.vector_store %arg10[%c0_25, %c16], %28 {strides = array<i32>} : memref<16x256xf32, #tpu.memory_space<vmem>>, vector<12x16xf32>,
    %c0_26 = arith.constant 0 : index
    %c2 = arith.constant 2 : index
    %c0_27 = arith.constant 0 : index
    %30 = vector.load %arg9[%c0_26, %c2, %c0_27] : memref<12x16x16xf32, #tpu.memory_space<vmem>>, vector<12x1x16xf32>
    %31 = vector.shape_cast %30 : vector<12x1x16xf32> to vector<12x16xf32>
    %c0_28 = arith.constant 0 : index
    %c32 = arith.constant 32 : index
    %32 = vector.load %arg10[%c0_28, %c32] : memref<16x256xf32, #tpu.memory_space<vmem>>, vector<12x16xf32>
    tpu.vector_store %arg10[%c0_28, %c32], %31 {strides = array<i32>} : memref<16x256xf32, #tpu.memory_space<vmem>>, vector<12x16xf32>,
    %c0_29 = arith.constant 0 : index
    %c3 = arith.constant 3 : index
    %c0_30 = arith.constant 0 : index
    %33 = vector.load %arg9[%c0_29, %c3, %c0_30] : memref<12x16x16xf32, #tpu.memory_space<vmem>>, vector<12x1x16xf32>
    %34 = vector.shape_cast %33 : vector<12x1x16xf32> to vector<12x16xf32>
    %c0_31 = arith.constant 0 : index
    %c48 = arith.constant 48 : index
    %35 = vector.load %arg10[%c0_31, %c48] : memref<16x256xf32, #tpu.memory_space<vmem>>, vector<12x16xf32>
    tpu.vector_store %arg10[%c0_31, %c48], %34 {strides = array<i32>} : memref<16x256xf32, #tpu.memory_space<vmem>>, vector<12x16xf32>,
    %c0_32 = arith.constant 0 : index
    %c4 = arith.constant 4 : index
    %c0_33 = arith.constant 0 : index
    %36 = vector.load %arg9[%c0_32, %c4, %c0_33] : memref<12x16x16xf32, #tpu.memory_space<vmem>>, vector<12x1x16xf32>
    %37 = vector.shape_cast %36 : vector<12x1x16xf32> to vector<12x16xf32>
    %c0_34 = arith.constant 0 : index
    %c64 = arith.constant 64 : index
    %38 = vector.load %arg10[%c0_34, %c64] : memref<16x256xf32, #tpu.memory_space<vmem>>, vector<12x16xf32>
    tpu.vector_store %arg10[%c0_34, %c64], %37 {strides = array<i32>} : memref<16x256xf32, #tpu.memory_space<vmem>>, vector<12x16xf32>,
    %c0_35 = arith.constant 0 : index
    %c5 = arith.constant 5 : index
    %c0_36 = arith.constant 0 : index
    %39 = vector.load %arg9[%c0_35, %c5, %c0_36] : memref<12x16x16xf32, #tpu.memory_space<vmem>>, vector<12x1x16xf32>
    %40 = vector.shape_cast %39 : vector<12x1x16xf32> to vector<12x16xf32>
    %c0_37 = arith.constant 0 : index
    %c80 = arith.constant 80 : index
    %41 = vector.load %arg10[%c0_37, %c80] : memref<16x256xf32, #tpu.memory_space<vmem>>, vector<12x16xf32>
    tpu.vector_store %arg10[%c0_37, %c80], %40 {strides = array<i32>} : memref<16x256xf32, #tpu.memory_space<vmem>>, vector<12x16xf32>,
    %c0_38 = arith.constant 0 : index
    %c6_39 = arith.constant 6 : index
    %c0_40 = arith.constant 0 : index
    %42 = vector.load %arg9[%c0_38, %c6_39, %c0_40] : memref<12x16x16xf32, #tpu.memory_space<vmem>>, vector<12x1x16xf32>
    %43 = vector.shape_cast %42 : vector<12x1x16xf32> to vector<12x16xf32>
    %c0_41 = arith.constant 0 : index
    %c96 = arith.constant 96 : index
    %44 = vector.load %arg10[%c0_41, %c96] : memref<16x256xf32, #tpu.memory_space<vmem>>, vector<12x16xf32>
    tpu.vector_store %arg10[%c0_41, %c96], %43 {strides = array<i32>} : memref<16x256xf32, #tpu.memory_space<vmem>>, vector<12x16xf32>,
    %c0_42 = arith.constant 0 : index
    %c7 = arith.constant 7 : index
    %c0_43 = arith.constant 0 : index
    %45 = vector.load %arg9[%c0_42, %c7, %c0_43] : memref<12x16x16xf32, #tpu.memory_space<vmem>>, vector<12x1x16xf32>
    %46 = vector.shape_cast %45 : vector<12x1x16xf32> to vector<12x16xf32>
    %c0_44 = arith.constant 0 : index
    %c112 = arith.constant 112 : index
    %47 = vector.load %arg10[%c0_44, %c112] : memref<16x256xf32, #tpu.memory_space<vmem>>, vector<12x16xf32>
    tpu.vector_store %arg10[%c0_44, %c112], %46 {strides = array<i32>} : memref<16x256xf32, #tpu.memory_space<vmem>>, vector<12x16xf32>,
    %c0_45 = arith.constant 0 : index
    %c8 = arith.constant 8 : index
    %c0_46 = arith.constant 0 : index
    %48 = vector.load %arg9[%c0_45, %c8, %c0_46] : memref<12x16x16xf32, #tpu.memory_space<vmem>>, vector<12x1x16xf32>
    %49 = vector.shape_cast %48 : vector<12x1x16xf32> to vector<12x16xf32>
    %c0_47 = arith.constant 0 : index
    %c128 = arith.constant 128 : index
    %50 = vector.load %arg10[%c0_47, %c128] : memref<16x256xf32, #tpu.memory_space<vmem>>, vector<12x16xf32>
    tpu.vector_store %arg10[%c0_47, %c128], %49 {strides = array<i32>} : memref<16x256xf32, #tpu.memory_space<vmem>>, vector<12x16xf32>,
    %c0_48 = arith.constant 0 : index
    %c9 = arith.constant 9 : index
    %c0_49 = arith.constant 0 : index
    %51 = vector.load %arg9[%c0_48, %c9, %c0_49] : memref<12x16x16xf32, #tpu.memory_space<vmem>>, vector<12x1x16xf32>
    %52 = vector.shape_cast %51 : vector<12x1x16xf32> to vector<12x16xf32>
    %c0_50 = arith.constant 0 : index
    %c144 = arith.constant 144 : index
    %53 = vector.load %arg10[%c0_50, %c144] : memref<16x256xf32, #tpu.memory_space<vmem>>, vector<12x16xf32>
    tpu.vector_store %arg10[%c0_50, %c144], %52 {strides = array<i32>} : memref<16x256xf32, #tpu.memory_space<vmem>>, vector<12x16xf32>,
    %c0_51 = arith.constant 0 : index
    %c10 = arith.constant 10 : index
    %c0_52 = arith.constant 0 : index
    %54 = vector.load %arg9[%c0_51, %c10, %c0_52] : memref<12x16x16xf32, #tpu.memory_space<vmem>>, vector<12x1x16xf32>
    %55 = vector.shape_cast %54 : vector<12x1x16xf32> to vector<12x16xf32>
    %c0_53 = arith.constant 0 : index
    %c160 = arith.constant 160 : index
    %56 = vector.load %arg10[%c0_53, %c160] : memref<16x256xf32, #tpu.memory_space<vmem>>, vector<12x16xf32>
    tpu.vector_store %arg10[%c0_53, %c160], %55 {strides = array<i32>} : memref<16x256xf32, #tpu.memory_space<vmem>>, vector<12x16xf32>,
    %c0_54 = arith.constant 0 : index
    %c11 = arith.constant 11 : index
    %c0_55 = arith.constant 0 : index
    %57 = vector.load %arg9[%c0_54, %c11, %c0_55] : memref<12x16x16xf32, #tpu.memory_space<vmem>>, vector<12x1x16xf32>
    %58 = vector.shape_cast %57 : vector<12x1x16xf32> to vector<12x16xf32>
    %c0_56 = arith.constant 0 : index
    %c176 = arith.constant 176 : index
    %59 = vector.load %arg10[%c0_56, %c176] : memref<16x256xf32, #tpu.memory_space<vmem>>, vector<12x16xf32>
    tpu.vector_store %arg10[%c0_56, %c176], %58 {strides = array<i32>} : memref<16x256xf32, #tpu.memory_space<vmem>>, vector<12x16xf32>,
    %c0_57 = arith.constant 0 : index
    %c12 = arith.constant 12 : index
    %c0_58 = arith.constant 0 : index
    %60 = vector.load %arg9[%c0_57, %c12, %c0_58] : memref<12x16x16xf32, #tpu.memory_space<vmem>>, vector<12x1x16xf32>
    %61 = vector.shape_cast %60 : vector<12x1x16xf32> to vector<12x16xf32>
    %c0_59 = arith.constant 0 : index
    %c192 = arith.constant 192 : index
    %62 = vector.load %arg10[%c0_59, %c192] : memref<16x256xf32, #tpu.memory_space<vmem>>, vector<12x16xf32>
    tpu.vector_store %arg10[%c0_59, %c192], %61 {strides = array<i32>} : memref<16x256xf32, #tpu.memory_space<vmem>>, vector<12x16xf32>,
    %c0_60 = arith.constant 0 : index
    %c13 = arith.constant 13 : index
    %c0_61 = arith.constant 0 : index
    %63 = vector.load %arg9[%c0_60, %c13, %c0_61] : memref<12x16x16xf32, #tpu.memory_space<vmem>>, vector<12x1x16xf32>
    %64 = vector.shape_cast %63 : vector<12x1x16xf32> to vector<12x16xf32>
    %c0_62 = arith.constant 0 : index
    %c208 = arith.constant 208 : index
    %65 = vector.load %arg10[%c0_62, %c208] : memref<16x256xf32, #tpu.memory_space<vmem>>, vector<12x16xf32>
    tpu.vector_store %arg10[%c0_62, %c208], %64 {strides = array<i32>} : memref<16x256xf32, #tpu.memory_space<vmem>>, vector<12x16xf32>,
    %c0_63 = arith.constant 0 : index
    %c14 = arith.constant 14 : index
    %c0_64 = arith.constant 0 : index
    %66 = vector.load %arg9[%c0_63, %c14, %c0_64] : memref<12x16x16xf32, #tpu.memory_space<vmem>>, vector<12x1x16xf32>
    %67 = vector.shape_cast %66 : vector<12x1x16xf32> to vector<12x16xf32>
    %c0_65 = arith.constant 0 : index
    %c224 = arith.constant 224 : index
    %68 = vector.load %arg10[%c0_65, %c224] : memref<16x256xf32, #tpu.memory_space<vmem>>, vector<12x16xf32>
    tpu.vector_store %arg10[%c0_65, %c224], %67 {strides = array<i32>} : memref<16x256xf32, #tpu.memory_space<vmem>>, vector<12x16xf32>,
    %c0_66 = arith.constant 0 : index
    %c15 = arith.constant 15 : index
    %c0_67 = arith.constant 0 : index
    %69 = vector.load %arg9[%c0_66, %c15, %c0_67] : memref<12x16x16xf32, #tpu.memory_space<vmem>>, vector<12x1x16xf32>
    %70 = vector.shape_cast %69 : vector<12x1x16xf32> to vector<12x16xf32>
    %c0_68 = arith.constant 0 : index
    %c240 = arith.constant 240 : index
    %71 = vector.load %arg10[%c0_68, %c240] : memref<16x256xf32, #tpu.memory_space<vmem>>, vector<12x16xf32>
    tpu.vector_store %arg10[%c0_68, %c240], %70 {strides = array<i32>} : memref<16x256xf32, #tpu.memory_space<vmem>>, vector<12x16xf32>,
    %c0_69 = arith.constant 0 : index
    %c0_70 = arith.constant 0 : index
    %72 = vector.load %arg2[%c0_69, %c0_70] : memref<8x16xf32, #tpu.memory_space<vmem>>, vector<8x16xf32>
    %c0_71 = arith.constant 0 : index
    %c0_72 = arith.constant 0 : index
    %73 = vector.load %arg10[%c0_71, %c0_72] : memref<16x256xf32, #tpu.memory_space<vmem>>, vector<16x256xf32>
    %cst_73 = arith.constant dense<0.000000e+00> : vector<8x256xf32>
    %74 = tpu.matmul %72, %73, %cst_73 {dimension_numbers = #tpu.dot_dimension_numbers<[1], [0], [0], [1], [0, 0, 1, 1], [], []>} : vector<8x16xf32>, vector<16x256xf32>, vector<8x256xf32> -> vector<8x256xf32>
    %c0_74 = arith.constant 0 : index
    %c0_75 = arith.constant 0 : index
    %75 = vector.load %arg3[%c0_74, %c0_75] : memref<8x1xf32, #tpu.memory_space<vmem>>, vector<8x1xf32>
    %76 = vector.broadcast %75 : vector<8x1xf32> to vector<8x256xf32>
    %77 = arith.addf %74, %76 : vector<8x256xf32>
    %cst_76 = arith.constant dense<0.000000e+00> : vector<8xf32>
    %78 = vector.multi_reduction <add>, %77, %cst_76 [1] : vector<8x256xf32> to vector<8xf32>
    %79 = vector.shape_cast %78 : vector<8xf32> to vector<8x1xf32>
    %cst_77 = arith.constant 2.560000e+02 : f32
    %80 = vector.broadcast %cst_77 : f32 to vector<8x1xf32>
    %81 = arith.divf %79, %80 : vector<8x1xf32>
    %82 = vector.broadcast %81 : vector<8x1xf32> to vector<8x256xf32>
    %83 = arith.subf %77, %82 : vector<8x256xf32>
    %84 = arith.mulf %83, %83 : vector<8x256xf32>
    %cst_78 = arith.constant dense<0.000000e+00> : vector<8xf32>
    %85 = vector.multi_reduction <add>, %84, %cst_78 [1] : vector<8x256xf32> to vector<8xf32>
    %86 = vector.shape_cast %85 : vector<8xf32> to vector<8x1xf32>
    %cst_79 = arith.constant 2.560000e+02 : f32
    %87 = vector.broadcast %cst_79 : f32 to vector<8x1xf32>
    %88 = arith.divf %86, %87 : vector<8x1xf32>
    %cst_80 = arith.constant 9.99999974E-6 : f32
    %89 = vector.broadcast %cst_80 : f32 to vector<8x1xf32>
    %90 = arith.addf %88, %89 : vector<8x1xf32>
    %91 = math.rsqrt %90 : vector<8x1xf32>
    %92 = vector.broadcast %91 : vector<8x1xf32> to vector<8x256xf32>
    %93 = arith.mulf %83, %92 : vector<8x256xf32>
    %c0_81 = arith.constant 0 : index
    %c0_82 = arith.constant 0 : index
    %94 = vector.load %arg4[%c0_81, %c0_82] : memref<8x1xf32, #tpu.memory_space<vmem>>, vector<8x1xf32>
    %95 = vector.broadcast %94 : vector<8x1xf32> to vector<8x256xf32>
    %96 = arith.mulf %93, %95 : vector<8x256xf32>
    %c0_83 = arith.constant 0 : index
    %c0_84 = arith.constant 0 : index
    %97 = vector.load %arg5[%c0_83, %c0_84] : memref<8x1xf32, #tpu.memory_space<vmem>>, vector<8x1xf32>
    %98 = vector.broadcast %97 : vector<8x1xf32> to vector<8x256xf32>
    %99 = arith.addf %96, %98 : vector<8x256xf32>
    %cst_85 = arith.constant 0.000000e+00 : f32
    %100 = vector.broadcast %cst_85 : f32 to vector<8x256xf32>
    %101 = arith.maximumf %99, %100 : vector<8x256xf32>
    %c0_86 = arith.constant 0 : index
    %c0_87 = arith.constant 0 : index
    %102 = vector.load %arg6[%c0_86, %c0_87] : memref<12x8xf32, #tpu.memory_space<vmem>>, vector<12x8xf32>
    %cst_88 = arith.constant dense<0.000000e+00> : vector<12x256xf32>
    %103 = tpu.matmul %102, %101, %cst_88 {dimension_numbers = #tpu.dot_dimension_numbers<[1], [0], [0], [1], [0, 0, 1, 1], [], []>} : vector<12x8xf32>, vector<8x256xf32>, vector<12x256xf32> -> vector<12x256xf32>
    %c0_89 = arith.constant 0 : index
    %c0_90 = arith.constant 0 : index
    %104 = vector.load %arg7[%c0_89, %c0_90] : memref<12x1xf32, #tpu.memory_space<vmem>>, vector<12x1xf32>
    %105 = vector.broadcast %104 : vector<12x1xf32> to vector<12x256xf32>
    %106 = arith.addf %103, %105 : vector<12x256xf32>
    %c0_91 = arith.constant 0 : index
    %c0_92 = arith.constant 0 : index
    %107 = vector.load %arg10[%c0_91, %c0_92] : memref<16x256xf32, #tpu.memory_space<vmem>>, vector<12x256xf32>
    %108 = arith.mulf %107, %106 : vector<12x256xf32>
    %109 = vector.extract_strided_slice %108 {offsets = [0, 0], sizes = [12, 16], strides = [1, 1]} : vector<12x256xf32> to vector<12x16xf32>
    %c0_93 = arith.constant 0 : index
    %c0_94 = arith.constant 0 : index
    %c0_95 = arith.constant 0 : index
    %110 = vector.load %arg9[%c0_93, %c0_94, %c0_95] : memref<12x16x16xf32, #tpu.memory_space<vmem>>, vector<12x1x16xf32>
    %111 = vector.shape_cast %110 : vector<12x1x16xf32> to vector<12x16xf32>
    %112 = vector.shape_cast %109 : vector<12x16xf32> to vector<12x1x16xf32>
    tpu.vector_store %arg9[%c0_93, %c0_94, %c0_95], %112 {strides = array<i32>} : memref<12x16x16xf32, #tpu.memory_space<vmem>>, vector<12x1x16xf32>,
    %113 = vector.extract_strided_slice %108 {offsets = [0, 16], sizes = [12, 16], strides = [1, 1]} : vector<12x256xf32> to vector<12x16xf32>
    %c0_96 = arith.constant 0 : index
    %c1_97 = arith.constant 1 : index
    %c0_98 = arith.constant 0 : index
    %114 = vector.load %arg9[%c0_96, %c1_97, %c0_98] : memref<12x16x16xf32, #tpu.memory_space<vmem>>, vector<12x1x16xf32>
    %115 = vector.shape_cast %114 : vector<12x1x16xf32> to vector<12x16xf32>
    %116 = vector.shape_cast %113 : vector<12x16xf32> to vector<12x1x16xf32>
    tpu.vector_store %arg9[%c0_96, %c1_97, %c0_98], %116 {strides = array<i32>} : memref<12x16x16xf32, #tpu.memory_space<vmem>>, vector<12x1x16xf32>,
    %117 = vector.extract_strided_slice %108 {offsets = [0, 32], sizes = [12, 16], strides = [1, 1]} : vector<12x256xf32> to vector<12x16xf32>
    %c0_99 = arith.constant 0 : index
    %c2_100 = arith.constant 2 : index
    %c0_101 = arith.constant 0 : index
    %118 = vector.load %arg9[%c0_99, %c2_100, %c0_101] : memref<12x16x16xf32, #tpu.memory_space<vmem>>, vector<12x1x16xf32>
    %119 = vector.shape_cast %118 : vector<12x1x16xf32> to vector<12x16xf32>
    %120 = vector.shape_cast %117 : vector<12x16xf32> to vector<12x1x16xf32>
    tpu.vector_store %arg9[%c0_99, %c2_100, %c0_101], %120 {strides = array<i32>} : memref<12x16x16xf32, #tpu.memory_space<vmem>>, vector<12x1x16xf32>,
    %121 = vector.extract_strided_slice %108 {offsets = [0, 48], sizes = [12, 16], strides = [1, 1]} : vector<12x256xf32> to vector<12x16xf32>
    %c0_102 = arith.constant 0 : index
    %c3_103 = arith.constant 3 : index
    %c0_104 = arith.constant 0 : index
    %122 = vector.load %arg9[%c0_102, %c3_103, %c0_104] : memref<12x16x16xf32, #tpu.memory_space<vmem>>, vector<12x1x16xf32>
    %123 = vector.shape_cast %122 : vector<12x1x16xf32> to vector<12x16xf32>
    %124 = vector.shape_cast %121 : vector<12x16xf32> to vector<12x1x16xf32>
    tpu.vector_store %arg9[%c0_102, %c3_103, %c0_104], %124 {strides = array<i32>} : memref<12x16x16xf32, #tpu.memory_space<vmem>>, vector<12x1x16xf32>,
    %125 = vector.extract_strided_slice %108 {offsets = [0, 64], sizes = [12, 16], strides = [1, 1]} : vector<12x256xf32> to vector<12x16xf32>
    %c0_105 = arith.constant 0 : index
    %c4_106 = arith.constant 4 : index
    %c0_107 = arith.constant 0 : index
    %126 = vector.load %arg9[%c0_105, %c4_106, %c0_107] : memref<12x16x16xf32, #tpu.memory_space<vmem>>, vector<12x1x16xf32>
    %127 = vector.shape_cast %126 : vector<12x1x16xf32> to vector<12x16xf32>
    %128 = vector.shape_cast %125 : vector<12x16xf32> to vector<12x1x16xf32>
    tpu.vector_store %arg9[%c0_105, %c4_106, %c0_107], %128 {strides = array<i32>} : memref<12x16x16xf32, #tpu.memory_space<vmem>>, vector<12x1x16xf32>,
    %129 = vector.extract_strided_slice %108 {offsets = [0, 80], sizes = [12, 16], strides = [1, 1]} : vector<12x256xf32> to vector<12x16xf32>
    %c0_108 = arith.constant 0 : index
    %c5_109 = arith.constant 5 : index
    %c0_110 = arith.constant 0 : index
    %130 = vector.load %arg9[%c0_108, %c5_109, %c0_110] : memref<12x16x16xf32, #tpu.memory_space<vmem>>, vector<12x1x16xf32>
    %131 = vector.shape_cast %130 : vector<12x1x16xf32> to vector<12x16xf32>
    %132 = vector.shape_cast %129 : vector<12x16xf32> to vector<12x1x16xf32>
    tpu.vector_store %arg9[%c0_108, %c5_109, %c0_110], %132 {strides = array<i32>} : memref<12x16x16xf32, #tpu.memory_space<vmem>>, vector<12x1x16xf32>,
    %133 = vector.extract_strided_slice %108 {offsets = [0, 96], sizes = [12, 16], strides = [1, 1]} : vector<12x256xf32> to vector<12x16xf32>
    %c0_111 = arith.constant 0 : index
    %c6_112 = arith.constant 6 : index
    %c0_113 = arith.constant 0 : index
    %134 = vector.load %arg9[%c0_111, %c6_112, %c0_113] : memref<12x16x16xf32, #tpu.memory_space<vmem>>, vector<12x1x16xf32>
    %135 = vector.shape_cast %134 : vector<12x1x16xf32> to vector<12x16xf32>
    %136 = vector.shape_cast %133 : vector<12x16xf32> to vector<12x1x16xf32>
    tpu.vector_store %arg9[%c0_111, %c6_112, %c0_113], %136 {strides = array<i32>} : memref<12x16x16xf32, #tpu.memory_space<vmem>>, vector<12x1x16xf32>,
    %137 = vector.extract_strided_slice %108 {offsets = [0, 112], sizes = [12, 16], strides = [1, 1]} : vector<12x256xf32> to vector<12x16xf32>
    %c0_114 = arith.constant 0 : index
    %c7_115 = arith.constant 7 : index
    %c0_116 = arith.constant 0 : index
    %138 = vector.load %arg9[%c0_114, %c7_115, %c0_116] : memref<12x16x16xf32, #tpu.memory_space<vmem>>, vector<12x1x16xf32>
    %139 = vector.shape_cast %138 : vector<12x1x16xf32> to vector<12x16xf32>
    %140 = vector.shape_cast %137 : vector<12x16xf32> to vector<12x1x16xf32>
    tpu.vector_store %arg9[%c0_114, %c7_115, %c0_116], %140 {strides = array<i32>} : memref<12x16x16xf32, #tpu.memory_space<vmem>>, vector<12x1x16xf32>,
    %141 = vector.extract_strided_slice %108 {offsets = [0, 128], sizes = [12, 16], strides = [1, 1]} : vector<12x256xf32> to vector<12x16xf32>
    %c0_117 = arith.constant 0 : index
    %c8_118 = arith.constant 8 : index
    %c0_119 = arith.constant 0 : index
    %142 = vector.load %arg9[%c0_117, %c8_118, %c0_119] : memref<12x16x16xf32, #tpu.memory_space<vmem>>, vector<12x1x16xf32>
    %143 = vector.shape_cast %142 : vector<12x1x16xf32> to vector<12x16xf32>
    %144 = vector.shape_cast %141 : vector<12x16xf32> to vector<12x1x16xf32>
    tpu.vector_store %arg9[%c0_117, %c8_118, %c0_119], %144 {strides = array<i32>} : memref<12x16x16xf32, #tpu.memory_space<vmem>>, vector<12x1x16xf32>,
    %145 = vector.extract_strided_slice %108 {offsets = [0, 144], sizes = [12, 16], strides = [1, 1]} : vector<12x256xf32> to vector<12x16xf32>
    %c0_120 = arith.constant 0 : index
    %c9_121 = arith.constant 9 : index
    %c0_122 = arith.constant 0 : index
    %146 = vector.load %arg9[%c0_120, %c9_121, %c0_122] : memref<12x16x16xf32, #tpu.memory_space<vmem>>, vector<12x1x16xf32>
    %147 = vector.shape_cast %146 : vector<12x1x16xf32> to vector<12x16xf32>
    %148 = vector.shape_cast %145 : vector<12x16xf32> to vector<12x1x16xf32>
    tpu.vector_store %arg9[%c0_120, %c9_121, %c0_122], %148 {strides = array<i32>} : memref<12x16x16xf32, #tpu.memory_space<vmem>>, vector<12x1x16xf32>,
    %149 = vector.extract_strided_slice %108 {offsets = [0, 160], sizes = [12, 16], strides = [1, 1]} : vector<12x256xf32> to vector<12x16xf32>
    %c0_123 = arith.constant 0 : index
    %c10_124 = arith.constant 10 : index
    %c0_125 = arith.constant 0 : index
    %150 = vector.load %arg9[%c0_123, %c10_124, %c0_125] : memref<12x16x16xf32, #tpu.memory_space<vmem>>, vector<12x1x16xf32>
    %151 = vector.shape_cast %150 : vector<12x1x16xf32> to vector<12x16xf32>
    %152 = vector.shape_cast %149 : vector<12x16xf32> to vector<12x1x16xf32>
    tpu.vector_store %arg9[%c0_123, %c10_124, %c0_125], %152 {strides = array<i32>} : memref<12x16x16xf32, #tpu.memory_space<vmem>>, vector<12x1x16xf32>,
    %153 = vector.extract_strided_slice %108 {offsets = [0, 176], sizes = [12, 16], strides = [1, 1]} : vector<12x256xf32> to vector<12x16xf32>
    %c0_126 = arith.constant 0 : index
    %c11_127 = arith.constant 11 : index
    %c0_128 = arith.constant 0 : index
    %154 = vector.load %arg9[%c0_126, %c11_127, %c0_128] : memref<12x16x16xf32, #tpu.memory_space<vmem>>, vector<12x1x16xf32>
    %155 = vector.shape_cast %154 : vector<12x1x16xf32> to vector<12x16xf32>
    %156 = vector.shape_cast %153 : vector<12x16xf32> to vector<12x1x16xf32>
    tpu.vector_store %arg9[%c0_126, %c11_127, %c0_128], %156 {strides = array<i32>} : memref<12x16x16xf32, #tpu.memory_space<vmem>>, vector<12x1x16xf32>,
    %157 = vector.extract_strided_slice %108 {offsets = [0, 192], sizes = [12, 16], strides = [1, 1]} : vector<12x256xf32> to vector<12x16xf32>
    %c0_129 = arith.constant 0 : index
    %c12_130 = arith.constant 12 : index
    %c0_131 = arith.constant 0 : index
    %158 = vector.load %arg9[%c0_129, %c12_130, %c0_131] : memref<12x16x16xf32, #tpu.memory_space<vmem>>, vector<12x1x16xf32>
    %159 = vector.shape_cast %158 : vector<12x1x16xf32> to vector<12x16xf32>
    %160 = vector.shape_cast %157 : vector<12x16xf32> to vector<12x1x16xf32>
    tpu.vector_store %arg9[%c0_129, %c12_130, %c0_131], %160 {strides = array<i32>} : memref<12x16x16xf32, #tpu.memory_space<vmem>>, vector<12x1x16xf32>,
    %161 = vector.extract_strided_slice %108 {offsets = [0, 208], sizes = [12, 16], strides = [1, 1]} : vector<12x256xf32> to vector<12x16xf32>
    %c0_132 = arith.constant 0 : index
    %c13_133 = arith.constant 13 : index
    %c0_134 = arith.constant 0 : index
    %162 = vector.load %arg9[%c0_132, %c13_133, %c0_134] : memref<12x16x16xf32, #tpu.memory_space<vmem>>, vector<12x1x16xf32>
    %163 = vector.shape_cast %162 : vector<12x1x16xf32> to vector<12x16xf32>
    %164 = vector.shape_cast %161 : vector<12x16xf32> to vector<12x1x16xf32>
    tpu.vector_store %arg9[%c0_132, %c13_133, %c0_134], %164 {strides = array<i32>} : memref<12x16x16xf32, #tpu.memory_space<vmem>>, vector<12x1x16xf32>,
    %165 = vector.extract_strided_slice %108 {offsets = [0, 224], sizes = [12, 16], strides = [1, 1]} : vector<12x256xf32> to vector<12x16xf32>
    %c0_135 = arith.constant 0 : index
    %c14_136 = arith.constant 14 : index
    %c0_137 = arith.constant 0 : index
    %166 = vector.load %arg9[%c0_135, %c14_136, %c0_137] : memref<12x16x16xf32, #tpu.memory_space<vmem>>, vector<12x1x16xf32>
    %167 = vector.shape_cast %166 : vector<12x1x16xf32> to vector<12x16xf32>
    %168 = vector.shape_cast %165 : vector<12x16xf32> to vector<12x1x16xf32>
    tpu.vector_store %arg9[%c0_135, %c14_136, %c0_137], %168 {strides = array<i32>} : memref<12x16x16xf32, #tpu.memory_space<vmem>>, vector<12x1x16xf32>,
    %169 = vector.extract_strided_slice %108 {offsets = [0, 240], sizes = [12, 16], strides = [1, 1]} : vector<12x256xf32> to vector<12x16xf32>
    %c0_138 = arith.constant 0 : index
    %c15_139 = arith.constant 15 : index
    %c0_140 = arith.constant 0 : index
    %170 = vector.load %arg9[%c0_138, %c15_139, %c0_140] : memref<12x16x16xf32, #tpu.memory_space<vmem>>, vector<12x1x16xf32>
    %171 = vector.shape_cast %170 : vector<12x1x16xf32> to vector<12x16xf32>
    %172 = vector.shape_cast %169 : vector<12x16xf32> to vector<12x1x16xf32>
    tpu.vector_store %arg9[%c0_138, %c15_139, %c0_140], %172 {strides = array<i32>} : memref<12x16x16xf32, #tpu.memory_space<vmem>>, vector<12x1x16xf32>,
    %c0_141 = arith.constant 0 : index
    %c0_142 = arith.constant 0 : index
    %c0_143 = arith.constant 0 : index
    %173 = vector.load %arg9[%c0_141, %c0_142, %c0_143] : memref<12x16x16xf32, #tpu.memory_space<vmem>>, vector<12x16x16xf32>
    %cst_144 = arith.constant dense<0.000000e+00> : vector<12x16xf32>
    %174 = vector.multi_reduction <add>, %173, %cst_144 [2] : vector<12x16x16xf32> to vector<12x16xf32>
    %cst_145 = arith.constant 1.600000e+01 : f32
    %175 = vector.broadcast %cst_145 : f32 to vector<12x16xf32>
    %176 = arith.divf %174, %175 : vector<12x16xf32>
    %cst_146 = arith.constant 2.000000e+01 : f32
    %177 = vector.broadcast %cst_146 : f32 to vector<12x16xf32>
    %178 = arith.mulf %176, %177 : vector<12x16xf32>
    %cst_147 = arith.constant dense<0xFF800000> : vector<12xf32>
    %179 = vector.multi_reduction <maximumf>, %178, %cst_147 [1] : vector<12x16xf32> to vector<12xf32>
    %180 = vector.shape_cast %179 : vector<12xf32> to vector<12x1xf32>
    %181 = vector.broadcast %180 : vector<12x1xf32> to vector<12x16xf32>
    %182 = arith.subf %178, %181 : vector<12x16xf32>
    %183 = math.exp %182 : vector<12x16xf32>
    %cst_148 = arith.constant dense<0.000000e+00> : vector<12xf32>
    %184 = vector.multi_reduction <add>, %183, %cst_148 [1] : vector<12x16xf32> to vector<12xf32>
    %185 = vector.shape_cast %184 : vector<12xf32> to vector<12x1xf32>
    %186 = vector.broadcast %185 : vector<12x1xf32> to vector<12x16xf32>
    %187 = arith.divf %183, %186 : vector<12x16xf32>
    %cst_149 = arith.constant 1.000000e+00 : f32
    %188 = vector.broadcast %cst_149 : f32 to vector<12x16xf32>
    %189 = arith.addf %187, %188 : vector<12x16xf32>
    %c0_150 = arith.constant 0 : index
    %c0_151 = arith.constant 0 : index
    %190 = vector.load %arg8[%c0_150, %c0_151] : memref<12x16xf32, #tpu.memory_space<vmem>>, vector<12x16xf32>
    tpu.vector_store %arg8[%c0_150, %c0_151], %189 {strides = array<i32>} : memref<12x16xf32, #tpu.memory_space<vmem>>, vector<12x16xf32>,
    return
  }
}

</mosaic_0001>

<bundles_post_ra>
// kernel: feat_cross_forward.1
= control target key start
LH: loop header
LB: loop body
LE: loop exit
PB: predicated region body
PF: predicated region fallthrough
CT: control target
= control target key end

     0   :  { %vm65_vm0 = vcmask 261120   ;;  %s3674_s14 = smov 16   ;;  %s3675_s15 = smov 48   ;;  %s6237_s0 = inlined_call_operand.vmem [shape: f32[6,16,32], index: 0, kind: input, shape index: {}]   ;;  %s6238_s1 = inlined_call_operand.vmem [shape: f32[6,16,32], index: 1, kind: input, shape index: {}]   ;;  %s6239_s3 = inlined_call_operand.vmem [shape: f32[8,1], index: 3, kind: input, shape index: {}]   ;;  %s6240_s4 = inlined_call_operand.vmem [shape: f32[8,1], index: 4, kind: input, shape index: {}]   ;;  %s6241_s5 = inlined_call_operand.vmem [shape: f32[8,1], index: 5, kind: input, shape index: {}]   ;;  %s6242_s7 = inlined_call_operand.vmem [shape: f32[12,1], index: 7, kind: input, shape index: {}]   ;;  %s6243_s2 = inlined_call_operand.vmem [shape: f32[8,16], index: 2, kind: input, shape index: {}]   ;;  %s6244_s6 = inlined_call_operand.vmem [shape: f32[12,8], index: 6, kind: input, shape index: {}]   ;;  %s6245_s8 = inlined_call_operand.vmem [shape: f32[12,16], index: 8, kind: output, shape index: {}]  }
   0x1   :  { %v3730_v0 = vld [vmem:[%s6237_s0 + $0x20] sm:$0xff]  ;;  %v3735_v1 = vld [vmem:[%s6237_s0 + $0x10] sm:$0xff]  ;;  %v3751_v6 = vld [vmem:[%s6237_s0 + $0x28] sm:$0xff]  ;;  %s3676_s16 = smov 64   ;;  %s3677_s17 = smov 96  }
   0x2   :  { %v3740_v2 = vld [vmem:[%s6237_s0] sm:$0xff]  ;;  %v57_v3 = vmul.f32 %v3730_v0, %v3730_v0  ;;  %v55_v4 = vmul.f32 %v3735_v1, %v3735_v1  ;;  %6270 = vst [vmem:[#allocation4_spill] sm:$0xff] %v3751_v6  ;;  %v3756_v7 = vld [vmem:[%s6237_s0 + $0x18] sm:$0xff]  ;;  %v3764_v11 = vld [vmem:[%s6237_s0 + $0x8] sm:$0xff]  ;;  %v58_v12 = vmul.f32 %v3751_v6, %v3751_v6  ;;  %s3678_s18 = smov 112  }
   0x3   :  { %v53_v5 = vmul.f32 %v3740_v2, %v3740_v2  ;;  %v56_v13 = vmul.f32 %v3756_v7, %v3756_v7  ;;  %v54_v14 = vmul.f32 %v3764_v11, %v3764_v11  ;;  %v3778_v18 = vld [vmem:[%s6237_s0 + $0x40] sm:$0xff]  ;;  %v3783_v19 = vld [vmem:[%s6237_s0 + $0x38] sm:$0xff]  ;;  %v3788_v20 = vld [vmem:[%s6237_s0 + $0x30] sm:$0xff] }
   0x4   :  { %v78_v8 = vsel %vm65_vm0, %v57_v3, 0.0  ;;  %v72_v9 = vsel %vm65_vm0, %v55_v4, 0.0  ;;  %v81_v15 = vsel %vm65_vm0, %v58_v12, 0.0  ;;  %6271 = vst [vmem:[#allocation5_spill] sm:$0xff] %v3783_v19  ;;  %v61_v21 = vmul.f32 %v3778_v18, %v3778_v18  ;;  %v3802_v27 = vld [vmem:[%s6237_s0 + $0x58] sm:$0xff]  ;;  %v3807_v28 = vld [vmem:[%s6237_s0 + $0x50] sm:$0xff] }
   0x5   :  { %v66_v10 = vsel %vm65_vm0, %v53_v5, 0.0  ;;  %79 = vadd.xlane.f32.xlu2 %v78_v8  ;;  %73 = vadd.xlane.f32.xlu1 %v72_v9  ;;  %v75_v16 = vsel %vm65_vm0, %v56_v13, 0.0  ;;  %v69_v17 = vsel %vm65_vm0, %v54_v14, 0.0  ;;  %v60_v22 = vmul.f32 %v3783_v19, %v3783_v19  ;;  %6272 = vst [vmem:[#allocation6_spill] sm:$0xff] %v3802_v27  ;;  %v3812_v29 = vld [vmem:[%s6237_s0 + $0x48] sm:$0xff]  ;;  %v3826_v36 = vld [vmem:[%s6238_s1 + $0x10] sm:$0xff] }
   0x6   :  { %67 = vadd.xlane.f32.xlu0 %v66_v10  ;;  %v59_v23 = vmul.f32 %v3788_v20, %v3788_v20  ;;  %v90_v24 = vsel %vm65_vm0, %v61_v21, 0.0  ;;  %6273 = vst [vmem:[#allocation7_spill] sm:$0xff] %v3807_v28  ;;  %v64_v30 = vmul.f32 %v3802_v27, %v3802_v27  ;;  %v63_v31 = vmul.f32 %v3807_v28, %v3807_v28  ;;  %v3831_v37 = vld [vmem:[%s6238_s1 + $0x8] sm:$0xff]  ;;  %v3836_v38 = vld [vmem:[%s6238_s1] sm:$0xff]  ;;  %v3860_v47 = vld [vmem:[%s6238_s1 + $0x18] sm:$0xff] }
   0x7   :  { %v87_v25 = vsel %vm65_vm0, %v60_v22, 0.0  ;;  %v62_v32 = vmul.f32 %v3812_v29, %v3812_v29  ;;  %v248_v39 = vmul.f32 %v3826_v36, %v3826_v36  ;;  %v247_v40 = vmul.f32 %v3831_v37, %v3831_v37  ;;  %v3850_v45 = vld [vmem:[%s6238_s1 + $0x28] sm:$0xff]  ;;  %v3855_v46 = vld [vmem:[%s6238_s1 + $0x20] sm:$0xff]  ;;  %v3879_v55 = vld [vmem:[%s6238_s1 + $0x38] sm:$0xff] }
   0x8   :  { %v84_v26 = vsel %vm65_vm0, %v59_v23, 0.0  ;;  %v99_v33 = vsel %vm65_vm0, %v64_v30, 0.0  ;;  %v96_v34 = vsel %vm65_vm0, %v63_v31, 0.0  ;;  %v246_v41 = vmul.f32 %v3836_v38, %v3836_v38  ;;  %v3874_v54 = vld [vmem:[%s6238_s1 + $0x40] sm:$0xff]  ;;  %v3884_v56 = vld [vmem:[%s6238_s1 + $0x30] sm:$0xff]  ;;  %v3898_v63 = vld [vmem:[%s6238_s1 + $0x58] sm:$0xff] }
   0x9   :  { %v93_v35 = vsel %vm65_vm0, %v62_v32, 0.0  ;;  %v264_v42 = vsel %vm65_vm0, %v248_v39, 0.0  ;;  %v261_v43 = vsel %vm65_vm0, %v247_v40, 0.0  ;;  %v251_v48 = vmul.f32 %v3850_v45, %v3850_v45  ;;  %6274 = vst [vmem:[#allocation8_spill] sm:$0xff] %v3874_v54  ;;  %v3903_v3 = vld [vmem:[%s6238_s1 + $0x50] sm:$0xff]  ;;  %v3908_v4 = vld [vmem:[%s6238_s1 + $0x48] sm:$0xff] }
   0xa   :  { %v258_v44 = vsel %vm65_vm0, %v246_v41, 0.0  ;;  %v250_v49 = vmul.f32 %v3855_v46, %v3855_v46  ;;  %v249_v50 = vmul.f32 %v3860_v47, %v3860_v47  ;;  %v254_v57 = vmul.f32 %v3874_v54, %v3874_v54  ;;  %6275 = vst [vmem:[#allocation9_spill] sm:$0xff] %v3903_v3 }
   0xb   :  { %v273_v51 = vsel %vm65_vm0, %v251_v48, 0.0  ;;  %v253_v58 = vmul.f32 %v3879_v55, %v3879_v55  ;;  %v252_v59 = vmul.f32 %v3884_v56, %v3884_v56  ;;  %6276 = vst [vmem:[#allocation10_spill] sm:$0xff] %v3908_v4  ;;  %v257_v5 = vmul.f32 %v3898_v63, %v3898_v63 }
   0xc   :  { %v270_v52 = vsel %vm65_vm0, %v250_v49, 0.0  ;;  %v267_v53 = vsel %vm65_vm0, %v249_v50, 0.0  ;;  %v282_v60 = vsel %vm65_vm0, %v254_v57, 0.0  ;;  %v256_v8 = vmul.f32 %v3903_v3, %v3903_v3 }
   0xd   :  { %82 = vadd.xlane.f32.xlu2 %v81_v15  ;;  %76 = vadd.xlane.f32.xlu1 %v75_v16  ;;  %v279_v61 = vsel %vm65_vm0, %v253_v58, 0.0  ;;  %v276_v62 = vsel %vm65_vm0, %v252_v59, 0.0  ;;  %v255_v9 = vmul.f32 %v3908_v4, %v3908_v4  ;;  %v291_v10 = vsel %vm65_vm0, %v257_v5, 0.0 }
   0xe   :  { %70 = vadd.xlane.f32.xlu0 %v69_v17  ;;  %v288_v12 = vsel %vm65_vm0, %v256_v8, 0.0 }
   0xf   :  { %v285_v13 = vsel %vm65_vm0, %v255_v9, 0.0 }
  0x15   :  { %91 = vadd.xlane.f32.xlu2 %v90_v24  ;;  %88 = vadd.xlane.f32.xlu1 %v87_v25 }
  0x16   :  { %85 = vadd.xlane.f32.xlu0 %v84_v26 }
  0x1d   :  { %100 = vadd.xlane.f32.xlu2 %v99_v33  ;;  %97 = vadd.xlane.f32.xlu1 %v96_v34 }
  0x1e   :  { %94 = vadd.xlane.f32.xlu0 %v93_v35 }
  0x25   :  { %265 = vadd.xlane.f32.xlu2 %v264_v42  ;;  %262 = vadd.xlane.f32.xlu1 %v261_v43 }
  0x26   :  { %259 = vadd.xlane.f32.xlu0 %v258_v44 }
  0x2d   :  { %274 = vadd.xlane.f32.xlu2 %v273_v51  ;;  %271 = vadd.xlane.f32.xlu1 %v270_v52 }
  0x2e   :  { %268 = vadd.xlane.f32.xlu0 %v267_v53 }
  0x35   :  { %283 = vadd.xlane.f32.xlu2 %v282_v60  ;;  %280 = vadd.xlane.f32.xlu1 %v279_v61 }
  0x36   :  { %277 = vadd.xlane.f32.xlu0 %v276_v62 }
  0x3d   :  { %292 = vadd.xlane.f32.xlu2 %v291_v10  ;;  %289 = vadd.xlane.f32.xlu1 %v288_v12 }
  0x3e   :  { %286 = vadd.xlane.f32.xlu0 %v285_v13 }
  0x78   :  { %v80_v14 = vpop.xlane.xlu2 %79  ;;  %v74_v15 = vpop.xlane.xlu1 %73 }
  0x79   :  { %v3919_v16 = vmax.f32 %v80_v14, 1e-24  ;;  %v3921_v17 = vmax.f32 %v74_v15, 1e-24  ;;  %v68_v21 = vpop.xlane.xlu0 %67 }
  0x7a   :  { %v3923_v22 = vmax.f32 %v68_v21, 1e-24 }
  0x7b   :  { %3545 = vrsqrt.f32 %v3919_v16  ;;  %vm160_vm1 = vweird.f32 %v3919_v16  ;;  %vm140_vm2 = vweird.f32 %v3921_v17 }
  0x7c   :  { %3547 = vrsqrt.f32 %v3921_v17  ;;  %vm120_vm3 = vweird.f32 %v3923_v22 }
  0x7d   :  { %3549 = vrsqrt.f32 %v3923_v22 }
  0x80   :  { %v83_v23 = vpop.xlane.xlu2 %82  ;;  %v77_v24 = vpop.xlane.xlu1 %76 }
  0x81   :  { %v3928_v25 = vmax.f32 %v77_v24, 1e-24  ;;  %v71_v26 = vpop.xlane.xlu0 %70  ;;  %v3930_v30 = vpop.eup %3545  ;;  %v3939_v34 = vmax.f32 %v83_v23, 1e-24 }
  0x82   :  { %v3932_v31 = vmax.f32 %v71_v26, 1e-24  ;;  %v3934_v32 = vpop.eup %3547  ;;  %v155_v35 = vmul.f32 %v3930_v30, %v3919_v16  ;;  %vm161_vm5 = vweird.f32 %v3930_v30 }
  0x83   :  { %v3936_v33 = vpop.eup %3549  ;;  %3551 = vrsqrt.f32 %v3928_v25  ;;  %v135_v39 = vmul.f32 %v3934_v32, %v3921_v17  ;;  %vm150_vm6 = vweird.f32 %v3928_v25  ;;  %vm141_vm7 = vweird.f32 %v3934_v32  ;;  %vm4012_vm8 = vmor %vm160_vm1, %vm161_vm5 }
  0x84   :  { %3553 = vrsqrt.f32 %v3932_v31  ;;  %v115_v40 = vmul.f32 %v3936_v33, %v3923_v22  ;;  %v156_v50 = vmul.f32 %v3930_v30, %v155_v35  ;;  %vm121_vm4 = vweird.f32 %v3936_v33  ;;  %vm4041_vm12 = vmor %vm140_vm2, %vm141_vm7 }
  0x85   :  { %3555 = vrsqrt.f32 %v3939_v34  ;;  %v136_v52 = vmul.f32 %v3934_v32, %v135_v39  ;;  %vm130_vm9 = vweird.f32 %v3932_v31  ;;  %vm4027_vm10 = vmor %vm120_vm3, %vm121_vm4  ;;  %vm170_vm14 = vweird.f32 %v3939_v34 }
  0x86   :  { %v116_v53 = vmul.f32 %v3936_v33, %v115_v40  ;;  %v157_v60 = vmul.f32 0.5, %v156_v50 }
  0x87   :  { %v137_v62 = vmul.f32 0.5, %v136_v52 }
  0x88   :  { %v92_v41 = vpop.xlane.xlu2 %91  ;;  %v89_v42 = vpop.xlane.xlu1 %88  ;;  %v117_v5 = vmul.f32 0.5, %v116_v53  ;;  %v158_v23 = vsub.f32 1.5, %v157_v60 }
  0x89   :  { %v3949_v43 = vmax.f32 %v92_v41, 1e-24  ;;  %v3951_v44 = vmax.f32 %v89_v42, 1e-24  ;;  %v86_v48 = vpop.xlane.xlu0 %85  ;;  %v3953_v49 = vpop.eup %3551  ;;  %v138_v39 = vsub.f32 1.5, %v137_v62 }
  0x8a   :  { %v3956_v51 = vpop.eup %3553  ;;  %v3961_v57 = vmax.f32 %v86_v48, 1e-24  ;;  %v145_v58 = vmul.f32 %v3953_v49, %v3928_v25  ;;  %v118_v40 = vsub.f32 1.5, %v117_v5  ;;  %vm151_vm13 = vweird.f32 %v3953_v49 }
  0x8b   :  { %3557 = vrsqrt.f32 %v3949_v43  ;;  %v125_v59 = vmul.f32 %v3956_v51, %v3932_v31  ;;  %v3968_v61 = vpop.eup %3555  ;;  %v139_v60 = vmul.f32 %v3934_v32, %v138_v39  ;;  %vm131_vm11 = vweird.f32 %v3956_v51  ;;  %vm4093_vm2 = vmor %vm150_vm6, %vm151_vm13 }
  0x8c   :  { %3559 = vrsqrt.f32 %v3951_v44  ;;  %6277 = vst [vmem:[#allocation11_spill] sm:$0xff] %v3968_v61  ;;  %v146_v8 = vmul.f32 %v3953_v49, %v145_v58  ;;  %v165_v24 = vmul.f32 %v3968_v61, %v3939_v34  ;;  %v159_v58 = vmul.f32 %v3930_v30, %v158_v23  ;;  %vm4073_vm1 = vmor %vm130_vm9, %vm131_vm11 }
  0x8d   :  { %3561 = vrsqrt.f32 %v3961_v57  ;;  %v126_v9 = vmul.f32 %v3956_v51, %v125_v59  ;;  %v119_v59 = vmul.f32 %v3936_v33, %v118_v40  ;;  %vm200_vm15 = vweird.f32 %v3949_v43 }
  0x8e   :  { %v147_v41 = vmul.f32 0.5, %v146_v8  ;;  %v166_v52 = vmul.f32 %v3968_v61, %v165_v24  ;;  %vm171_vm4 = vweird.f32 %v3968_v61 }
  0x8f   :  { %v127_v42 = vmul.f32 0.5, %v126_v9 }
  0x90   :  { %v101_v10 = vpop.xlane.xlu2 %100  ;;  %v98_v12 = vpop.xlane.xlu1 %97  ;;  %v148_v62 = vsub.f32 1.5, %v147_v41 }
  0x91   :  { %v3973_v13 = vpop.eup %3557  ;;  %v3975_v14 = vmax.f32 %v101_v10, 1e-24  ;;  %v3977_v15 = vmax.f32 %v98_v12, 1e-24  ;;  %v95_v21 = vpop.xlane.xlu0 %94  ;;  %v128_v5 = vsub.f32 1.5, %v127_v42  ;;  %v167_v42 = vmul.f32 0.5, %v166_v52 }
  0x92   :  { %v3981_v26 = vmax.f32 %v95_v21, 1e-24  ;;  %v3983_v35 = vpop.eup %3559  ;;  %v195_v48 = vmul.f32 %v3973_v13, %v3949_v43  ;;  %v123_v52 = vsel %vm4027_vm10, %v3936_v33, %v119_v59  ;;  %vm201_vm3 = vweird.f32 %v3973_v13 }
  0x93   :  { %6278 = vst [vmem:[#allocation12_spill] sm:$0xff] %v3977_v15  ;;  %3563 = vrsqrt.f32 %v3975_v14  ;;  %v3990_v50 = vpop.eup %3561  ;;  %v185_v53 = vmul.f32 %v3983_v35, %v3951_v44  ;;  %v168_v59 = vsub.f32 1.5, %v167_v42  ;;  %vm4146_vm5 = vmor %vm200_vm15, %vm201_vm3  ;;  %v6293_v43 = vmov 0 }
  0x94   :  { %3565 = vrsqrt.f32 %v3977_v15  ;;  %v196_v8 = vmul.f32 %v3973_v13, %v195_v48  ;;  %v175_v9 = vmul.f32 %v3990_v50, %v3961_v57  ;;  %vm210_vm11 = vweird.f32 %v3981_v26 }
  0x95   :  { %3567 = vrsqrt.f32 %v3981_v26  ;;  %v186_v48 = vmul.f32 %v3983_v35, %v185_v53  ;;  %v143_v53 = vsel %vm4041_vm12, %v3934_v32, %v139_v60 }
  0x96   :  { %v197_v28 = vmul.f32 0.5, %v196_v8  ;;  %v176_v21 = vmul.f32 %v3990_v50, %v175_v9  ;;  %v4084_v9 = vmul.f32 %v123_v52, %v3740_v2 }
  0x97   :  { %v187_v60 = vmul.f32 0.5, %v186_v48 }
  0x98   :  { %v266_v10 = vpop.xlane.xlu2 %265  ;;  %v263_v12 = vpop.xlane.xlu1 %262  ;;  %v4097_v42 = vmul.f32 0.5, %v176_v21 }
  0x99   :  { %v4016_v23 = vpop.eup %3563  ;;  %v4019_v24 = vmax.f32 %v266_v10, 1e-24  ;;  %v4021_v39 = vmax.f32 %v263_v12, 1e-24  ;;  %v260_v40 = vpop.xlane.xlu0 %259  ;;  %v163_v12 = vsel %vm4012_vm8, %v3930_v30, %v159_v58  ;;  %v129_v30 = vmul.f32 %v3956_v51, %v128_v5  ;;  %vm4164_vm8 = vmor %vm170_vm14, %vm171_vm4 }
  0x9a   :  { %v4032_v16 = vpop.eup %3565  ;;  %v225_v10 = vmul.f32 %v4016_v23, %v3975_v14  ;;  %v149_v58 = vmul.f32 %v3953_v49, %v148_v62  ;;  %v4066_v32 = vmax.f32 %v260_v40, 1e-24  ;;  %v4078_v62 = vmul.f32 %v163_v12, %v3730_v0 }
  0x9b   :  { %3569 = vrsqrt.f32 %v4019_v24  ;;  %v4056_v17 = vpop.eup %3567  ;;  %v215_v33 = vmul.f32 %v4032_v16, %v3977_v15  ;;  %v4087_v40 = vmul.f32 %v143_v53, %v3735_v1  ;;  %v198_v0 = vsub.f32 1.5, %v197_v28 }
  0x9c   :  { %v226_v41 = vmul.f32 %v4016_v23, %v225_v10  ;;  %3571 = vrsqrt.f32 %v4021_v39  ;;  %v205_v8 = vmul.f32 %v4056_v17, %v3981_v26  ;;  %v133_v2 = vsel %vm4073_vm1, %v3956_v51, %v129_v30 }
  0x9d   :  { %3573 = vrsqrt.f32 %v4066_v32  ;;  %v153_v1 = vsel %vm4093_vm2, %v3953_v49, %v149_v58  ;;  %v216_v12 = vmul.f32 %v4032_v16, %v215_v33  ;;  %v188_v21 = vsub.f32 1.5, %v187_v60 }
  0x9e   :  { %v227_v25 = vmul.f32 0.5, %v226_v41  ;;  %v4114_v5 = vmul.f32 %v3968_v61, %v168_v59  ;;  %v206_v49 = vmul.f32 %v4056_v17, %v205_v8  ;;  %v4126_v41 = vmul.f32 %v3973_v13, %v198_v0 }
  0x9f   :  { %v4131_v59 = vmul.f32 %v133_v2, %v3764_v11  ;;  %v4134_v60 = vmul.f32 %v153_v1, %v3756_v7  ;;  %v4151_v7 = vmul.f32 %v3983_v35, %v188_v21  ;;  %vm322_vm6 = vweird.f32 %v4021_v39 }
  0xa0   :  { %v275_v48 = vpop.xlane.xlu2 %274  ;;  %v272_v10 = vpop.xlane.xlu1 %271  ;;  %6289 = vst [vmem:[#allocation13_spill] sm:$0xff] %v4114_v5  ;;  %v207_v1 = vmul.f32 0.5, %v206_v49  ;;  %vm312_vm7 = vweird.f32 %v4066_v32  ;;  %v6294_v43 = vsel %vm4164_vm8, 4294967295, %v6293_v43  ;;  %vm211_vm9 = vweird.f32 %v4056_v17 }
  0xa1   :  { %v4105_v22 = vpop.eup %3569  ;;  %v4108_v52 = vmax.f32 %v275_v48, 1e-24  ;;  %v4110_v28 = vmax.f32 %v272_v10, 1e-24  ;;  %v269_v53 = vpop.xlane.xlu0 %268  ;;  %v228_v48 = vsub.f32 1.5, %v227_v25  ;;  %v4139_v10 = vmul.f32 0.5, %v216_v12 }
  0xa2   :  { %v4117_v51 = vpop.eup %3571  ;;  %v327_v30 = vmul.f32 %v4105_v22, %v4019_v24  ;;  %v4123_v58 = vmax.f32 %v269_v53, 1e-24  ;;  %6292 = vst [vmem:[#allocation14_spill] sm:$0xff] %v4151_v7  ;;  %vm332_vm10 = vweird.f32 %v4019_v24  ;;  %v208_v7 = vsub.f32 1.5, %v207_v1 }
  0xa3   :  { %3575 = vrsqrt.f32 %v4108_v52  ;;  %v317_v33 = vmul.f32 %v4117_v51, %v4021_v39  ;;  %v4136_v8 = vpop.eup %3573  ;;  %6295 = vst [vmem:[#allocation15_spill] sm:$0xff] %v6294_v43  ;;  %v4180_v31 = vmul.f32 %v4016_v23, %v228_v48  ;;  %vm323_vm12 = vweird.f32 %v4117_v51 }
  0xa4   :  { %3577 = vrsqrt.f32 %v4110_v28  ;;  %v307_v2 = vmul.f32 %v4136_v8, %v4066_v32  ;;  %v328_v25 = vmul.f32 %v4105_v22, %v327_v30  ;;  %vm313_vm13 = vweird.f32 %v4136_v8  ;;  %vm324_vm15 = vmor %vm322_vm6, %vm323_vm12 }
  0xa5   :  { %v318_v11 = vmul.f32 %v4117_v51, %v317_v33  ;;  %3579 = vrsqrt.f32 %v4123_v58  ;;  %vm362_vm14 = vweird.f32 %v4108_v52  ;;  %v4215_v5 = vmul.f32 %v4056_v17, %v208_v7  ;;  %vm4228_vm3 = vmor %vm312_vm7, %vm313_vm13 }
  0xa6   :  { %v308_v53 = vmul.f32 %v4136_v8, %v307_v2  ;;  %vm352_vm1 = vweird.f32 %v4110_v28  ;;  %vm333_vm2 = vweird.f32 %v4105_v22  ;;  %vm4261_vm7 = vmor %vm210_vm11, %vm211_vm9  ;;  %vm181_vm11 = vweird.f32 %v3990_v50 }
  0xa7   :  { %v319_v12 = vmul.f32 0.5, %v318_v11  ;;  %v329_v11 = vmul.f32 0.5, %v328_v25  ;;  %vm4279_vm9 = vmor %vm332_vm10, %vm333_vm2  ;;  %vm180_vm2 = vweird.f32 %v3961_v57  ;;  %v6329_v0 = vld [vmem:[#allocation13_spill] sm:$0xff] }
  0xa8   :  { %v284_v21 = vpop.xlane.xlu2 %283  ;;  %v281_v33 = vpop.xlane.xlu1 %280  ;;  %v309_v49 = vmul.f32 0.5, %v308_v53 }
  0xa9   :  { %v4177_v34 = vpop.eup %3575  ;;  %v4184_v2 = vmax.f32 %v284_v21, 1e-24  ;;  %v4186_v19 = vmax.f32 %v281_v33, 1e-24  ;;  %v278_v3 = vpop.xlane.xlu0 %277  ;;  %v320_v27 = vsub.f32 1.5, %v319_v12  ;;  %v330_v61 = vsub.f32 1.5, %v329_v11 }
  0xaa   :  { %v357_v30 = vmul.f32 %v4177_v34, %v4108_v52  ;;  %v4191_v54 = vmax.f32 %v278_v3, 1e-24  ;;  %v4193_v48 = vpop.eup %3577  ;;  %v310_v21 = vsub.f32 1.5, %v309_v49  ;;  %vm363_vm4 = vweird.f32 %v4177_v34 }
  0xab   :  { %3581 = vrsqrt.f32 %v4184_v2  ;;  %v347_v53 = vmul.f32 %v4193_v48, %v4110_v28  ;;  %v4202_v3 = vpop.eup %3579  ;;  %v321_v1 = vmul.f32 %v4117_v51, %v320_v27  ;;  %vm353_vm12 = vweird.f32 %v4193_v48  ;;  %vm364_vm10 = vmor %vm362_vm14, %vm363_vm4 }
  0xac   :  { %v358_v33 = vmul.f32 %v4177_v34, %v357_v30  ;;  %3583 = vrsqrt.f32 %v4186_v19  ;;  %v337_v49 = vmul.f32 %v4202_v3, %v4123_v58  ;;  %v311_v30 = vmul.f32 %v4136_v8, %v310_v21  ;;  %vm4319_vm14 = vmor %vm352_vm1, %vm353_vm12 }
  0xad   :  { %3585 = vrsqrt.f32 %v4191_v54  ;;  %v348_v12 = vmul.f32 %v4193_v48, %v347_v53  ;;  %v325_v27 = vsel %vm324_vm15, %v4117_v51, %v321_v1  ;;  %vm343_vm6 = vweird.f32 %v4202_v3 }
  0xae   :  { %v359_v25 = vmul.f32 0.5, %v358_v33  ;;  %v338_v53 = vmul.f32 %v4202_v3, %v337_v49  ;;  %v4222_v43 = vmul.f32 %v325_v27, %v3831_v37  ;;  %v315_v37 = vsel %vm4228_vm3, %v4136_v8, %v311_v30 }
  0xaf   :  { %v349_v33 = vmul.f32 0.5, %v348_v12  ;;  %v331_v8 = vmul.f32 %v4105_v22, %v330_v61  ;;  %vm231_vm15 = vweird.f32 %v4016_v23  ;;  %vm342_vm3 = vweird.f32 %v4123_v58 }
  0xb0   :  { %v293_v39 = vpop.xlane.xlu2 %292  ;;  %v290_v6 = vpop.xlane.xlu1 %289  ;;  %v360_v12 = vsub.f32 1.5, %v359_v25  ;;  %v339_v27 = vmul.f32 0.5, %v338_v53  ;;  %3477 = vmatpush.xpose.msk.msra.mxu0 %vm65_vm0, %v4222_v43  ;;  %vm4304_vm13 = vmor %vm342_vm3, %vm343_vm6  ;;  %vm382_vm4 = vweird.f32 %v4186_v19 }
  0xb1   :  { %v4233_v51 = vpop.eup %3581  ;;  %v4235_v11 = vmax.f32 %v293_v39, 1e-24  ;;  %v287_v21 = vpop.xlane.xlu0 %286  ;;  %v4237_v1 = vmax.f32 %v290_v6, 1e-24  ;;  %v350_v32 = vsub.f32 1.5, %v349_v33  ;;  %v4269_v33 = vmul.f32 %v315_v37, %v3836_v38 }
  0xb2   :  { %v4242_v49 = vpop.eup %3583  ;;  %v387_v15 = vmul.f32 %v4233_v51, %v4184_v2  ;;  %v4248_v39 = vmax.f32 %v287_v21, 1e-24  ;;  %v340_v53 = vsub.f32 1.5, %v339_v27  ;;  %v361_v26 = vmul.f32 %v4177_v34, %v360_v12 }
  0xb3   :  { %v4250_v4 = vpop.eup %3585  ;;  %v377_v6 = vmul.f32 %v4242_v49, %v4186_v19  ;;  %3587 = vrsqrt.f32 %v4235_v11  ;;  %v351_v24 = vmul.f32 %v4193_v48, %v350_v32  ;;  %vm383_vm1 = vweird.f32 %v4242_v49 }
  0xb4   :  { %v367_v30 = vmul.f32 %v4250_v4, %v4191_v54  ;;  %3589 = vrsqrt.f32 %v4248_v39  ;;  %v388_v38 = vmul.f32 %v4233_v51, %v387_v15  ;;  %3478 = vmatpush.xpose.msk.msra.mxu0 %vm65_vm0, %v4269_v33  ;;  %v213_v15 = vsel %vm4261_vm7, %v4056_v17, %v4215_v5  ;;  %vm384_vm12 = vmor %vm382_vm4, %vm383_vm1 }
  0xb5   :  { %v378_v61 = vmul.f32 %v4242_v49, %v377_v6  ;;  %3591 = vrsqrt.f32 %v4237_v1  ;;  %v341_v12 = vmul.f32 %v4202_v3, %v340_v53  ;;  %v365_v52 = vsel %vm364_vm10, %v4177_v34, %v361_v26  ;;  %vm4401_vm1 = vmor %vm180_vm2, %vm181_vm11 }
  0xb6   :  { %v368_v21 = vmul.f32 %v4250_v4, %v367_v30  ;;  %v4310_v32 = vmul.f32 %v365_v52, %v3850_v45  ;;  %v335_v6 = vsel %vm4279_vm9, %v4105_v22, %v331_v8  ;;  %v6306_v5 = vsub.f32 1.5, %v4097_v42 }
  0xb7   :  { %v379_v37 = vmul.f32 0.5, %v378_v61  ;;  %3479 = vmatmul.msk.f32.vlgmr.msra.gmra.mxu0 %vm65_vm0, %v4084_v9  ;;  %v345_v45 = vsel %vm4304_vm13, %v4202_v3, %v341_v12  ;;  %v355_v22 = vsel %vm4319_vm14, %v4193_v48, %v351_v24  ;;  %v389_v8 = vmul.f32 0.5, %v388_v38 }
  0xb8   :  { %v369_v27 = vmul.f32 0.5, %v368_v21  ;;  %v4326_v34 = vmul.f32 %v3990_v50, %v6306_v5  ;;  %v4344_v53 = vmul.f32 %v345_v45, %v3860_v47  ;;  %3485 = vmatpush.xpose.msk.msra.mxu2 %vm65_vm0, %v4310_v32  ;;  %vm373_vm6 = vweird.f32 %v4250_v4 }
  0xb9   :  { %v4328_v25 = vpop.eup %3587  ;;  %v380_v28 = vsub.f32 1.5, %v379_v37  ;;  %vm191_vm7 = vweird.f32 %v3983_v35  ;;  %v4362_v38 = vmul.f32 %v355_v22, %v3855_v46  ;;  %vm372_vm9 = vweird.f32 %v4191_v54 }
  0xba   :  { %v4339_v42 = vpop.eup %3589  ;;  %v370_v30 = vsub.f32 1.5, %v369_v27  ;;  %v417_v61 = vmul.f32 %v4328_v25, %v4235_v11  ;;  %3481 = vmatpush.xpose.msk.msra.mxu1 %vm65_vm0, %v4344_v53  ;;  %v4370_v24 = vmul.f32 %v335_v6, %v3826_v36  ;;  %vm402_vm13 = vweird.f32 %v4248_v39  ;;  %vm4382_vm3 = vmor %vm372_vm9, %vm373_vm6 }
  0xbb   :  { %v4348_v3 = vpop.eup %3591  ;;  %v397_v48 = vmul.f32 %v4339_v42, %v4248_v39  ;;  %v381_v26 = vmul.f32 %v4242_v49, %v380_v28  ;;  %v390_v36 = vsub.f32 1.5, %v389_v8  ;;  %vm403_vm10 = vweird.f32 %v4339_v42 }
  0xbc   :  { %v418_v7 = vmul.f32 %v4328_v25, %v417_v61  ;;  %v407_v47 = vmul.f32 %v4348_v3, %v4237_v1  ;;  %v371_v19 = vmul.f32 %v4250_v4, %v370_v30  ;;  %3486 = vmatpush.xpose.msk.msra.mxu2 %vm65_vm0, %v4362_v38  ;;  %vm422_vm14 = vweird.f32 %v4235_v11 }
  0xbd   :  { %v398_v21 = vmul.f32 %v4339_v42, %v397_v48  ;;  %v385_v37 = vsel %vm384_vm12, %v4242_v49, %v381_v26  ;;  %vm423_vm4 = vweird.f32 %v4328_v25  ;;  %vm6311_vm6 = vweird.f32 %v3975_v14  ;;  %v6331_v48 = vld [vmem:[#allocation14_spill] sm:$0xff] }
  0xbe   :  { %v419_v12 = vmul.f32 0.5, %v418_v7  ;;  %v408_v46 = vmul.f32 %v4348_v3, %v407_v47  ;;  %v4378_v58 = vmul.f32 %v385_v37, %v3879_v55  ;;  %v375_v49 = vsel %vm4382_vm3, %v4250_v4, %v371_v19  ;;  %3482 = vmatpush.xpose.msk.msra.mxu1 %vm65_vm0, %v4370_v24  ;;  %vm4410_vm12 = vmor %vm6311_vm6, %vm231_vm15  ;;  %v6332_v7 = vld [vmem:[#allocation6_spill] sm:$0xff]  ;;  %v6334_v19 = vld [vmem:[#allocation9_spill] sm:$0xff] }
  0xbf   :  { %v399_v52 = vmul.f32 0.5, %v398_v21  ;;  %v4415_v17 = vmul.f32 %v213_v15, %v3812_v29  ;;  %vm412_vm9 = vweird.f32 %v4237_v1  ;;  %3480 = vmatmul.msk.f32.gmra.mxu0 %vm65_vm0, %v4131_v59  ;;  %3487 = vmatmul.msk.f32.vlgmr.msra.gmra.mxu2 %vm65_vm0, %v4078_v62  ;;  %vm413_vm11 = vweird.f32 %v4348_v3  ;;  %vm4434_vm15 = vmor %vm402_vm13, %vm403_vm10  ;;  %v6335_v37 = vld [vmem:[#allocation5_spill] sm:$0xff] }
  0xc0   :  { %3501 = vmatpush.xpose.msk.msrb.mxu2 %vm65_vm0, %v4131_v59  ;;  %v420_v27 = vsub.f32 1.5, %v419_v12  ;;  %v409_v55 = vmul.f32 0.5, %v408_v46  ;;  %3489 = vmatpush.xpose.msk.msra.mxu3 %vm65_vm0, %v4378_v58  ;;  %v4424_v14 = vmul.f32 %v375_v49, %v3884_v56  ;;  %v183_v29 = vsel %vm4401_vm1, %v3990_v50, %v4326_v34  ;;  %vm424_vm13 = vmor %vm422_vm14, %vm423_vm4  ;;  %v6336_v46 = vld [vmem:[#allocation7_spill] sm:$0xff] }
  0xc1   :  { %v400_v5 = vsub.f32 1.5, %v399_v52  ;;  %vm392_vm2 = vweird.f32 %v4184_v2  ;;  %3483 = vmatmul.msk.f32.vlgmr.msra.gmra.mxu1 %vm65_vm0, %v4087_v40  ;;  %v391_v50 = vmul.f32 %v4233_v51, %v390_v36  ;;  %vm393_vm3 = vweird.f32 %v4233_v51  ;;  %vm4465_vm14 = vmor %vm412_vm9, %vm413_vm11 }
  0xc2   :  { %v410_v57 = vsub.f32 1.5, %v409_v55  ;;  %v421_v15 = vmul.f32 %v4328_v25, %v420_v27  ;;  %v6316_v39 = vsub.f32 1.5, %v4139_v10  ;;  %vm221_vm10 = vweird.f32 %v4032_v16  ;;  %vm4492_vm4 = vmor %vm392_vm2, %vm393_vm3 }
  0xc3   :  { %v401_v56 = vmul.f32 %v4339_v42, %v400_v5  ;;  %v233_v45 = vsel %vm4410_vm12, %v4016_v23, %v4180_v31  ;;  %vm190_vm1 = vweird.f32 %v3951_v44  ;;  %v6319_v28 = vsel %vm4146_vm5, %v3973_v13, %v4126_v41  ;;  %v6320_v31 = vld [vmem:[#allocation10_spill] sm:$0xff]  ;;  %v6325_v44 = vld [vmem:[#allocation12_spill] sm:$0xff]  ;;  %v6328_v41 = vld [vmem:[#allocation11_spill] sm:$0xff] }
  0xc4   :  { %3502 = vmatpush.xpose.msk.msrb.mxu2 %vm65_vm0, %v4084_v9  ;;  %v219_v34 = vmul.f32 %v4032_v16, %v6316_v39  ;;  %3490 = vmatpush.xpose.msk.msra.mxu3 %vm65_vm0, %v4424_v14  ;;  %v425_v9 = vsel %vm424_vm13, %v4328_v25, %v421_v15  ;;  %v411_v11 = vmul.f32 %v4348_v3, %v410_v57  ;;  %vm4498_vm6 = vmor %vm190_vm1, %vm191_vm7  ;;  %vm220_vm12 = vweird.f32 %v6325_v44  ;;  %v6326_v13 = vld [vmem:[#allocation4_spill] sm:$0xff] }
  0xc5   :  { %v240_v25 = vmul.f32 %v183_v29, %v3788_v20  ;;  %v405_v22 = vsel %vm4434_vm15, %v4339_v42, %v401_v56  ;;  %v437_v1 = vmul.f32 %v425_v9, %v3898_v63  ;;  %v242_v23 = vmul.f32 %v6319_v28, %v3778_v18  ;;  %vm222_vm5 = vmor %vm220_vm12, %vm221_vm10 }
  0xc6   :  { %v435_v8 = vmul.f32 %v405_v22, %v6320_v31  ;;  %v6330_v42 = vsel %vm4164_vm8, %v6328_v41, %v6329_v0  ;;  %v395_v2 = vsel %vm4492_vm4, %v4233_v51, %v391_v50  ;;  %v415_v61 = vsel %vm4465_vm14, %v4348_v3, %v411_v11  ;;  %v6333_v3 = vld [vmem:[#allocation8_spill] sm:$0xff] }
  0xc7   :  { %v239_v30 = vmul.f32 %v6330_v42, %v6326_v13  ;;  %3491 = vmatmul.msk.f32.vlgmr.msra.gmra.mxu3 %vm65_vm0, %v240_v25  ;;  %3497 = vmatpush.xpose.msk.msrb.mxu1 %vm65_vm0, %v437_v1  ;;  %v193_v26 = vsel %vm4498_vm6, %v3983_v35, %v6331_v48  ;;  %v245_v47 = vmul.f32 %v233_v45, %v6332_v7  ;;  %vm6265_vm8 = vcmask 1041409  }
  0xc8   :  { %3517 = vmatpush.xpose.msk.msra.mxu2 %vm65_vm0, %v4415_v17  ;;  %3505 = vmatpush.xpose.msk.msrb.mxu3 %vm65_vm0, %v4134_v60  ;;  %v223_v51 = vsel %vm222_vm5, %v4032_v16, %v219_v34  ;;  %v434_v35 = vmul.f32 %v395_v2, %v6333_v3  ;;  %v436_v21 = vmul.f32 %v415_v61, %v6334_v19  ;;  %v3671_v16 = vmov 0  }
  0xc9   :  { %3493 = vmatpush.xpose.msk.msrb.mxu0 %vm65_vm0, %v435_v8  ;;  %3488 = vmatmul.msk.f32.gmra.mxu2 %vm65_vm0, %v239_v30  ;;  %v241_v12 = vmul.f32 %v193_v26, %v6335_v37  ;;  %v244_v54 = vmul.f32 %v223_v51, %v6336_v46  ;;  %vm6264_vm7 = vcmask 1042434   ;;  %vm6263_vm9 = vcmask 1043459  }
  0xca   :  { %3484 = vmatmul.msk.f32.gmra.mxu1 %vm65_vm0, %v4134_v60  ;;  %3542 = vset.pattern.permute.xlu2 %v3671_v16  ;;  %v1756_v60 = vld [vmem:[%s6241_s5] sm:$0xff]  ;;  %vm6262_vm11 = vcmask 1044484   ;;  %vm6261_vm15 = vcmask 1045509   ;;  %vm6260_vm2 = vcmask 1046534   ;;  %vm6259_vm13 = vcmask 1047559   ;;  %s3672_s5 = smov 80  }
  0xcb   :  { %3498 = vmatpush.xpose.msk.msrb.mxu1 %vm65_vm0, %v436_v21  ;;  %3544 = vset.pattern.permute.xlu1 %v3671_v16  ;;  %vm6257_vm3 = vcmask 125952   ;;  %vm922_vm10 = vcmask 261248   ;;  %vm976_vm14 = vcmask 392448   ;;  %vm1030_vm1 = vcmask 523648  }
  0xcc   :  { %3518 = vmatpush.xpose.msk.msra.mxu2 %vm65_vm0, %v242_v23  ;;  %3506 = vmatpush.xpose.msk.msrb.mxu3 %vm65_vm0, %v4087_v40  ;;  %v1748_v40 = vld [vmem:[%s6240_s4] sm:$0xff]  ;;  %vm1084_vm4 = vcmask 654848   ;;  %vm1138_vm6 = vcmask 786048   ;;  %vm1192_vm12 = vcmask 917248   ;;  %vm1246_vm5 = vcmask 1048448  }
  0xcd   :  { %3494 = vmatpush.xpose.msk.msrb.mxu0 %vm65_vm0, %v434_v35  ;;  %3543 = vset.pattern.permute.xlu0 %v3671_v16 }
  0xcf   :  { %3513 = vmatpush.xpose.msk.msra.mxu1 %vm65_vm0, %v241_v12  ;;  %3492 = vmatmul.msk.f32.gmra.mxu3 %vm65_vm0, %v241_v12 }
  0xd0   :  { %3521 = vmatpush.xpose.msk.msra.mxu3 %vm65_vm0, %v245_v47  ;;  %3495 = vmatmul.msk.f32.vlgmr.msrb.gmra.mxu0 %vm65_vm0, %v242_v23 }
  0xd1   :  { %3509 = vmatpush.xpose.msk.msra.mxu0 %vm65_vm0, %v239_v30  ;;  %3503 = vmatmul.msk.f32.vlgmr.msrb.gmra.mxu2 %vm65_vm0, %v4269_v33  ;;  %v1768_v33 = vld [vmem:[%s6242_s7] sm:$0xff] }
  0xd2   :  { %3499 = vmatmul.msk.f32.vlgmr.msrb.gmra.mxu1 %vm65_vm0, %v244_v54 }
  0xd3   :  { %3514 = vmatpush.xpose.msk.msra.mxu1 %vm65_vm0, %v240_v25 }
  0xd4   :  { %3522 = vmatpush.xpose.msk.msra.mxu3 %vm65_vm0, %v244_v54 }
  0xd5   :  { %3510 = vmatpush.xpose.msk.msra.mxu0 %vm65_vm0, %v4078_v62  ;;  %v1667_v62 = vld [vmem:[%s6239_s3] sm:$0xff] }
  0xd6   :  { %1670 = vperm.xlu2 %3542, %v1667_v62  }
  0xd7   :  { %3507 = vmatmul.msk.f32.vlgmr.msrb.gmra.mxu3 %vm65_vm0, %v4370_v24 }
  0xd8   :  { %3496 = vmatmul.msk.f32.gmra.mxu0 %vm65_vm0, %v4415_v17 }
  0xd9   :  { %3504 = vmatmul.msk.f32.gmra.mxu2 %vm65_vm0, %v4222_v43 }
  0xda   :  { %3500 = vmatmul.msk.f32.gmra.mxu1 %vm65_vm0, %v245_v47 }
  0xde   :  { %1751 = vperm.xlu2 %3542, %v1748_v40  }
  0xdf   :  { %3508 = vmatmul.msk.f32.gmra.mxu3 %vm65_vm0, %v4344_v53 }
  0xe0   :  { %3511 = vmatmul.msk.f32.vlgmr.msra.gmra.mxu0 %vm65_vm0, %v4362_v38  ;;  %v1769_v38 = vld [vmem:[%s6242_s7 + $0x8] sm:$0xf]  ;;  %s3673_s7 = smov 32  }
  0xe1   :  { %3519 = vmatmul.msk.f32.vlgmr.msra.gmra.mxu2 %vm65_vm0, %v434_v35 }
  0xe2   :  { %3515 = vmatmul.msk.f32.vlgmr.msra.gmra.mxu1 %vm65_vm0, %v4424_v14 }
  0xe6   :  { %1759 = vperm.xlu2 %3542, %v1756_v60  }
  0xe7   :  { %3523 = vmatmul.msk.f32.vlgmr.msra.gmra.mxu3 %vm65_vm0, %v436_v21 }
  0xe8   :  { %3512 = vmatmul.msk.f32.gmra.mxu0 %vm65_vm0, %v4310_v32 }
  0xe9   :  { %3520 = vmatmul.msk.f32.gmra.mxu2 %vm65_vm0, %v435_v8 }
  0xea   :  { %3516 = vmatmul.msk.f32.gmra.mxu1 %vm65_vm0, %v4378_v58 }
  0xee   :  { %1772 = vperm.xlu2 %3542, %v1768_v33  }
  0xef   :  { %3524 = vmatmul.msk.f32.gmra.mxu3 %vm65_vm0, %v437_v1  ;;  %vm6258_vm0 = vcmask 130048  }
  0xf6   :  { %1777 = vperm.xlu2 %3542, %v1769_v38  }
 0x134   :  { %v467_v43 = vpop.f32.mrf.mxu0 }
 0x135   :  { %787 = vst.msk [vmem:[#allocation2] sm:$0xff] %vm6258_vm0, %v467_v43 }
 0x13c   :  { %v470_v32 = vpop.f32.mrf.mxu0  ;;  %v1088_v18 = vld [vmem:[#allocation2 + $0x5] sm:$0x1]  ;;  %v926_v41 = vld [vmem:[#allocation2 + $0x2] sm:$0x1]  ;;  %v872_v35 = vld [vmem:[#allocation2 + $0x1] sm:$0x1] }
 0x13d   :  { %788 = vst.msk [vmem:[#allocation2 + $0x8] sm:$0xff] %vm6258_vm0, %v470_v32  ;;  %v980_v19 = vld [vmem:[#allocation2 + $0x3] sm:$0x1]  ;;  %v1034_v60 = vld [vmem:[#allocation2 + $0x4] sm:$0x1] }
 0x13e   :  { %v502_v53 = vpop.f32.mrf.mxu1  ;;  %v1142_v33 = vld [vmem:[#allocation2 + $0x6] sm:$0x1] }
 0x13f   :  { %789 = vst.msk [vmem:[#allocation2 + $0x10] sm:$0xff] %vm6258_vm0, %v502_v53 }
 0x142   :  { %v537_v24 = vpop.f32.mrf.mxu2 }
 0x143   :  { %791 = vst.msk [vmem:[#allocation2 + $0x20] sm:$0xff] %vm6258_vm0, %v537_v24 }
 0x146   :  { %v1089_v52 = vld [vmem:[#allocation2 + $0x15] sm:$0x1]  ;;  %v927_v49 = vld [vmem:[#allocation2 + $0x12] sm:$0x1]  ;;  %v4592_v27 = vld [vmem:[#allocation2 + $0x11] sm:$0x1] }
 0x147   :  { %v505_v58 = vpop.f32.mrf.mxu1  ;;  %v4596_v17 = vld [vmem:[#allocation2 + $0x13] sm:$0x1]  ;;  %v4598_v5 = vld [vmem:[#allocation2 + $0x14] sm:$0x1]  ;;  %v1112_v29 = vrot.slane %v1089_v52, 7  ;;  %v950_v56 = vrot.slane %v927_v49, 7 }
 0x148   :  { %790 = vst.msk [vmem:[#allocation2 + $0x18] sm:$0xff] %vm6258_vm0, %v505_v58  ;;  %v896_v50 = vrot.slane %v4592_v27, 7  ;;  %v4611_v39 = vld [vmem:[#allocation2 + $0x16] sm:$0x1]  ;;  %v1004_v25 = vrot.slane %v4596_v17, 7  ;;  %v1058_v28 = vrot.slane %v4598_v5, 7 }
 0x149   :  { %v4625_v31 = vld [vmem:[#allocation2 + $0x17] sm:$0x1]  ;;  %v1166_v44 = vrot.slane %v4611_v39, 7  ;;  %v1113_v37 = vsel %vm6265_vm8, %v1112_v29, %v1088_v18  ;;  %v951_v46 = vsel %vm6265_vm8, %v950_v56, %v926_v41 }
 0x14a   :  { %v572_v36 = vpop.f32.mrf.mxu3  ;;  %v4594_v4 = vld [vmem:[#allocation2 + $0x25] sm:$0x1]  ;;  %v4601_v57 = vld [vmem:[#allocation2 + $0x22] sm:$0x1]  ;;  %v4603_v14 = vld [vmem:[#allocation2 + $0x21] sm:$0x1]  ;;  %v897_v49 = vsel %vm6265_vm8, %v896_v50, %v872_v35  ;;  %v1005_v27 = vsel %vm6265_vm8, %v1004_v25, %v980_v19 }
 0x14b   :  { %793 = vst.msk [vmem:[#allocation2 + $0x30] sm:$0xff] %vm6258_vm0, %v572_v36  ;;  %v4606_v59 = vld [vmem:[#allocation2 + $0x23] sm:$0x1]  ;;  %v4608_v15 = vld [vmem:[#allocation2 + $0x24] sm:$0x1]  ;;  %v1114_v11 = vrot.slane %v4594_v4, 6 }
 0x14c   :  { %v540_v55 = vpop.f32.mrf.mxu2  ;;  %v4613_v34 = vld [vmem:[#allocation2 + $0x26] sm:$0x1]  ;;  %v952_v10 = vrot.slane %v4601_v57, 6  ;;  %v898_v45 = vrot.slane %v4603_v14, 6  ;;  %v1006_v1 = vrot.slane %v4606_v59, 6  ;;  %v1060_v23 = vrot.slane %v4608_v15, 6 }
 0x14d   :  { %v607_v6 = vpop.f32.mrf.mxu0  ;;  %792 = vst.msk [vmem:[#allocation2 + $0x28] sm:$0xff] %vm6258_vm0, %v540_v55  ;;  %v1168_v13 = vrot.slane %v4613_v34, 6  ;;  %v4635_v30 = vld [vmem:[#allocation2 + $0x27] sm:$0x1]  ;;  %v1220_v47 = vrot.slane %v4625_v31, 7  ;;  %v1115_v24 = vsel %vm6264_vm7, %v1114_v11, %v1113_v37  ;;  %v1059_v11 = vsel %vm6265_vm8, %v1058_v28, %v1034_v60 }
 0x14e   :  { %795 = vst.msk [vmem:[#allocation2 + $0x40] sm:$0xff] %vm6258_vm0, %v607_v6  ;;  %v1222_v32 = vrot.slane %v4635_v30, 6  ;;  %v953_v36 = vsel %vm6264_vm7, %v952_v10, %v951_v46  ;;  %v899_v6 = vsel %vm6264_vm7, %v898_v45, %v897_v49  ;;  %v1298_v57 = vld [vmem:[#allocation2 + $0x9] sm:$0x1]  ;;  %v1167_v10 = vsel %vm6265_vm8, %v1166_v44, %v1142_v33  ;;  %v1196_v45 = vld [vmem:[#allocation2 + $0x7] sm:$0x1] }
 0x14f   :  { %v642_v9 = vpop.f32.mrf.mxu1  ;;  %v4619_v22 = vld [vmem:[#allocation2 + $0x19] sm:$0x1]  ;;  %v1007_v44 = vsel %vm6264_vm7, %v1006_v1, %v1005_v27 }
 0x150   :  { %797 = vst.msk [vmem:[#allocation2 + $0x50] sm:$0xff] %vm6258_vm0, %v642_v9  ;;  %v1322_v42 = vrot.slane %v4619_v22, 7 }
 0x152   :  { %v575_v8 = vpop.f32.mrf.mxu3  ;;  %v4627_v20 = vld [vmem:[#allocation2 + $0x35] sm:$0x1]  ;;  %v4629_v63 = vld [vmem:[#allocation2 + $0x32] sm:$0x1]  ;;  %v875_v0 = vld [vmem:[#allocation2 + $0x31] sm:$0x1] }
 0x153   :  { %794 = vst.msk [vmem:[#allocation2 + $0x38] sm:$0xff] %vm6258_vm0, %v575_v8  ;;  %v1116_v48 = vrot.slane %v4627_v20, 5  ;;  %v4638_v26 = vld [vmem:[#allocation2 + $0x33] sm:$0x1]  ;;  %v4640_v7 = vld [vmem:[#allocation2 + $0x34] sm:$0x1] }
 0x154   :  { %v665_v2 = vpop.f32.mrf.mxu2  ;;  %v954_v3 = vrot.slane %v4629_v63, 5  ;;  %v4647_v21 = vld [vmem:[#allocation2 + $0x29] sm:$0x1]  ;;  %v900_v16 = vrot.slane %v875_v0, 5  ;;  %v1008_v40 = vrot.slane %v4638_v26, 5  ;;  %v1062_v43 = vrot.slane %v4640_v7, 5 }
 0x155   :  { %v610_v61 = vpop.f32.mrf.mxu0  ;;  %800 = vst.msk [vmem:[#allocation2 + $0x60] sm:$0xff] %vm6258_vm0, %v665_v2  ;;  %v4644_v51 = vld [vmem:[#allocation2 + $0x45] sm:$0x1]  ;;  %v4651_v12 = vld [vmem:[#allocation2 + $0x42] sm:$0x1]  ;;  %v1324_v14 = vrot.slane %v4647_v21, 6  ;;  %v1117_v25 = vsel %vm6263_vm9, %v1116_v48, %v1115_v24  ;;  %v1323_v48 = vsel %vm6265_vm8, %v1322_v42, %v1298_v57  ;;  %v4705_v7 = vsel %vm6264_vm7, %v1168_v13, %v1167_v10 }
 0x156   :  { %796 = vst.msk [vmem:[#allocation2 + $0x48] sm:$0xff] %vm6258_vm0, %v610_v61  ;;  %v876_v54 = vld [vmem:[#allocation2 + $0x41] sm:$0x1]  ;;  %v1118_v62 = vrot.slane %v4644_v51, 4  ;;  %v956_v55 = vrot.slane %v4651_v12, 4  ;;  %v955_v8 = vsel %vm6263_vm9, %v954_v3, %v953_v36  ;;  %v901_v20 = vsel %vm6263_vm9, %v900_v16, %v899_v6 }
 0x157   :  { %v645_v53 = vpop.f32.mrf.mxu1  ;;  %v4658_v38 = vld [vmem:[#allocation2 + $0x55] sm:$0x1]  ;;  %v4661_v58 = vld [vmem:[#allocation2 + $0x52] sm:$0x1]  ;;  %v4664_v52 = vld [vmem:[#allocation2 + $0x51] sm:$0x1]  ;;  %v1061_v61 = vsel %vm6264_vm7, %v1060_v23, %v1059_v11  ;;  %v1009_v15 = vsel %vm6263_vm9, %v1008_v40, %v1007_v44  ;;  %v4716_v23 = vsel %vm6265_vm8, %v1220_v47, %v1196_v45  ;;  %v1325_v60 = vsel %vm6264_vm7, %v1324_v14, %v1323_v48 }
 0x158   :  { %798 = vst.msk [vmem:[#allocation2 + $0x58] sm:$0xff] %vm6258_vm0, %v645_v53  ;;  %v902_v4 = vrot.slane %v876_v54, 4  ;;  %v4671_v17 = vld [vmem:[#allocation2 + $0x43] sm:$0x1]  ;;  %v1120_v56 = vrot.slane %v4658_v38, 3  ;;  %v958_v50 = vrot.slane %v4661_v58, 3  ;;  %v1063_v22 = vsel %vm6263_vm9, %v1062_v43, %v1061_v61 }
 0x159   :  { %v4676_v39 = vld [vmem:[#allocation2 + $0x53] sm:$0x1]  ;;  %v4678_v9 = vld [vmem:[#allocation2 + $0x44] sm:$0x1]  ;;  %v904_v63 = vrot.slane %v4664_v52, 3  ;;  %v1010_v1 = vrot.slane %v4671_v17, 4  ;;  %v1119_v34 = vsel %vm6262_vm11, %v1118_v62, %v1117_v25  ;;  %v957_v13 = vsel %vm6262_vm11, %v956_v55, %v955_v8 }
 0x15a   :  { %v688_v29 = vpop.f32.mrf.mxu3  ;;  %v4689_v18 = vld [vmem:[#allocation2 + $0x54] sm:$0x1]  ;;  %v1301_v41 = vld [vmem:[#allocation2 + $0x39] sm:$0x1]  ;;  %v4700_v26 = vld [vmem:[#allocation2 + $0x36] sm:$0x1]  ;;  %v903_v42 = vsel %vm6262_vm11, %v902_v4, %v901_v20  ;;  %v1121_v52 = vsel %vm6261_vm15, %v1120_v56, %v1119_v34  ;;  %v959_v27 = vsel %vm6261_vm15, %v958_v50, %v957_v13 }
 0x15b   :  { %802 = vst.msk [vmem:[#allocation2 + $0x70] sm:$0xff] %vm6258_vm0, %v688_v29  ;;  %v1012_v3 = vrot.slane %v4676_v39, 3  ;;  %v1064_v31 = vrot.slane %v4678_v9, 4  ;;  %v1066_v47 = vrot.slane %v4689_v18, 3  ;;  %v1326_v40 = vrot.slane %v1301_v41, 5 }
 0x15c   :  { %v668_v0 = vpop.f32.mrf.mxu2  ;;  %v1094_v2 = vld [vmem:[#allocation2 + $0x65] sm:$0x1]  ;;  %v932_v28 = vld [vmem:[#allocation2 + $0x62] sm:$0x1]  ;;  %v878_v59 = vld [vmem:[#allocation2 + $0x61] sm:$0x1]  ;;  %v905_v6 = vsel %vm6261_vm15, %v904_v63, %v903_v42  ;;  %v1011_v4 = vsel %vm6262_vm11, %v1010_v1, %v1009_v15 }
 0x15d   :  { %v711_v5 = vpop.f32.mrf.mxu0  ;;  %801 = vst.msk [vmem:[#allocation2 + $0x68] sm:$0xff] %vm6258_vm0, %v668_v0  ;;  %v4708_v51 = vld [vmem:[#allocation2 + $0x63] sm:$0x1]  ;;  %v4723_v35 = vld [vmem:[#allocation2 + $0x64] sm:$0x1]  ;;  %v1122_v21 = vrot.slane %v1094_v2, 2  ;;  %v1327_v39 = vsel %vm6263_vm9, %v1326_v40, %v1325_v60  ;;  %v1065_v25 = vsel %vm6262_vm11, %v1064_v31, %v1063_v22 }
 0x15e   :  { %804 = vst.msk [vmem:[#allocation2 + $0x80] sm:$0xff] %vm6258_vm0, %v711_v5  ;;  %v1302_v19 = vld [vmem:[#allocation2 + $0x49] sm:$0x1]  ;;  %v960_v37 = vrot.slane %v932_v28, 2  ;;  %v906_v46 = vrot.slane %v878_v59, 2  ;;  %v1014_v54 = vrot.slane %v4708_v51, 2  ;;  %v1013_v59 = vsel %vm6261_vm15, %v1012_v3, %v1011_v4 }
 0x15f   :  { %v734_v12 = vpop.f32.mrf.mxu1  ;;  %v1068_v16 = vrot.slane %v4723_v35, 2  ;;  %v4729_v62 = vld [vmem:[#allocation2 + $0x59] sm:$0x1]  ;;  %v1328_v43 = vrot.slane %v1302_v19, 4  ;;  %v4734_v53 = vld [vmem:[#allocation2 + $0x46] sm:$0x1]  ;;  %v1123_v56 = vsel %vm6260_vm2, %v1122_v21, %v1121_v52  ;;  %v1067_v19 = vsel %vm6261_vm15, %v1066_v47, %v1065_v25 }
 0x160   :  { %806 = vst.msk [vmem:[#allocation2 + $0x90] sm:$0xff] %vm6258_vm0, %v734_v12  ;;  %v1330_v33 = vrot.slane %v4729_v62, 3  ;;  %v4736_v38 = vld [vmem:[#allocation2 + $0x56] sm:$0x1]  ;;  %v1170_v24 = vrot.slane %v4700_v26, 5  ;;  %v961_v10 = vsel %vm6260_vm2, %v960_v37, %v959_v27  ;;  %v907_v50 = vsel %vm6260_vm2, %v906_v46, %v905_v6 }
 0x161   :  { %v1199_v20 = vld [vmem:[#allocation2 + $0x37] sm:$0x1]  ;;  %v4755_v2 = vld [vmem:[#allocation2 + $0x66] sm:$0x1]  ;;  %v1329_v28 = vsel %vm6262_vm11, %v1328_v43, %v1327_v39  ;;  %v1172_v48 = vrot.slane %v4734_v53, 4  ;;  %v1174_v26 = vrot.slane %v4736_v38, 3  ;;  %v1015_v42 = vsel %vm6260_vm2, %v1014_v54, %v1013_v59 }
 0x162   :  { %v691_v58 = vpop.f32.mrf.mxu3  ;;  %v1095_v36 = vld [vmem:[#allocation2 + $0x75] sm:$0x1]  ;;  %v933_v49 = vld [vmem:[#allocation2 + $0x72] sm:$0x1]  ;;  %v879_v55 = vld [vmem:[#allocation2 + $0x71] sm:$0x1]  ;;  %v1171_v15 = vsel %vm6263_vm9, %v1170_v24, %v4705_v7  ;;  %v1223_v7 = vsel %vm6264_vm7, %v1222_v32, %v4716_v23  ;;  %v1069_v18 = vsel %vm6260_vm2, %v1068_v16, %v1067_v19  ;;  %v1331_v47 = vsel %vm6261_vm15, %v1330_v33, %v1329_v28 }
 0x163   :  { %803 = vst.msk [vmem:[#allocation2 + $0x78] sm:$0xff] %vm6258_vm0, %v691_v58  ;;  %v1124_v17 = vrot.slane %v1095_v36, 1  ;;  %v962_v57 = vrot.slane %v933_v49, 1  ;;  %v908_v14 = vrot.slane %v879_v55, 1  ;;  %v987_v29 = vld [vmem:[#allocation2 + $0x73] sm:$0x1]  ;;  %v1173_v32 = vsel %vm6262_vm11, %v1172_v48, %v1171_v15 }
 0x164   :  { %v757_v9 = vpop.f32.mrf.mxu2  ;;  %v4748_v45 = vld [vmem:[#allocation2 + $0x74] sm:$0x1]  ;;  %v1304_v8 = vld [vmem:[#allocation2 + $0x69] sm:$0x1]  ;;  %v1016_v5 = vrot.slane %v987_v29, 1  ;;  %v1224_v34 = vrot.slane %v1199_v20, 5 }
 0x165   :  { %v714_v11 = vpop.f32.mrf.mxu0  ;;  %808 = vst.msk [vmem:[#allocation2 + $0xa0] sm:$0xff] %vm6258_vm0, %v757_v9  ;;  %v1125_v63 = vsel %vm6259_vm13, %v1124_v17, %v1123_v56  ;;  %v963_v41 = vsel %vm6259_vm13, %v962_v57, %v961_v10  ;;  %v909_v0 = vsel %vm6259_vm13, %v908_v14, %v907_v50  ;;  %v1332_v44 = vrot.slane %v1304_v8, 2  ;;  %v4761_v61 = vld [vmem:[#allocation2 + $0x76] sm:$0x1]  ;;  %v1200_v1 = vld [vmem:[#allocation2 + $0x47] sm:$0x1] }
 0x166   :  { %805 = vst.msk [vmem:[#allocation2 + $0x88] sm:$0xff] %vm6258_vm0, %v714_v11  ;;  %1132 = vrot.lane.b32.xlu1 %v1125_v63, %s3672_s5  ;;  %970 = vrot.lane.b32.xlu2 %v963_v41, %s3673_s7  ;;  %v1070_v51 = vrot.slane %v4748_v45, 1  ;;  %v4770_v22 = vld [vmem:[#allocation2 + $0x57] sm:$0x1]  ;;  %v4776_v21 = vld [vmem:[#allocation2 + $0x67] sm:$0x1]  ;;  %v1017_v31 = vsel %vm6259_vm13, %v1016_v5, %v1015_v42  ;;  %v1225_v16 = vsel %vm6263_vm9, %v1224_v34, %v1223_v7 }
 0x167   :  { %916 = vrot.lane.b32.xlu0 %v909_v0, %s3674_s14  ;;  %v737_v13 = vpop.f32.mrf.mxu1  ;;  %v4778_v37 = vld [vmem:[#allocation2 + $0x77] sm:$0x1]  ;;  %v1455_v3 = vld [vmem:[#allocation2 + $0x1c] sm:$0x1]  ;;  %v1176_v12 = vrot.slane %v4755_v2, 2  ;;  %v1333_v30 = vsel %vm6260_vm2, %v1332_v44, %v1331_v47  ;;  %v1178_v23 = vrot.slane %v4761_v61, 1  ;;  %v1175_v17 = vsel %vm6261_vm15, %v1174_v26, %v1173_v32 }
 0x168   :  { %807 = vst.msk [vmem:[#allocation2 + $0x98] sm:$0xff] %vm6258_vm0, %v737_v13  ;;  %v1456_v46 = vld [vmem:[#allocation2 + $0x2c] sm:$0x1]  ;;  %v1457_v54 = vld [vmem:[#allocation2 + $0x3c] sm:$0x1]  ;;  %v1226_v60 = vrot.slane %v1200_v1, 4  ;;  %v1071_v6 = vsel %vm6259_vm13, %v1070_v51, %v1069_v18 }
 0x169   :  { %v1458_v43 = vld [vmem:[#allocation2 + $0x4c] sm:$0x1]  ;;  %v1228_v33 = vrot.slane %v4770_v22, 3  ;;  %v1230_v53 = vrot.slane %v4776_v21, 2  ;;  %v1459_v24 = vld [vmem:[#allocation2 + $0x5c] sm:$0x1]  ;;  %v1177_v39 = vsel %vm6260_vm2, %v1176_v12, %v1175_v17 }
 0x16a   :  { %v780_v62 = vpop.f32.mrf.mxu3  ;;  %v1305_v40 = vld [vmem:[#allocation2 + $0x79] sm:$0x1]  ;;  %v1454_v38 = vld [vmem:[#allocation2 + $0xc] sm:$0x1]  ;;  %v1232_v36 = vrot.slane %v4778_v37, 1  ;;  %v1478_v49 = vrot.slane %v1455_v3, 7  ;;  %v1227_v9 = vsel %vm6262_vm11, %v1226_v60, %v1225_v16  ;;  %v1179_v45 = vsel %vm6259_vm13, %v1178_v23, %v1177_v39 }
 0x16b   :  { %810 = vst.msk [vmem:[#allocation2 + $0xb0] sm:$0xff] %vm6258_vm0, %v780_v62  ;;  %v1334_v35 = vrot.slane %v1305_v40, 1  ;;  %v1460_v52 = vld [vmem:[#allocation2 + $0x6c] sm:$0x1]  ;;  %v1480_v27 = vrot.slane %v1456_v46, 6  ;;  %v1482_v55 = vrot.slane %v1457_v54, 5  ;;  %v1229_v48 = vsel %vm6261_vm15, %v1228_v33, %v1227_v9 }
 0x16c   :  { %v760_v58 = vpop.f32.mrf.mxu2  ;;  %v1484_v57 = vrot.slane %v1458_v43, 4  ;;  %v1403_v14 = vld [vmem:[#allocation2 + $0x1b] sm:$0x1]  ;;  %v1404_v29 = vld [vmem:[#allocation2 + $0x2b] sm:$0x1]  ;;  %v1479_v56 = vsel %vm6265_vm8, %v1478_v49, %v1454_v38  ;;  %v1486_v8 = vrot.slane %v1459_v24, 3  ;;  %v1231_v13 = vsel %vm6260_vm2, %v1230_v53, %v1229_v48 }
 0x16d   :  { %809 = vst.msk [vmem:[#allocation2 + $0xa8] sm:$0xff] %vm6258_vm0, %v760_v58  ;;  %v1335_v4 = vsel %vm6259_vm13, %v1334_v35, %v1333_v30  ;;  %v1461_v11 = vld [vmem:[#allocation2 + $0x7c] sm:$0x1]  ;;  %v1405_v10 = vld [vmem:[#allocation2 + $0x3b] sm:$0x1]  ;;  %v1481_v25 = vsel %vm6264_vm7, %v1480_v27, %v1479_v56  ;;  %v1488_v20 = vrot.slane %v1460_v52, 2  ;;  %v1233_v38 = vsel %vm6259_vm13, %v1232_v36, %v1231_v13 }
 0x16e   :  { %1024 = vrot.lane.b32.xlu2 %v1017_v31, %s3675_s15  ;;  %1342 = vrot.lane.b32.xlu1 %v1335_v4, %s3674_s14  ;;  %v1406_v50 = vld [vmem:[#allocation2 + $0x4b] sm:$0x1]  ;;  %v1407_v41 = vld [vmem:[#allocation2 + $0x5b] sm:$0x1]  ;;  %v1483_v5 = vsel %vm6263_vm9, %v1482_v55, %v1481_v25  ;;  %v1426_v2 = vrot.slane %v1403_v14, 7  ;;  %v1428_v28 = vrot.slane %v1404_v29, 6 }
 0x16f   :  { %1078 = vrot.lane.b32.xlu0 %v1071_v6, %s3676_s16  ;;  %v1402_v63 = vld [vmem:[#allocation2 + $0xb] sm:$0x1]  ;;  %v1430_v44 = vrot.slane %v1405_v10, 5  ;;  %v1351_v61 = vld [vmem:[#allocation2 + $0x1a] sm:$0x1]  ;;  %v1485_v26 = vsel %vm6262_vm11, %v1484_v57, %v1483_v5  ;;  %v1490_v59 = vrot.slane %v1461_v11, 1 }
 0x170   :  { %v1408_v0 = vld [vmem:[#allocation2 + $0x6b] sm:$0x1]  ;;  %v1409_v51 = vld [vmem:[#allocation2 + $0x7b] sm:$0x1]  ;;  %v1432_v15 = vrot.slane %v1406_v50, 4  ;;  %v1427_v42 = vsel %vm6265_vm8, %v1426_v2, %v1402_v63  ;;  %v1434_v19 = vrot.slane %v1407_v41, 3  ;;  %v1487_v31 = vsel %vm6261_vm15, %v1486_v8, %v1485_v26 }
 0x171   :  { %v1350_v1 = vld [vmem:[#allocation2 + $0xa] sm:$0x1]  ;;  %v1353_v21 = vld [vmem:[#allocation2 + $0x3a] sm:$0x1]  ;;  %v1374_v3 = vrot.slane %v1351_v61, 7  ;;  %v1429_v18 = vsel %vm6264_vm7, %v1428_v28, %v1427_v42  ;;  %v1436_v47 = vrot.slane %v1408_v0, 2  ;;  %v1489_v54 = vsel %vm6260_vm2, %v1488_v20, %v1487_v31 }
 0x172   :  { %v1352_v22 = vld [vmem:[#allocation2 + $0x2a] sm:$0x1]  ;;  %v783_v34 = vpop.f32.mrf.mxu3  ;;  %v1355_v12 = vld [vmem:[#allocation2 + $0x5a] sm:$0x1]  ;;  %v1431_v62 = vsel %vm6263_vm9, %v1430_v44, %v1429_v18  ;;  %v1378_v23 = vrot.slane %v1353_v21, 5  ;;  %v1491_v60 = vsel %vm6259_vm13, %v1490_v59, %v1489_v54  ;;  %v1438_v24 = vrot.slane %v1409_v51, 1 }
 0x173   :  { %v1354_v7 = vld [vmem:[#allocation2 + $0x4a] sm:$0x1]  ;;  %811 = vst.msk [vmem:[#allocation2 + $0xb8] sm:$0xff] %vm6258_vm0, %v783_v34  ;;  %v1376_v46 = vrot.slane %v1352_v22, 6  ;;  %v1357_v30 = vld [vmem:[#allocation2 + $0x7a] sm:$0x1]  ;;  %v1375_v32 = vsel %vm6265_vm8, %v1374_v3, %v1350_v1  ;;  %v1433_v43 = vsel %vm6262_vm11, %v1432_v15, %v1431_v62 }
 0x174   :  { %v1356_v40 = vld [vmem:[#allocation2 + $0x6a] sm:$0x1]  ;;  %v1380_v16 = vrot.slane %v1354_v7, 4  ;;  %v1611_v33 = vld [vmem:[#allocation2 + $0x1f] sm:$0x1]  ;;  %v1382_v52 = vrot.slane %v1355_v12, 3  ;;  %v1435_v37 = vsel %vm6261_vm15, %v1434_v19, %v1433_v43 }
 0x175   :  { %v1377_v35 = vsel %vm6264_vm7, %v1376_v46, %v1375_v32  ;;  %v1612_v53 = vld [vmem:[#allocation2 + $0x2f] sm:$0x1]  ;;  %v1613_v49 = vld [vmem:[#allocation2 + $0x3f] sm:$0x1]  ;;  %v1384_v6 = vrot.slane %v1356_v40, 2  ;;  %v1386_v4 = vrot.slane %v1357_v30, 1  ;;  %v1437_v9 = vsel %vm6260_vm2, %v1436_v47, %v1435_v37 }
 0x176   :  { %1186 = vrot.lane.b32.xlu2 %v1179_v45, %s3677_s17  ;;  %1498 = vrot.lane.b32.xlu1 %v1491_v60, %s3676_s16  ;;  %v1379_v58 = vsel %vm6263_vm9, %v1378_v23, %v1377_v35  ;;  %v1614_v27 = vld [vmem:[#allocation2 + $0x4f] sm:$0x1]  ;;  %v1615_v57 = vld [vmem:[#allocation2 + $0x5f] sm:$0x1]  ;;  %v1634_v29 = vrot.slane %v1611_v33, 7  ;;  %v1636_v39 = vrot.slane %v1612_v53, 6  ;;  %v1439_v45 = vsel %vm6259_vm13, %v1438_v24, %v1437_v9 }
 0x177   :  { %1240 = vrot.lane.b32.xlu0 %v1233_v38, %s3678_s18  ;;  %v1381_v55 = vsel %vm6262_vm11, %v1380_v16, %v1379_v58  ;;  %v1610_v17 = vld [vmem:[#allocation2 + $0xf] sm:$0x1]  ;;  %v1617_v14 = vld [vmem:[#allocation2 + $0x7f] sm:$0x1]  ;;  %v1638_v11 = vrot.slane %v1613_v49, 5  ;;  %v1640_v56 = vrot.slane %v1614_v27, 4 }
 0x178   :  { %v1616_v36 = vld [vmem:[#allocation2 + $0x6f] sm:$0x1]  ;;  %v1559_v10 = vld [vmem:[#allocation2 + $0x1e] sm:$0x1]  ;;  %v1560_v50 = vld [vmem:[#allocation2 + $0x2e] sm:$0x1]  ;;  %v1383_v25 = vsel %vm6261_vm15, %v1382_v52, %v1381_v55  ;;  %v1635_v8 = vsel %vm6265_vm8, %v1634_v29, %v1610_v17 }
 0x179   :  { %v1642_v20 = vrot.slane %v1615_v57, 3  ;;  %v1561_v63 = vld [vmem:[#allocation2 + $0x3e] sm:$0x1]  ;;  %v1562_v41 = vld [vmem:[#allocation2 + $0x4e] sm:$0x1]  ;;  %v1385_v0 = vsel %vm6260_vm2, %v1384_v6, %v1383_v25  ;;  %v1637_v5 = vsel %vm6264_vm7, %v1636_v39, %v1635_v8  ;;  %v1644_v2 = vrot.slane %v1616_v36, 2 }
 0x17a   :  { %v1646_v28 = vrot.slane %v1617_v14, 1  ;;  %v1563_v44 = vld [vmem:[#allocation2 + $0x5e] sm:$0x1]  ;;  %v1564_v61 = vld [vmem:[#allocation2 + $0x6e] sm:$0x1]  ;;  %v1639_v48 = vsel %vm6263_vm9, %v1638_v11, %v1637_v5  ;;  %v1582_v59 = vrot.slane %v1559_v10, 7  ;;  %v1387_v1 = vsel %vm6259_vm13, %v1386_v4, %v1385_v0 }
 0x17b   :  { %v1558_v26 = vld [vmem:[#allocation2 + $0xe] sm:$0x1]  ;;  %v1584_v51 = vrot.slane %v1560_v50, 6  ;;  %v1586_v15 = vrot.slane %v1561_v63, 5  ;;  %v1641_v22 = vsel %vm6262_vm11, %v1640_v56, %v1639_v48  ;;  %v1565_v34 = vld [vmem:[#allocation2 + $0x7e] sm:$0x1] }
 0x17c   :  { %v1588_v13 = vrot.slane %v1562_v41, 4  ;;  %v1590_v42 = vrot.slane %v1563_v44, 3  ;;  %v1506_v19 = vld [vmem:[#allocation2 + $0xd] sm:$0x1]  ;;  %v1507_v21 = vld [vmem:[#allocation2 + $0x1d] sm:$0x1]  ;;  %v1643_v7 = vsel %vm6261_vm15, %v1642_v20, %v1641_v22  ;;  %v1583_v3 = vsel %vm6265_vm8, %v1582_v59, %v1558_v26 }
 0x17d   :  { %v1592_v31 = vrot.slane %v1564_v61, 2  ;;  %v1508_v18 = vld [vmem:[#allocation2 + $0x2d] sm:$0x1]  ;;  %v1509_v47 = vld [vmem:[#allocation2 + $0x3d] sm:$0x1]  ;;  %v1530_v12 = vrot.slane %v1507_v21, 7  ;;  %v1645_v46 = vsel %vm6260_vm2, %v1644_v2, %v1643_v7  ;;  %v1585_v54 = vsel %vm6264_vm7, %v1584_v51, %v1583_v3 }
 0x17e   :  { %1394 = vrot.lane.b32.xlu2 %v1387_v1, %s3673_s7  ;;  %v1510_v62 = vld [vmem:[#allocation2 + $0x4d] sm:$0x1]  ;;  %v1511_v40 = vld [vmem:[#allocation2 + $0x5d] sm:$0x1]  ;;  %v1647_v32 = vsel %vm6259_vm13, %v1646_v28, %v1645_v46  ;;  %v1587_v23 = vsel %vm6263_vm9, %v1586_v15, %v1585_v54  ;;  %v1532_v35 = vrot.slane %v1508_v18, 6  ;;  %v1534_v33 = vrot.slane %v1509_v47, 5 }
 0x17f   :  { %1446 = vrot.lane.b32.xlu0 %v1439_v45, %s3675_s15  ;;  %v1512_v30 = vld [vmem:[#allocation2 + $0x6d] sm:$0x1]  ;;  %v1513_v60 = vld [vmem:[#allocation2 + $0x7d] sm:$0x1]  ;;  %v1531_v43 = vsel %vm6265_vm8, %v1530_v12, %v1506_v19  ;;  %1654 = vrot.lane.b32.xlu1 %v1647_v32, %s3678_s18  ;;  %v1589_v16 = vsel %vm6262_vm11, %v1588_v13, %v1587_v23  ;;  %v1536_v53 = vrot.slane %v1510_v62, 4  ;;  %v1538_v38 = vrot.slane %v1511_v40, 3 }
 0x180   :  { %v881_v24 = vld [vmem:[#allocation2 + $0x91] sm:$0x1]  ;;  %v1594_v58 = vrot.slane %v1565_v34, 1  ;;  %v1533_v52 = vsel %vm6264_vm7, %v1532_v35, %v1531_v43  ;;  %v1540_v49 = vrot.slane %v1512_v30, 2  ;;  %v882_v27 = vld [vmem:[#allocation2 + $0xa1] sm:$0x1]  ;;  %v1591_v37 = vsel %vm6261_vm15, %v1590_v42, %v1589_v16 }
 0x181   :  { %v883_v55 = vld [vmem:[#allocation2 + $0xb1] sm:$0x1]  ;;  %v1535_v6 = vsel %vm6263_vm9, %v1534_v33, %v1533_v52  ;;  %v1542_v4 = vrot.slane %v1513_v60, 1  ;;  %v910_v17 = vrot.slane %v881_v24, 7  ;;  %v912_v57 = vrot.slane %v882_v27, 6 }
 0x182   :  { %v1537_v36 = vsel %vm6262_vm11, %v1536_v53, %v1535_v6  ;;  %v914_v14 = vrot.slane %v883_v55, 5  ;;  %v1593_v29 = vsel %vm6260_vm2, %v1592_v31, %v1591_v37  ;;  %v880_v9 = vld [vmem:[#allocation2 + $0x81] sm:$0x1]  ;;  %v935_v11 = vld [vmem:[#allocation2 + $0x92] sm:$0x1]  ;;  %v3679_v21 = vmov 0.0  }
 0x183   :  { %v1539_v39 = vsel %vm6261_vm15, %v1538_v38, %v1537_v36  ;;  %v1595_v56 = vsel %vm6259_vm13, %v1594_v58, %v1593_v29  ;;  %v911_v50 = vsel %vm6265_vm8, %v910_v17, %v880_v9  ;;  %v1043_v45 = vld [vmem:[#allocation2 + $0x94] sm:$0x1]  ;;  %v936_v25 = vld [vmem:[#allocation2 + $0xa2] sm:$0x1]  ;;  %v1044_v63 = vld [vmem:[#allocation2 + $0xa4] sm:$0x1]  ;;  %v4881_v17 = vpop.permute.xlu2 %1670 }
 0x184   :  { %v1541_v10 = vsel %vm6260_vm2, %v1540_v49, %v1539_v39  ;;  %v913_v20 = vsel %vm6264_vm7, %v912_v57, %v911_v50  ;;  %v937_v41 = vld [vmem:[#allocation2 + $0xb2] sm:$0x1]  ;;  %v989_v0 = vld [vmem:[#allocation2 + $0x93] sm:$0x1]  ;;  %v1045_v2 = vld [vmem:[#allocation2 + $0xb4] sm:$0x1] }
 0x185   :  { %v1543_v8 = vsel %vm6259_vm13, %v1542_v4, %v1541_v10  ;;  %v915_v5 = vsel %vm6263_vm9, %v914_v14, %v913_v20  ;;  %v964_v28 = vrot.slane %v935_v11, 7  ;;  %v990_v44 = vld [vmem:[#allocation2 + $0xa3] sm:$0x1]  ;;  %v1072_v61 = vrot.slane %v1043_v45, 7  ;;  %v991_v26 = vld [vmem:[#allocation2 + $0xb3] sm:$0x1] }
 0x186   :  { %1550 = vrot.lane.b32.xlu2 %v1543_v8, %s3672_s5  ;;  %v966_v48 = vrot.slane %v936_v25, 6  ;;  %v1074_v59 = vrot.slane %v1044_v63, 6  ;;  %v968_v51 = vrot.slane %v937_v41, 5  ;;  %v1018_v15 = vrot.slane %v989_v0, 7  ;;  %v934_v22 = vld [vmem:[#allocation2 + $0x82] sm:$0x1] }
 0x187   :  { %1602 = vrot.lane.b32.xlu0 %v1595_v56, %s3677_s17  ;;  %918 = vrot.lane.b32.xlu1 %v915_v5, %s3674_s14  ;;  %v1076_v1 = vrot.slane %v1045_v2, 5  ;;  %v1020_v34 = vrot.slane %v990_v44, 6  ;;  %v1042_v13 = vld [vmem:[#allocation2 + $0x84] sm:$0x1]  ;;  %v965_v42 = vsel %vm6265_vm8, %v964_v28, %v934_v22  ;;  %v1022_v19 = vrot.slane %v991_v26, 5  ;;  %812 = vst [vmem:[#allocation3] sm:$0xff] %v3679_v21 }
 0x188   :  { %v1073_v7 = vsel %vm6265_vm8, %v1072_v61, %v1042_v13  ;;  %v967_v3 = vsel %vm6264_vm7, %v966_v48, %v965_v42  ;;  %v988_v31 = vld [vmem:[#allocation2 + $0x83] sm:$0x1]  ;;  %v1097_v18 = vld [vmem:[#allocation2 + $0x95] sm:$0x1]  ;;  %v1205_v54 = vld [vmem:[#allocation2 + $0x97] sm:$0x1] }
 0x189   :  { %v1075_v47 = vsel %vm6264_vm7, %v1074_v59, %v1073_v7  ;;  %v969_v12 = vsel %vm6263_vm9, %v968_v51, %v967_v3  ;;  %v1019_v46 = vsel %vm6265_vm8, %v1018_v15, %v988_v31  ;;  %v1098_v62 = vld [vmem:[#allocation2 + $0xa5] sm:$0x1]  ;;  %813 = vst [vmem:[#allocation3 + $0x8] sm:$0xff] %v3679_v21  ;;  %v1206_v32 = vld [vmem:[#allocation2 + $0xa7] sm:$0x1]  ;;  %v1126_v16 = vrot.slane %v1097_v18, 7 }
 0x18a   :  { %v1077_v40 = vsel %vm6263_vm9, %v1076_v1, %v1075_v47  ;;  %v1021_v30 = vsel %vm6264_vm7, %v1020_v34, %v1019_v46  ;;  %v1099_v23 = vld [vmem:[#allocation2 + $0xb5] sm:$0x1]  ;;  %v1151_v60 = vld [vmem:[#allocation2 + $0x96] sm:$0x1]  ;;  %v1207_v35 = vld [vmem:[#allocation2 + $0xb7] sm:$0x1] }
 0x18b   :  { %v1023_v43 = vsel %vm6263_vm9, %v1022_v19, %v1021_v30  ;;  %v1152_v33 = vld [vmem:[#allocation2 + $0xa6] sm:$0x1]  ;;  %814 = vst [vmem:[#allocation3 + $0x10] sm:$0xff] %v3679_v21  ;;  %v1234_v53 = vrot.slane %v1205_v54, 7  ;;  %v1128_v38 = vrot.slane %v1098_v62, 6  ;;  %v1236_v52 = vrot.slane %v1206_v32, 6 }
 0x18c   :  { %v1153_v24 = vld [vmem:[#allocation2 + $0xb6] sm:$0x1]  ;;  %v1204_v58 = vld [vmem:[#allocation2 + $0x87] sm:$0x1]  ;;  %v1130_v49 = vrot.slane %v1099_v23, 5  ;;  %v1180_v27 = vrot.slane %v1151_v60, 7  ;;  %v4909_v60 = vpop.permute.xlu2 %1751 }
 0x18d   :  { %815 = vst [vmem:[#allocation3 + $0x18] sm:$0xff] %v3679_v21  ;;  %v1238_v55 = vrot.slane %v1207_v35, 5  ;;  %v1096_v6 = vld [vmem:[#allocation2 + $0x85] sm:$0x1]  ;;  %v1182_v4 = vrot.slane %v1152_v33, 6  ;;  %v1184_v36 = vrot.slane %v1153_v24, 5  ;;  %v1235_v39 = vsel %vm6265_vm8, %v1234_v53, %v1204_v58 }
 0x18e   :  { %1080 = vrot.lane.b32.xlu2 %v1077_v40, %s3676_s16  ;;  %v1411_v57 = vld [vmem:[#allocation2 + $0x9b] sm:$0x1]  ;;  %v1127_v37 = vsel %vm6265_vm8, %v1126_v16, %v1096_v6  ;;  %v1412_v14 = vld [vmem:[#allocation2 + $0xab] sm:$0x1]  ;;  %v1307_v29 = vld [vmem:[#allocation2 + $0x99] sm:$0x1]  ;;  %v1237_v50 = vsel %vm6264_vm7, %v1236_v52, %v1235_v39 }
 0x18f   :  { %972 = vrot.lane.b32.xlu0 %v969_v12, %s3673_s7  ;;  %1026 = vrot.lane.b32.xlu1 %v1023_v43, %s3675_s15  ;;  %v1129_v9 = vsel %vm6264_vm7, %v1128_v38, %v1127_v37  ;;  %v1150_v11 = vld [vmem:[#allocation2 + $0x86] sm:$0x1]  ;;  %v1359_v56 = vld [vmem:[#allocation2 + $0x9a] sm:$0x1]  ;;  %v1308_v10 = vld [vmem:[#allocation2 + $0xa9] sm:$0x1]  ;;  %v1239_v41 = vsel %vm6263_vm9, %v1238_v55, %v1237_v50 }
 0x190   :  { %v1131_v45 = vsel %vm6263_vm9, %v1130_v49, %v1129_v9  ;;  %v1181_v25 = vsel %vm6265_vm8, %v1180_v27, %v1150_v11  ;;  %v1413_v8 = vld [vmem:[#allocation2 + $0xbb] sm:$0x1]  ;;  %v1440_v20 = vrot.slane %v1411_v57, 7  ;;  %v1360_v63 = vld [vmem:[#allocation2 + $0xaa] sm:$0x1]  ;;  %v1442_v5 = vrot.slane %v1412_v14, 6 }
 0x191   :  { %v1183_v0 = vsel %vm6264_vm7, %v1182_v4, %v1181_v25  ;;  %v1361_v2 = vld [vmem:[#allocation2 + $0xba] sm:$0x1]  ;;  %v1309_v28 = vld [vmem:[#allocation2 + $0xb9] sm:$0x1]  ;;  %v1336_v44 = vrot.slane %v1307_v29, 7  ;;  %v1388_v26 = vrot.slane %v1359_v56, 7 }
 0x192   :  { %v1185_v61 = vsel %vm6263_vm9, %v1184_v36, %v1183_v0  ;;  %v1410_v48 = vld [vmem:[#allocation2 + $0x8b] sm:$0x1]  ;;  %v1338_v59 = vrot.slane %v1308_v10, 6  ;;  %v1567_v51 = vld [vmem:[#allocation2 + $0x9e] sm:$0x1]  ;;  %v1444_v13 = vrot.slane %v1413_v8, 5 }
 0x193   :  { %v1568_v15 = vld [vmem:[#allocation2 + $0xae] sm:$0x1]  ;;  %v4895_v1 = vld [vmem:[#allocation2 + $0xbe] sm:$0x1]  ;;  %v4897_v22 = vld [vmem:[#allocation2 + $0x9d] sm:$0x1]  ;;  %v1441_v7 = vsel %vm6265_vm8, %v1440_v20, %v1410_v48 }
 0x194   :  { %v4899_v34 = vld [vmem:[#allocation2 + $0xad] sm:$0x1]  ;;  %v1390_v42 = vrot.slane %v1360_v63, 6  ;;  %v1306_v19 = vld [vmem:[#allocation2 + $0x89] sm:$0x1]  ;;  %v1340_v21 = vrot.slane %v1309_v28, 5  ;;  %v1443_v30 = vsel %vm6264_vm7, %v1442_v5, %v1441_v7 }
 0x195   :  { %v1358_v3 = vld [vmem:[#allocation2 + $0x8a] sm:$0x1]  ;;  %v1392_v31 = vrot.slane %v1361_v2, 5  ;;  %v1337_v18 = vsel %vm6265_vm8, %v1336_v44, %v1306_v19  ;;  %v1596_v47 = vrot.slane %v1567_v51, 7  ;;  %v1598_v12 = vrot.slane %v1568_v15, 6 }
 0x196   :  { %1242 = vrot.lane.b32.xlu2 %v1239_v41, %s3678_s18  ;;  %v1600_v46 = vrot.slane %v4895_v1, 5  ;;  %v1544_v54 = vrot.slane %v4897_v22, 7  ;;  %v1546_v62 = vrot.slane %v4899_v34, 6  ;;  %v1463_v40 = vld [vmem:[#allocation2 + $0x9c] sm:$0x1]  ;;  %v1389_v32 = vsel %vm6265_vm8, %v1388_v26, %v1358_v3 }
 0x197   :  { %1134 = vrot.lane.b32.xlu0 %v1131_v45, %s3672_s5  ;;  %1188 = vrot.lane.b32.xlu1 %v1185_v61, %s3677_s17  ;;  %v1339_v23 = vsel %vm6264_vm7, %v1338_v59, %v1337_v18  ;;  %v1464_v43 = vld [vmem:[#allocation2 + $0xac] sm:$0x1]  ;;  %v1465_v35 = vld [vmem:[#allocation2 + $0xbc] sm:$0x1]  ;;  %v817_v16 = vld [vmem:[#allocation2 + $0x10] sm:$0x1]  ;;  %v1445_v33 = vsel %vm6263_vm9, %v1444_v13, %v1443_v30  ;;  %v1391_v53 = vsel %vm6264_vm7, %v1390_v42, %v1389_v32 }
 0x198   :  { %v1341_v38 = vsel %vm6263_vm9, %v1340_v21, %v1339_v23  ;;  %v1566_v24 = vld [vmem:[#allocation2 + $0x8e] sm:$0x1]  ;;  %v1517_v58 = vld [vmem:[#allocation2 + $0xbd] sm:$0x1]  ;;  %v818_v52 = vld [vmem:[#allocation2 + $0x20] sm:$0x1]  ;;  %v1393_v36 = vsel %vm6263_vm9, %v1392_v31, %v1391_v53 }
 0x199   :  { %v819_v49 = vld [vmem:[#allocation2 + $0x30] sm:$0x1]  ;;  %v1492_v55 = vrot.slane %v1463_v40, 7  ;;  %v822_v6 = vld [vmem:[#allocation2 + $0x60] sm:$0x1]  ;;  %v840_v4 = vrot.slane %v817_v16, 7  ;;  %v1597_v11 = vsel %vm6265_vm8, %v1596_v47, %v1566_v24  ;;  %v4940_v16 = vpop.permute.xlu2 %1759 }
 0x19a   :  { %v821_v27 = vld [vmem:[#allocation2 + $0x50] sm:$0x1]  ;;  %v843_v57 = vrot.slane %v818_v52, 6  ;;  %v846_v37 = vrot.slane %v819_v49, 5  ;;  %v1494_v14 = vrot.slane %v1464_v43, 6  ;;  %v1496_v29 = vrot.slane %v1465_v35, 5 }
 0x19b   :  { %v816_v39 = vld [vmem:[#allocation2] sm:$0x1]  ;;  %v1462_v56 = vld [vmem:[#allocation2 + $0x8c] sm:$0x1]  ;;  %v852_v50 = vrot.slane %v821_v27, 3  ;;  %v855_v63 = vrot.slane %v822_v6, 2  ;;  %v1599_v2 = vsel %vm6264_vm7, %v1598_v12, %v1597_v11 }
 0x19c   :  { %v820_v9 = vld [vmem:[#allocation2 + $0x40] sm:$0x1]  ;;  %v842_v10 = vsel %vm6265_vm8, %v840_v4, %v816_v39  ;;  %v1251_v25 = vld [vmem:[#allocation2 + $0x18] sm:$0x1]  ;;  %v1252_v8 = vld [vmem:[#allocation2 + $0x28] sm:$0x1]  ;;  %v1493_v51 = vsel %vm6265_vm8, %v1492_v55, %v1462_v56  ;;  %v1601_v43 = vsel %vm6263_vm9, %v1600_v46, %v1599_v2 }
 0x19d   :  { %v849_v45 = vrot.slane %v820_v9, 4  ;;  %v845_v20 = vsel %vm6264_vm7, %v843_v57, %v842_v10  ;;  %v1253_v41 = vld [vmem:[#allocation2 + $0x38] sm:$0x1]  ;;  %v1274_v0 = vrot.slane %v1251_v25, 7  ;;  %v1276_v5 = vrot.slane %v1252_v8, 6 }
 0x19e   :  { %1448 = vrot.lane.b32.xlu2 %v1445_v33, %s3675_s15  ;;  %v1548_v28 = vrot.slane %v1517_v58, 5  ;;  %v823_v44 = vld [vmem:[#allocation2 + $0x70] sm:$0x1]  ;;  %v848_v61 = vsel %vm6263_vm9, %v846_v37, %v845_v20  ;;  %v1250_v48 = vld [vmem:[#allocation2 + $0x8] sm:$0x1]  ;;  %v1278_v26 = vrot.slane %v1253_v41, 5  ;;  %v1495_v19 = vsel %vm6264_vm7, %v1494_v14, %v1493_v51 }
 0x19f   :  { %1344 = vrot.lane.b32.xlu0 %v1341_v38, %s3674_s14  ;;  %1396 = vrot.lane.b32.xlu1 %v1393_v36, %s3673_s7  ;;  %v1514_v59 = vld [vmem:[#allocation2 + $0x8d] sm:$0x1]  ;;  %v858_v15 = vrot.slane %v823_v44, 1  ;;  %v851_v22 = vsel %vm6262_vm11, %v849_v45, %v848_v61  ;;  %v1275_v13 = vsel %vm6265_vm8, %v1274_v0, %v1250_v48  ;;  %v1254_v42 = vld [vmem:[#allocation2 + $0x48] sm:$0x1]  ;;  %v1497_v12 = vsel %vm6263_vm9, %v1496_v29, %v1495_v19 }
 0x1a0   :  { %v1619_v21 = vld [vmem:[#allocation2 + $0x9f] sm:$0x1]  ;;  %v854_v7 = vsel %vm6261_vm15, %v852_v50, %v851_v22  ;;  %v1255_v3 = vld [vmem:[#allocation2 + $0x58] sm:$0x1]  ;;  %v1277_v31 = vsel %vm6264_vm7, %v1276_v5, %v1275_v13  ;;  %v1280_v18 = vrot.slane %v1254_v42, 4  ;;  %v1545_v47 = vsel %vm6265_vm8, %v1544_v54, %v1514_v59 }
 0x1a1   :  { %v1620_v40 = vld [vmem:[#allocation2 + $0xaf] sm:$0x1]  ;;  %v857_v30 = vsel %vm6260_vm2, %v855_v63, %v854_v7  ;;  %v1256_v32 = vld [vmem:[#allocation2 + $0x68] sm:$0x1]  ;;  %v1279_v23 = vsel %vm6263_vm9, %v1278_v26, %v1277_v31  ;;  %v1547_v35 = vsel %vm6264_vm7, %v1546_v62, %v1545_v47  ;;  %v1621_v54 = vld [vmem:[#allocation2 + $0xbf] sm:$0x1]  ;;  %v4956_v39 = vpop.permute.xlu2 %1772 }
 0x1a2   :  { %v860_v33 = vsel %vm6259_vm13, %v858_v15, %v857_v30  ;;  %v1549_v53 = vsel %vm6263_vm9, %v1548_v28, %v1547_v35  ;;  %v1648_v38 = vrot.slane %v1619_v21, 7  ;;  %v1282_v1 = vrot.slane %v1255_v3, 3  ;;  %v1618_v58 = vld [vmem:[#allocation2 + $0x8f] sm:$0x1]  ;;  %v1257_v52 = vld [vmem:[#allocation2 + $0x78] sm:$0x1] }
 0x1a3   :  { %869 = vst.msk [vmem:[#allocation3] sm:$0xff] %vm6258_vm0, %v860_v33  ;;  %v1650_v34 = vrot.slane %v1620_v40, 6  ;;  %v1284_v46 = vrot.slane %v1256_v32, 2  ;;  %v1281_v62 = vsel %vm6262_vm11, %v1280_v18, %v1279_v23  ;;  %v1652_v24 = vrot.slane %v1621_v54, 5  ;;  %v825_v57 = vld [vmem:[#allocation2 + $0x90] sm:$0x1] }
 0x1a4   :  { %v1649_v49 = vsel %vm6265_vm8, %v1648_v38, %v1618_v58  ;;  %v1286_v27 = vrot.slane %v1257_v52, 1  ;;  %v1283_v55 = vsel %vm6261_vm15, %v1282_v1, %v1281_v62  ;;  %v826_v14 = vld [vmem:[#allocation2 + $0xa0] sm:$0x1]  ;;  %v861_v29 = vrot.slane %v825_v57, 7  ;;  %v827_v11 = vld [vmem:[#allocation2 + $0xb0] sm:$0x1] }
 0x1a5   :  { %v1651_v6 = vsel %vm6264_vm7, %v1650_v34, %v1649_v49  ;;  %v1285_v4 = vsel %vm6260_vm2, %v1284_v46, %v1283_v55  ;;  %v863_v9 = vrot.slane %v826_v14, 6  ;;  %v824_v56 = vld [vmem:[#allocation2 + $0x80] sm:$0x1]  ;;  %v865_v10 = vrot.slane %v827_v11, 5  ;;  %v1259_v25 = vld [vmem:[#allocation2 + $0x98] sm:$0x1] }
 0x1a6   :  { %1604 = vrot.lane.b32.xlu2 %v1601_v43, %s3677_s17  ;;  %v1653_v37 = vsel %vm6263_vm9, %v1652_v24, %v1651_v6  ;;  %v1287_v36 = vsel %vm6259_vm13, %v1286_v27, %v1285_v4  ;;  %v862_v50 = vsel %vm6265_vm8, %v861_v29, %v824_v56  ;;  %v1260_v20 = vld [vmem:[#allocation2 + $0xa8] sm:$0x1]  ;;  %v1288_v63 = vrot.slane %v1259_v25, 7  ;;  %v1261_v5 = vld [vmem:[#allocation2 + $0xb8] sm:$0x1]  ;;  %v1662_v1 = vld [vmem:[%s6243_s2] sm:$0xff] }
 0x1a7   :  { %1500 = vrot.lane.b32.xlu0 %v1497_v12, %s3676_s16  ;;  %1552 = vrot.lane.b32.xlu1 %v1549_v53, %s3672_s5  ;;  %1296 = vst.msk [vmem:[#allocation3 + $0x8] sm:$0xff] %vm6258_vm0, %v1287_v36  ;;  %v864_v45 = vsel %vm6264_vm7, %v863_v9, %v862_v50  ;;  %v1290_v41 = vrot.slane %v1260_v20, 6  ;;  %v1258_v2 = vld [vmem:[#allocation2 + $0x88] sm:$0x1]  ;;  %v1292_v28 = vrot.slane %v1261_v5, 5 }
 0x1a8   :  { %v866_v8 = vsel %vm6263_vm9, %v865_v10, %v864_v45  ;;  %v1289_v44 = vsel %vm6265_vm8, %v1288_v63, %v1258_v2 }
 0x1a9   :  { %871 = vst.msk [vmem:[#allocation3 + $0x10] sm:$0xf] %vm6257_vm3, %v866_v8  ;;  %v4962_v0 = vpop.permute.xlu2 %1777  ;;  %v1291_v61 = vsel %vm6264_vm7, %v1290_v41, %v1289_v44 }
 0x1aa   :  { %v1293_v48 = vsel %vm6263_vm9, %v1292_v28, %v1291_v61 }
 0x1ab   :  { %1297 = vst.msk [vmem:[#allocation3 + $0x18] sm:$0xf] %vm6257_vm3, %v1293_v48  ;;  %vm1032_vm3 = vcmask 519552  }
 0x1af   :  { %1656 = vrot.lane.b32.xlu0 %v1653_v37, %s3678_s18  ;;  %v3680_v37 = vmov 256.0  }
 0x1b0   :  { %3593 = vrcp.f32 %v3680_v37 }
 0x1b6   :  { %v3594_v36 = vpop.eup %3593 }
 0x1b7   :  { %v1720_v14 = vmul.f32 256.0, %v3594_v36 }
 0x1b9   :  { %v1721_v29 = vsub.f32 1.0, %v1720_v14 }
 0x1bb   :  { %v1722_v9 = vmul.f32 %v3594_v36, %v1721_v29 }
 0x1bd   :  { %v1723_v11 = vadd.f32 %v3594_v36, %v1722_v9 }
 0x1c0   :  { %v971_v26 = vpop.permute.xlu2 %970 }
 0x1c8   :  { %v1025_v59 = vpop.permute.xlu2 %1024 }
 0x1d0   :  { %v1187_v15 = vpop.permute.xlu2 %1186 }
 0x1d8   :  { %v1133_v51 = vpop.permute.xlu1 %1132  ;;  %v1395_v19 = vpop.permute.xlu2 %1394 }
 0x1d9   :  { %v917_v22 = vpop.permute.xlu0 %916 }
 0x1da   :  { %923 = vst.msk [vmem:[#allocation3] sm:$0xff] %vm922_vm10, %v917_v22 }
 0x1db   :  { %977 = vst.msk [vmem:[#allocation3] sm:$0xff] %vm976_vm14, %v971_v26 }
 0x1dc   :  { %1031 = vst.msk [vmem:[#allocation3] sm:$0xff] %vm1030_vm1, %v1025_v59 }
 0x1e0   :  { %v1343_v13 = vpop.permute.xlu1 %1342  ;;  %v1551_v31 = vpop.permute.xlu2 %1550 }
 0x1e1   :  { %v1079_v42 = vpop.permute.xlu0 %1078  ;;  %1348 = vst.msk [vmem:[#allocation3 + $0x8] sm:$0xff] %vm922_vm10, %v1343_v13  ;;  %vm924_vm10 = vcmask 257152  }
 0x1e2   :  { %1085 = vst.msk [vmem:[#allocation3] sm:$0xff] %vm1084_vm4, %v1079_v42 }
 0x1e3   :  { %1139 = vst.msk [vmem:[#allocation3] sm:$0xff] %vm1138_vm6, %v1133_v51 }
 0x1e4   :  { %1400 = vst.msk [vmem:[#allocation3 + $0x8] sm:$0xff] %vm976_vm14, %v1395_v19  ;;  %vm978_vm14 = vcmask 388352  }
 0x1e5   :  { %1193 = vst.msk [vmem:[#allocation3] sm:$0xff] %vm1192_vm12, %v1187_v15 }
 0x1e8   :  { %v1499_v7 = vpop.permute.xlu1 %1498  ;;  %v1081_v40 = vpop.permute.xlu2 %1080 }
 0x1e9   :  { %v1241_v21 = vpop.permute.xlu0 %1240 }
 0x1ea   :  { %1247 = vst.msk [vmem:[#allocation3] sm:$0xff] %vm1246_vm5, %v1241_v21 }
 0x1f0   :  { %v1243_v23 = vpop.permute.xlu2 %1242 }
 0x1f1   :  { %v1447_v3 = vpop.permute.xlu0 %1446  ;;  %v1655_v18 = vpop.permute.xlu1 %1654  ;;  %v4991_v34 = vld [vmem:[#allocation3] sm:$0xff] }
 0x1f2   :  { %1452 = vst.msk [vmem:[#allocation3 + $0x8] sm:$0xff] %vm1030_vm1, %v1447_v3  ;;  %vm1086_vm1 = vcmask 650752   ;;  %v1766_v3 = vld [vmem:[%s6244_s6] sm:$0xff] }
 0x1f3   :  { %1504 = vst.msk [vmem:[#allocation3 + $0x8] sm:$0xff] %vm1084_vm4, %v1499_v7  ;;  %vm1140_vm4 = vcmask 781952  }
 0x1f4   :  { %1556 = vst.msk [vmem:[#allocation3 + $0x8] sm:$0xff] %vm1138_vm6, %v1551_v31  ;;  %vm1194_vm6 = vcmask 913152   ;;  %v1767_v31 = vld [vmem:[%s6244_s6 + $0x8] sm:$0xf] }
 0x1f8   :  { %v1449_v33 = vpop.permute.xlu2 %1448 }
 0x1f9   :  { %v1603_v47 = vpop.permute.xlu0 %1602  ;;  %v919_v12 = vpop.permute.xlu1 %918 }
 0x1fa   :  { %1608 = vst.msk [vmem:[#allocation3 + $0x8] sm:$0xff] %vm1192_vm12, %v1603_v47  ;;  %vm1248_vm12 = vcmask 1044352  }
 0x1fb   :  { %1660 = vst.msk [vmem:[#allocation3 + $0x8] sm:$0xff] %vm1246_vm5, %v1655_v18 }
 0x1fc   :  { %925 = vst.msk [vmem:[#allocation3 + $0x10] sm:$0xf] %vm924_vm10, %v919_v12 }
 0x200   :  { %v1605_v24 = vpop.permute.xlu2 %1604 }
 0x201   :  { %v973_v30 = vpop.permute.xlu0 %972  ;;  %v1027_v32 = vpop.permute.xlu1 %1026 }
 0x202   :  { %979 = vst.msk [vmem:[#allocation3 + $0x10] sm:$0xf] %vm978_vm14, %v973_v30  ;;  %v4999_v49 = vld [vmem:[#allocation3 + $0x8] sm:$0xff] }
 0x203   :  { %1033 = vst.msk [vmem:[#allocation3 + $0x10] sm:$0xf] %vm1032_vm3, %v1027_v32 }
 0x204   :  { %1087 = vst.msk [vmem:[#allocation3 + $0x10] sm:$0xf] %vm1086_vm1, %v1081_v40 }
 0x209   :  { %v1135_v43 = vpop.permute.xlu0 %1134  ;;  %v1189_v35 = vpop.permute.xlu1 %1188 }
 0x20a   :  { %1141 = vst.msk [vmem:[#allocation3 + $0x10] sm:$0xf] %vm1140_vm4, %v1135_v43 }
 0x20b   :  { %1195 = vst.msk [vmem:[#allocation3 + $0x10] sm:$0xf] %vm1194_vm6, %v1189_v35 }
 0x20c   :  { %1249 = vst.msk [vmem:[#allocation3 + $0x10] sm:$0xf] %vm1248_vm12, %v1243_v23 }
 0x211   :  { %v1345_v54 = vpop.permute.xlu0 %1344  ;;  %v1397_v53 = vpop.permute.xlu1 %1396 }
 0x212   :  { %1349 = vst.msk [vmem:[#allocation3 + $0x18] sm:$0xf] %vm924_vm10, %v1345_v54 }
 0x213   :  { %1401 = vst.msk [vmem:[#allocation3 + $0x18] sm:$0xf] %vm978_vm14, %v1397_v53  ;;  %v1665_v38 = vld [vmem:[#allocation3 + $0x10] sm:$0xff] }
 0x214   :  { %1453 = vst.msk [vmem:[#allocation3 + $0x18] sm:$0xf] %vm1032_vm3, %v1449_v33  ;;  %1690 = vmatpush.msrb.mxu0 %v1665_v38  ;;  %vm1724_vm3 = vweird.f32 %v3594_v36 }
 0x215   :  { %v1725_v56 = vsel %vm1724_vm3, %v3594_v36, %v1723_v11  ;;  %vm6339_vm3 = vcmask 125952  }
 0x216   :  { %1691 = vmatpush.msrb.mxu0 %v4991_v34 }
 0x217   :  { %3525 = vmatmul.msk.f32.vlgmr.msrb.gmra.mxu0 %vm6258_vm0, %v1662_v1 }
 0x219   :  { %v1501_v46 = vpop.permute.xlu0 %1500  ;;  %v1553_v62 = vpop.permute.xlu1 %1552 }
 0x21a   :  { %1505 = vst.msk [vmem:[#allocation3 + $0x18] sm:$0xf] %vm1086_vm1, %v1501_v46  ;;  %vm1780_vm1 = vcmask 64512   ;;  %v1833_v46 = vld [vmem:[#allocation3 + $0x10] sm:$0xf] }
 0x21b   :  { %1557 = vst.msk [vmem:[#allocation3 + $0x18] sm:$0xf] %vm1140_vm4, %v1553_v62  ;;  %vm1861_vm4 = vcmask 122880  }
 0x21c   :  { %1609 = vst.msk [vmem:[#allocation3 + $0x18] sm:$0xf] %vm1194_vm6, %v1605_v24 }
 0x221   :  { %v1657_v58 = vpop.permute.xlu0 %1656 }
 0x222   :  { %1661 = vst.msk [vmem:[#allocation3 + $0x18] sm:$0xf] %vm1248_vm12, %v1657_v58  ;;  %vm2784_vm12 = vcmask 130112  }
 0x229   :  { %v1666_v52 = vld [vmem:[#allocation3 + $0x18] sm:$0xff] }
 0x22a   :  { %1710 = vmatpush.msrb.mxu1 %v1666_v52  ;;  %v1834_v62 = vld [vmem:[#allocation3 + $0x18] sm:$0xf] }
 0x22c   :  { %1711 = vmatpush.msrb.mxu1 %v4999_v49 }
 0x22d   :  { %3526 = vmatmul.msk.f32.vlgmr.msrb.gmra.mxu1 %vm6258_vm0, %v1662_v1 }
 0x294   :  { %v1693_v27 = vpop.f32.mrf.mxu0 }
 0x295   :  { %v1694_v6 = vadd.f32 %v1693_v27, %v4881_v17 }
 0x2aa   :  { %v1713_v55 = vpop.f32.mrf.mxu1 }
 0x2ab   :  { %v1714_v4 = vadd.f32 %v1713_v55, %v4881_v17 }
 0x2ad   :  { %v1716_v57 = vadd.f32 %v1714_v4, %v1694_v6 }
 0x2af   :  { %1717 = vadd.xlane.f32.xlu1 %v1716_v57 }
 0x322   :  { %v1718_v10 = vpop.xlane.xlu1 %1717 }
 0x323   :  { %v1726_v50 = vmul.f32 %v1725_v56, %v1718_v10 }
 0x325   :  { %v1727_v45 = vsub.f32 %v1694_v6, %v1726_v50  ;;  %v1728_v25 = vsub.f32 %v1714_v4, %v1726_v50 }
 0x327   :  { %v1729_v8 = vmul.f32 %v1727_v45, %v1727_v45  ;;  %v1730_v20 = vmul.f32 %v1728_v25, %v1728_v25 }
 0x329   :  { %v1731_v63 = vadd.f32 %v1730_v20, %v1729_v8 }
 0x32b   :  { %1732 = vadd.xlane.f32.xlu0 %v1731_v63 }
 0x39e   :  { %v1733_v17 = vpop.xlane.xlu0 %1732 }
 0x39f   :  { %v1734_v41 = vmul.f32 %v1733_v17, %v1725_v56 }
 0x3a1   :  { %v1735_v5 = vadd.f32 1e-05, %v1734_v41 }
 0x3a3   :  { %3595 = vrsqrt.f32 %v1735_v5  ;;  %vm1742_vm10 = vweird.f32 %v1735_v5 }
 0x3a9   :  { %v3596_v2 = vpop.eup %3595 }
 0x3aa   :  { %v1737_v28 = vmul.f32 %v3596_v2, %v1735_v5  ;;  %vm1743_vm5 = vweird.f32 %v3596_v2 }
 0x3ab   :  { %vm1744_vm14 = vmor %vm1742_vm10, %vm1743_vm5 }
 0x3ac   :  { %v1738_v44 = vmul.f32 %v3596_v2, %v1737_v28  ;;  %vm6340_vm5 = vmmov %vm6339_vm3 }
 0x3ae   :  { %v1739_v61 = vmul.f32 0.5, %v1738_v44 }
 0x3b0   :  { %v1740_v48 = vsub.f32 1.5, %v1739_v61 }
 0x3b2   :  { %v1741_v26 = vmul.f32 %v3596_v2, %v1740_v48 }
 0x3b4   :  { %v1745_v59 = vsel %vm1744_vm14, %v3596_v2, %v1741_v26 }
 0x3b5   :  { %v1746_v51 = vmul.f32 %v1745_v59, %v1727_v45  ;;  %v1747_v15 = vmul.f32 %v1745_v59, %v1728_v25 }
 0x3b7   :  { %v1754_v22 = vmul.f32 %v4909_v60, %v1746_v51  ;;  %v1755_v13 = vmul.f32 %v4909_v60, %v1747_v15 }
 0x3b9   :  { %v1762_v42 = vadd.f32 %v4940_v16, %v1754_v22  ;;  %v1763_v19 = vadd.f32 %v4940_v16, %v1755_v13 }
 0x3bb   :  { %v1764_v21 = vmax.f32 %v1762_v42, 0.0  ;;  %v1765_v7 = vmax.f32 %v1763_v19, 0.0 }
 0x3bd   :  { %1802 = vmatpush.msrb.mxu2 %v1764_v21  ;;  %1825 = vmatpush.msrb.mxu3 %v1765_v7 }
 0x3be   :  { %3527 = vmatmul.msk.f32.vlgmr.msrb.gmra.mxu2 %vm1780_vm1, %v1766_v3  ;;  %3529 = vmatmul.msk.f32.vlgmr.msrb.gmra.mxu3 %vm1780_vm1, %v1766_v3 }
 0x3c6   :  { %3528 = vmatmul.msk.f32.gmra.mxu2 %vm1780_vm1, %v1767_v31  ;;  %3530 = vmatmul.msk.f32.gmra.mxu3 %vm1780_vm1, %v1767_v31 }
 0x441   :  { %v1804_v60 = vpop.f32.mrf.mxu2  ;;  %v1827_v18 = vpop.f32.mrf.mxu3 }
 0x442   :  { %v1805_v16 = vadd.f32 %v1804_v60, %v4956_v39  ;;  %v1828_v47 = vadd.f32 %v1827_v18, %v4956_v39 }
 0x444   :  { %v5018_v12 = vmul.f32 %v1805_v16, %v4991_v34  ;;  %v5021_v40 = vmul.f32 %v1828_v47, %v4999_v49 }
 0x446   :  { %v1874_v30 = vperm.slane %v5018_v12, 0  ;;  %1862 = vst.msk [vmem:[#allocation2] sm:$0x1] %vm1861_vm4, %v5018_v12  ;;  %v1841_v32 = vrot.slane %v5018_v12, 1  ;;  %v1843_v23 = vrot.slane %v5018_v12, 3  ;;  %v1847_v43 = vrot.slane %v5018_v12, 7 }
 0x447   :  { %2244 = vst.msk [vmem:[#allocation2 + $0x8] sm:$0x1] %vm1861_vm4, %v5021_v40  ;;  %v1844_v39 = vrot.slane %v5018_v12, 4  ;;  %v1845_v54 = vrot.slane %v5018_v12, 5  ;;  %v1842_v38 = vrot.slane %v5018_v12, 2  ;;  %v2256_v29 = vperm.slane %v5021_v40, 0 }
 0x448   :  { %1934 = vrot.lane.b32.xlu0 %v1874_v30, %s3677_s17  ;;  %1886 = vrot.lane.b32.xlu2 %v1874_v30, %s3678_s18  ;;  %v5034_v35 = vperm.slane %v1841_v32, 0  ;;  %1863 = vst.msk [vmem:[#allocation2 + $0x10] sm:$0x1] %vm1861_vm4, %v1841_v32  ;;  %v5057_v27 = vperm.slane %v1843_v23, 0  ;;  %v5069_v4 = vperm.slane %v1847_v43, 0  ;;  %v1846_v9 = vrot.slane %v5018_v12, 6 }
 0x449   :  { %v1807_v33 = vpop.f32.mrf.mxu2  ;;  %v1830_v53 = vpop.f32.mrf.mxu3  ;;  %1865 = vst.msk [vmem:[#allocation2 + $0x30] sm:$0x1] %vm1861_vm4, %v1843_v23  ;;  %v5089_v37 = vperm.slane %v1844_v39, 0  ;;  %v5096_v36 = vperm.slane %v1845_v54, 0  ;;  %v1876_v14 = vperm.slane %v1842_v38, 0  ;;  %v2225_v11 = vrot.slane %v5021_v40, 2 }
 0x44a   :  { %v1808_v1 = vadd.f32 %v1807_v33, %v4962_v0  ;;  %v1831_v34 = vadd.f32 %v1830_v53, %v4962_v0  ;;  %1888 = vrot.lane.b32.xlu1 %v5034_v35, %s3678_s18  ;;  %1869 = vst.msk [vmem:[#allocation2 + $0x70] sm:$0x1] %vm1861_vm4, %v1847_v43  ;;  %v2228_v56 = vrot.slane %v5021_v40, 5  ;;  %v2224_v10 = vrot.slane %v5021_v40, 1 }
 0x44b   :  { %1866 = vst.msk [vmem:[#allocation2 + $0x40] sm:$0x1] %vm1861_vm4, %v1844_v39  ;;  %v2227_v50 = vrot.slane %v5021_v40, 4  ;;  %v2230_v45 = vrot.slane %v5021_v40, 7  ;;  %v2226_v25 = vrot.slane %v5021_v40, 3  ;;  %v2229_v8 = vrot.slane %v5021_v40, 6 }
 0x44c   :  { %v5046_v24 = vmul.f32 %v1833_v46, %v1808_v1  ;;  %v5048_v58 = vmul.f32 %v1834_v62, %v1831_v34  ;;  %1867 = vst.msk [vmem:[#allocation2 + $0x50] sm:$0x1] %vm1861_vm4, %v1845_v54  ;;  %v5180_v41 = vperm.slane %v1846_v9, 0  ;;  %v5199_v26 = vperm.slane %v2225_v11, 0 }
 0x44d   :  { %1864 = vst.msk [vmem:[#allocation2 + $0x20] sm:$0x1] %vm1861_vm4, %v1842_v38  ;;  %v5212_v22 = vperm.slane %v2228_v56, 0  ;;  %v5247_v16 = vperm.slane %v2224_v10, 0  ;;  %v5260_v32 = vperm.slane %v2227_v50, 0 }
 0x44e   :  { %v1848_v52 = vrot.slane %v5046_v24, 1  ;;  %v1849_v0 = vrot.slane %v5046_v24, 2  ;;  %v1850_v49 = vrot.slane %v5046_v24, 3  ;;  %1870 = vst.msk [vmem:[#allocation2 + $0x80] sm:$0x1] %vm1861_vm4, %v5046_v24  ;;  %v2231_v55 = vrot.slane %v5048_v58, 1 }
 0x44f   :  { %2252 = vst.msk [vmem:[#allocation2 + $0x88] sm:$0x1] %vm1861_vm4, %v5048_v58  ;;  %v2232_v6 = vrot.slane %v5048_v58, 2  ;;  %v2233_v57 = vrot.slane %v5048_v58, 3 }
 0x450   :  { %1871 = vst.msk [vmem:[#allocation2 + $0x90] sm:$0x1] %vm1861_vm4, %v1848_v52  ;;  %1982 = vrot.lane.b32.xlu0 %v1874_v30, %s3672_s5  ;;  %1892 = vrot.lane.b32.xlu2 %v5057_v27, %s3678_s18 }
 0x451   :  { %1872 = vst.msk [vmem:[#allocation2 + $0xa0] sm:$0x1] %vm1861_vm4, %v1849_v0 }
 0x452   :  { %1873 = vst.msk [vmem:[#allocation2 + $0xb0] sm:$0x1] %vm1861_vm4, %v1850_v49  ;;  %1900 = vrot.lane.b32.xlu1 %v5069_v4, %s3678_s18 }
 0x453   :  { %2253 = vst.msk [vmem:[#allocation2 + $0x98] sm:$0x1] %vm1861_vm4, %v2231_v55 }
 0x454   :  { %2254 = vst.msk [vmem:[#allocation2 + $0xa8] sm:$0x1] %vm1861_vm4, %v2232_v6 }
 0x455   :  { %2255 = vst.msk [vmem:[#allocation2 + $0xb8] sm:$0x1] %vm1861_vm4, %v2233_v57 }
 0x456   :  { %1868 = vst.msk [vmem:[#allocation2 + $0x60] sm:$0x1] %vm1861_vm4, %v1846_v9 }
 0x457   :  { %2246 = vst.msk [vmem:[#allocation2 + $0x28] sm:$0x1] %vm1861_vm4, %v2225_v11  ;;  %v5318_v11 = vperm.slane %v2226_v25, 0 }
 0x458   :  { %2030 = vrot.lane.b32.xlu0 %v1874_v30, %s3676_s16  ;;  %1894 = vrot.lane.b32.xlu2 %v5089_v37, %s3678_s18  ;;  %2249 = vst.msk [vmem:[#allocation2 + $0x58] sm:$0x1] %vm1861_vm4, %v2228_v56 }
 0x459   :  { %2245 = vst.msk [vmem:[#allocation2 + $0x18] sm:$0x1] %vm1861_vm4, %v2224_v10 }
 0x45a   :  { %1936 = vrot.lane.b32.xlu1 %v5034_v35, %s3677_s17  ;;  %2248 = vst.msk [vmem:[#allocation2 + $0x48] sm:$0x1] %vm1861_vm4, %v2227_v50 }
 0x45b   :  { %2251 = vst.msk [vmem:[#allocation2 + $0x78] sm:$0x1] %vm1861_vm4, %v2230_v45 }
 0x45c   :  { %2247 = vst.msk [vmem:[#allocation2 + $0x38] sm:$0x1] %vm1861_vm4, %v2226_v25 }
 0x45d   :  { %2250 = vst.msk [vmem:[#allocation2 + $0x68] sm:$0x1] %vm1861_vm4, %v2229_v8 }
 0x460   :  { %2078 = vrot.lane.b32.xlu0 %v1874_v30, %s3675_s15  ;;  %1896 = vrot.lane.b32.xlu2 %v5096_v36, %s3678_s18 }
 0x462   :  { %1942 = vrot.lane.b32.xlu1 %v5089_v37, %s3677_s17 }
 0x468   :  { %2126 = vrot.lane.b32.xlu0 %v1874_v30, %s3673_s7  ;;  %1938 = vrot.lane.b32.xlu2 %v1876_v14, %s3677_s17 }
 0x46a   :  { %1948 = vrot.lane.b32.xlu1 %v5069_v4, %s3677_s17 }
 0x470   :  { %2174 = vrot.lane.b32.xlu0 %v1874_v30, %s3674_s14  ;;  %1944 = vrot.lane.b32.xlu2 %v5096_v36, %s3677_s17 }
 0x472   :  { %1984 = vrot.lane.b32.xlu1 %v5034_v35, %s3672_s5 }
 0x478   :  { %2268 = vrot.lane.b32.xlu0 %v2256_v29, %s3678_s18  ;;  %1986 = vrot.lane.b32.xlu2 %v1876_v14, %s3672_s5 }
 0x47a   :  { %1990 = vrot.lane.b32.xlu1 %v5089_v37, %s3672_s5 }
 0x480   :  { %2316 = vrot.lane.b32.xlu0 %v2256_v29, %s3677_s17  ;;  %1992 = vrot.lane.b32.xlu2 %v5096_v36, %s3672_s5 }
 0x482   :  { %1996 = vrot.lane.b32.xlu1 %v5069_v4, %s3672_s5 }
 0x488   :  { %2364 = vrot.lane.b32.xlu0 %v2256_v29, %s3672_s5  ;;  %2034 = vrot.lane.b32.xlu2 %v1876_v14, %s3676_s16 }
 0x48a   :  { %2032 = vrot.lane.b32.xlu1 %v5034_v35, %s3676_s16 }
 0x490   :  { %2412 = vrot.lane.b32.xlu0 %v2256_v29, %s3676_s16  ;;  %2040 = vrot.lane.b32.xlu2 %v5096_v36, %s3676_s16 }
 0x492   :  { %2038 = vrot.lane.b32.xlu1 %v5089_v37, %s3676_s16 }
 0x498   :  { %2460 = vrot.lane.b32.xlu0 %v2256_v29, %s3675_s15  ;;  %2082 = vrot.lane.b32.xlu2 %v1876_v14, %s3675_s15 }
 0x49a   :  { %2044 = vrot.lane.b32.xlu1 %v5069_v4, %s3676_s16 }
 0x4a0   :  { %2508 = vrot.lane.b32.xlu0 %v2256_v29, %s3673_s7  ;;  %2088 = vrot.lane.b32.xlu2 %v5096_v36, %s3675_s15 }
 0x4a2   :  { %v1887_v20 = vpop.permute.xlu2 %1886  ;;  %2080 = vrot.lane.b32.xlu1 %v5034_v35, %s3675_s15 }
 0x4a3   :  { %1922 = vst.msk [vmem:[#allocation2 + $0x1] sm:$0x1] %vm1861_vm4, %v1887_v20 }
 0x4a8   :  { %2556 = vrot.lane.b32.xlu0 %v2256_v29, %s3674_s14  ;;  %2130 = vrot.lane.b32.xlu2 %v1876_v14, %s3673_s7 }
 0x4aa   :  { %v1893_v63 = vpop.permute.xlu2 %1892  ;;  %2086 = vrot.lane.b32.xlu1 %v5089_v37, %s3675_s15 }
 0x4ab   :  { %1925 = vst.msk [vmem:[#allocation2 + $0x31] sm:$0x1] %vm1861_vm4, %v1893_v63 }
 0x4b0   :  { %2136 = vrot.lane.b32.xlu2 %v5096_v36, %s3673_s7  ;;  %1890 = vrot.lane.b32.xlu0 %v1876_v14, %s3678_s18 }
 0x4b2   :  { %v1895_v17 = vpop.permute.xlu2 %1894  ;;  %2092 = vrot.lane.b32.xlu1 %v5069_v4, %s3675_s15 }
 0x4b3   :  { %1926 = vst.msk [vmem:[#allocation2 + $0x41] sm:$0x1] %vm1861_vm4, %v1895_v17 }
 0x4b8   :  { %2178 = vrot.lane.b32.xlu2 %v1876_v14, %s3674_s14  ;;  %1898 = vrot.lane.b32.xlu0 %v5180_v41, %s3678_s18 }
 0x4ba   :  { %v1935_v5 = vpop.permute.xlu0 %1934  ;;  %v1897_v2 = vpop.permute.xlu2 %1896  ;;  %2128 = vrot.lane.b32.xlu1 %v5034_v35, %s3673_s7 }
 0x4bb   :  { %1970 = vst.msk [vmem:[#allocation2 + $0x2] sm:$0x1] %vm1861_vm4, %v1935_v5 }
 0x4bc   :  { %1927 = vst.msk [vmem:[#allocation2 + $0x51] sm:$0x1] %vm1861_vm4, %v1897_v2  ;;  %v1889_v28 = vpop.permute.xlu1 %1888 }
 0x4bd   :  { %1923 = vst.msk [vmem:[#allocation2 + $0x11] sm:$0x1] %vm1861_vm4, %v1889_v28 }
 0x4c0   :  { %2184 = vrot.lane.b32.xlu2 %v5096_v36, %s3674_s14  ;;  %1940 = vrot.lane.b32.xlu0 %v5057_v27, %s3677_s17 }
 0x4c2   :  { %v1983_v44 = vpop.permute.xlu0 %1982  ;;  %v1939_v61 = vpop.permute.xlu2 %1938  ;;  %2134 = vrot.lane.b32.xlu1 %v5089_v37, %s3673_s7 }
 0x4c3   :  { %2018 = vst.msk [vmem:[#allocation2 + $0x3] sm:$0x1] %vm1861_vm4, %v1983_v44 }
 0x4c4   :  { %1972 = vst.msk [vmem:[#allocation2 + $0x22] sm:$0x1] %vm1861_vm4, %v1939_v61  ;;  %v1901_v48 = vpop.permute.xlu1 %1900 }
 0x4c5   :  { %1929 = vst.msk [vmem:[#allocation2 + $0x71] sm:$0x1] %vm1861_vm4, %v1901_v48 }
 0x4c8   :  { %2272 = vrot.lane.b32.xlu2 %v5199_v26, %s3678_s18  ;;  %1946 = vrot.lane.b32.xlu0 %v5180_v41, %s3677_s17 }
 0x4ca   :  { %v2031_v59 = vpop.permute.xlu0 %2030  ;;  %v1945_v51 = vpop.permute.xlu2 %1944  ;;  %2140 = vrot.lane.b32.xlu1 %v5069_v4, %s3673_s7 }
 0x4cb   :  { %2066 = vst.msk [vmem:[#allocation2 + $0x4] sm:$0x1] %vm1861_vm4, %v2031_v59 }
 0x4cc   :  { %1975 = vst.msk [vmem:[#allocation2 + $0x52] sm:$0x1] %vm1861_vm4, %v1945_v51  ;;  %v1937_v15 = vpop.permute.xlu1 %1936 }
 0x4cd   :  { %1971 = vst.msk [vmem:[#allocation2 + $0x12] sm:$0x1] %vm1861_vm4, %v1937_v15 }
 0x4d0   :  { %2278 = vrot.lane.b32.xlu2 %v5212_v22, %s3678_s18  ;;  %1988 = vrot.lane.b32.xlu0 %v5057_v27, %s3672_s5 }
 0x4d2   :  { %v2079_v13 = vpop.permute.xlu0 %2078  ;;  %v1987_v42 = vpop.permute.xlu2 %1986  ;;  %2176 = vrot.lane.b32.xlu1 %v5034_v35, %s3674_s14  ;;  %v5273_v35 = vperm.slane %v2230_v45, 0  ;;  %v5331_v45 = vperm.slane %v2229_v8, 0 }
 0x4d3   :  { %2114 = vst.msk [vmem:[#allocation2 + $0x5] sm:$0x1] %vm1861_vm4, %v2079_v13 }
 0x4d4   :  { %2020 = vst.msk [vmem:[#allocation2 + $0x23] sm:$0x1] %vm1861_vm4, %v1987_v42  ;;  %v1943_v19 = vpop.permute.xlu1 %1942 }
 0x4d5   :  { %1974 = vst.msk [vmem:[#allocation2 + $0x42] sm:$0x1] %vm1861_vm4, %v1943_v19 }
 0x4d8   :  { %2320 = vrot.lane.b32.xlu2 %v5199_v26, %s3677_s17  ;;  %1994 = vrot.lane.b32.xlu0 %v5180_v41, %s3672_s5 }
 0x4da   :  { %v2127_v21 = vpop.permute.xlu0 %2126  ;;  %v1993_v7 = vpop.permute.xlu2 %1992  ;;  %2182 = vrot.lane.b32.xlu1 %v5089_v37, %s3674_s14 }
 0x4db   :  { %2162 = vst.msk [vmem:[#allocation2 + $0x6] sm:$0x1] %vm1861_vm4, %v2127_v21 }
 0x4dc   :  { %2023 = vst.msk [vmem:[#allocation2 + $0x53] sm:$0x1] %vm1861_vm4, %v1993_v7  ;;  %v1949_v3 = vpop.permute.xlu1 %1948 }
 0x4dd   :  { %1977 = vst.msk [vmem:[#allocation2 + $0x72] sm:$0x1] %vm1861_vm4, %v1949_v3 }
 0x4e0   :  { %2326 = vrot.lane.b32.xlu2 %v5212_v22, %s3677_s17  ;;  %2036 = vrot.lane.b32.xlu0 %v5057_v27, %s3676_s16 }
 0x4e2   :  { %v2175_v31 = vpop.permute.xlu0 %2174  ;;  %v2035_v60 = vpop.permute.xlu2 %2034  ;;  %2188 = vrot.lane.b32.xlu1 %v5069_v4, %s3674_s14 }
 0x4e3   :  { %2210 = vst.msk [vmem:[#allocation2 + $0x7] sm:$0x1] %vm1861_vm4, %v2175_v31 }
 0x4e4   :  { %2068 = vst.msk [vmem:[#allocation2 + $0x24] sm:$0x1] %vm1861_vm4, %v2035_v60  ;;  %v1985_v18 = vpop.permute.xlu1 %1984 }
 0x4e5   :  { %2019 = vst.msk [vmem:[#allocation2 + $0x13] sm:$0x1] %vm1861_vm4, %v1985_v18 }
 0x4e8   :  { %2368 = vrot.lane.b32.xlu2 %v5199_v26, %s3672_s5  ;;  %2042 = vrot.lane.b32.xlu0 %v5180_v41, %s3676_s16 }
 0x4ea   :  { %v2269_v47 = vpop.permute.xlu0 %2268  ;;  %v2041_v12 = vpop.permute.xlu2 %2040  ;;  %2270 = vrot.lane.b32.xlu1 %v5247_v16, %s3678_s18 }
 0x4eb   :  { %2304 = vst.msk [vmem:[#allocation2 + $0x9] sm:$0x1] %vm1861_vm4, %v2269_v47 }
 0x4ec   :  { %2071 = vst.msk [vmem:[#allocation2 + $0x54] sm:$0x1] %vm1861_vm4, %v2041_v12  ;;  %v1991_v30 = vpop.permute.xlu1 %1990  ;;  %v2264_v12 = vperm.slane %v5048_v58, 0 }
 0x4ed   :  { %2022 = vst.msk [vmem:[#allocation2 + $0x43] sm:$0x1] %vm1861_vm4, %v1991_v30 }
 0x4f0   :  { %2374 = vrot.lane.b32.xlu2 %v5212_v22, %s3672_s5  ;;  %2084 = vrot.lane.b32.xlu0 %v5057_v27, %s3675_s15 }
 0x4f2   :  { %v2317_v23 = vpop.permute.xlu0 %2316  ;;  %v2083_v43 = vpop.permute.xlu2 %2082  ;;  %2276 = vrot.lane.b32.xlu1 %v5260_v32, %s3678_s18 }
 0x4f3   :  { %2352 = vst.msk [vmem:[#allocation2 + $0xa] sm:$0x1] %vm1861_vm4, %v2317_v23 }
 0x4f4   :  { %2116 = vst.msk [vmem:[#allocation2 + $0x25] sm:$0x1] %vm1861_vm4, %v2083_v43  ;;  %v1997_v39 = vpop.permute.xlu1 %1996 }
 0x4f5   :  { %2025 = vst.msk [vmem:[#allocation2 + $0x73] sm:$0x1] %vm1861_vm4, %v1997_v39 }
 0x4f8   :  { %2416 = vrot.lane.b32.xlu2 %v5199_v26, %s3676_s16  ;;  %2090 = vrot.lane.b32.xlu0 %v5180_v41, %s3675_s15 }
 0x4fa   :  { %v2365_v54 = vpop.permute.xlu0 %2364  ;;  %v2089_v33 = vpop.permute.xlu2 %2088  ;;  %2282 = vrot.lane.b32.xlu1 %v5273_v35, %s3678_s18 }
 0x4fb   :  { %2400 = vst.msk [vmem:[#allocation2 + $0xb] sm:$0x1] %vm1861_vm4, %v2365_v54 }
 0x4fc   :  { %2119 = vst.msk [vmem:[#allocation2 + $0x55] sm:$0x1] %vm1861_vm4, %v2089_v33  ;;  %v2033_v53 = vpop.permute.xlu1 %2032 }
 0x4fd   :  { %2067 = vst.msk [vmem:[#allocation2 + $0x14] sm:$0x1] %vm1861_vm4, %v2033_v53 }
 0x500   :  { %2422 = vrot.lane.b32.xlu2 %v5212_v22, %s3676_s16  ;;  %2132 = vrot.lane.b32.xlu0 %v5057_v27, %s3673_s7 }
 0x502   :  { %v2413_v38 = vpop.permute.xlu0 %2412  ;;  %v2131_v1 = vpop.permute.xlu2 %2130  ;;  %2318 = vrot.lane.b32.xlu1 %v5247_v16, %s3677_s17 }
 0x503   :  { %2448 = vst.msk [vmem:[#allocation2 + $0xc] sm:$0x1] %vm1861_vm4, %v2413_v38 }
 0x504   :  { %2164 = vst.msk [vmem:[#allocation2 + $0x26] sm:$0x1] %vm1861_vm4, %v2131_v1  ;;  %v2039_v34 = vpop.permute.xlu1 %2038 }
 0x505   :  { %2070 = vst.msk [vmem:[#allocation2 + $0x44] sm:$0x1] %vm1861_vm4, %v2039_v34 }
 0x508   :  { %2464 = vrot.lane.b32.xlu2 %v5199_v26, %s3675_s15  ;;  %2138 = vrot.lane.b32.xlu0 %v5180_v41, %s3673_s7 }
 0x50a   :  { %v2461_v46 = vpop.permute.xlu0 %2460  ;;  %v2137_v62 = vpop.permute.xlu2 %2136  ;;  %2324 = vrot.lane.b32.xlu1 %v5260_v32, %s3677_s17 }
 0x50b   :  { %2496 = vst.msk [vmem:[#allocation2 + $0xd] sm:$0x1] %vm1861_vm4, %v2461_v46  ;;  %v1883_v46 = vperm.slane %v1848_v52, 0 }
 0x50c   :  { %2167 = vst.msk [vmem:[#allocation2 + $0x56] sm:$0x1] %vm1861_vm4, %v2137_v62  ;;  %v2045_v4 = vpop.permute.xlu1 %2044  ;;  %v1884_v62 = vperm.slane %v1849_v0, 0 }
 0x50d   :  { %2073 = vst.msk [vmem:[#allocation2 + $0x74] sm:$0x1] %vm1861_vm4, %v2045_v4 }
 0x510   :  { %2470 = vrot.lane.b32.xlu2 %v5212_v22, %s3675_s15  ;;  %2180 = vrot.lane.b32.xlu0 %v5057_v27, %s3674_s14 }
 0x512   :  { %v2509_v37 = vpop.permute.xlu0 %2508  ;;  %v2179_v36 = vpop.permute.xlu2 %2178  ;;  %2330 = vrot.lane.b32.xlu1 %v5273_v35, %s3677_s17 }
 0x513   :  { %2544 = vst.msk [vmem:[#allocation2 + $0xe] sm:$0x1] %vm1861_vm4, %v2509_v37 }
 0x514   :  { %2212 = vst.msk [vmem:[#allocation2 + $0x27] sm:$0x1] %vm1861_vm4, %v2179_v36  ;;  %v2081_v14 = vpop.permute.xlu1 %2080 }
 0x515   :  { %2115 = vst.msk [vmem:[#allocation2 + $0x15] sm:$0x1] %vm1861_vm4, %v2081_v14 }
 0x518   :  { %2512 = vrot.lane.b32.xlu2 %v5199_v26, %s3673_s7  ;;  %2186 = vrot.lane.b32.xlu0 %v5180_v41, %s3674_s14  ;;  %v1882_v41 = vperm.slane %v5046_v24, 0 }
 0x51a   :  { %v2557_v29 = vpop.permute.xlu0 %2556  ;;  %v2185_v27 = vpop.permute.xlu2 %2184  ;;  %2366 = vrot.lane.b32.xlu1 %v5247_v16, %s3672_s5 }
 0x51b   :  { %2592 = vst.msk [vmem:[#allocation2 + $0xf] sm:$0x1] %vm1861_vm4, %v2557_v29 }
 0x51c   :  { %2215 = vst.msk [vmem:[#allocation2 + $0x57] sm:$0x1] %vm1861_vm4, %v2185_v27  ;;  %v2087_v9 = vpop.permute.xlu1 %2086 }
 0x51d   :  { %2118 = vst.msk [vmem:[#allocation2 + $0x45] sm:$0x1] %vm1861_vm4, %v2087_v9  ;;  %v1885_v9 = vperm.slane %v1850_v49, 0 }
 0x520   :  { %2518 = vrot.lane.b32.xlu2 %v5212_v22, %s3673_s7  ;;  %2274 = vrot.lane.b32.xlu0 %v5318_v11, %s3678_s18 }
 0x522   :  { %v2273_v56 = vpop.permute.xlu2 %2272  ;;  %v1891_v10 = vpop.permute.xlu0 %1890  ;;  %2372 = vrot.lane.b32.xlu1 %v5260_v32, %s3672_s5 }
 0x523   :  { %2306 = vst.msk [vmem:[#allocation2 + $0x29] sm:$0x1] %vm1861_vm4, %v2273_v56 }
 0x524   :  { %1924 = vst.msk [vmem:[#allocation2 + $0x21] sm:$0x1] %vm1861_vm4, %v1891_v10  ;;  %v2093_v50 = vpop.permute.xlu1 %2092 }
 0x525   :  { %2121 = vst.msk [vmem:[#allocation2 + $0x75] sm:$0x1] %vm1861_vm4, %v2093_v50 }
 0x528   :  { %2560 = vrot.lane.b32.xlu2 %v5199_v26, %s3674_s14  ;;  %2280 = vrot.lane.b32.xlu0 %v5331_v45, %s3678_s18 }
 0x52a   :  { %v2279_v25 = vpop.permute.xlu2 %2278  ;;  %v1899_v20 = vpop.permute.xlu0 %1898  ;;  %2378 = vrot.lane.b32.xlu1 %v5273_v35, %s3672_s5 }
 0x52b   :  { %2309 = vst.msk [vmem:[#allocation2 + $0x59] sm:$0x1] %vm1861_vm4, %v2279_v25 }
 0x52c   :  { %1928 = vst.msk [vmem:[#allocation2 + $0x61] sm:$0x1] %vm1861_vm4, %v1899_v20  ;;  %v2129_v63 = vpop.permute.xlu1 %2128 }
 0x52d   :  { %2163 = vst.msk [vmem:[#allocation2 + $0x16] sm:$0x1] %vm1861_vm4, %v2129_v63 }
 0x530   :  { %2566 = vrot.lane.b32.xlu2 %v5212_v22, %s3674_s14  ;;  %2322 = vrot.lane.b32.xlu0 %v5318_v11, %s3677_s17 }
 0x532   :  { %v2321_v40 = vpop.permute.xlu2 %2320  ;;  %v1941_v8 = vpop.permute.xlu0 %1940  ;;  %2414 = vrot.lane.b32.xlu1 %v5247_v16, %s3676_s16 }
 0x533   :  { %2354 = vst.msk [vmem:[#allocation2 + $0x2a] sm:$0x1] %vm1861_vm4, %v2321_v40 }
 0x534   :  { %1973 = vst.msk [vmem:[#allocation2 + $0x32] sm:$0x1] %vm1861_vm4, %v1941_v8  ;;  %v2135_v17 = vpop.permute.xlu1 %2134 }
 0x535   :  { %2166 = vst.msk [vmem:[#allocation2 + $0x46] sm:$0x1] %vm1861_vm4, %v2135_v17  ;;  %v2265_v17 = vperm.slane %v2231_v55, 0 }
 0x538   :  { %1902 = vrot.lane.b32.xlu2 %v1882_v41, %s3678_s18  ;;  %2328 = vrot.lane.b32.xlu0 %v5331_v45, %s3677_s17 }
 0x53a   :  { %v2327_v5 = vpop.permute.xlu2 %2326  ;;  %v1947_v2 = vpop.permute.xlu0 %1946  ;;  %2420 = vrot.lane.b32.xlu1 %v5260_v32, %s3676_s16 }
 0x53b   :  { %2357 = vst.msk [vmem:[#allocation2 + $0x5a] sm:$0x1] %vm1861_vm4, %v2327_v5 }
 0x53c   :  { %1976 = vst.msk [vmem:[#allocation2 + $0x62] sm:$0x1] %vm1861_vm4, %v1947_v2  ;;  %v2141_v28 = vpop.permute.xlu1 %2140 }
 0x53d   :  { %2169 = vst.msk [vmem:[#allocation2 + $0x76] sm:$0x1] %vm1861_vm4, %v2141_v28 }
 0x540   :  { %1950 = vrot.lane.b32.xlu2 %v1882_v41, %s3677_s17  ;;  %2370 = vrot.lane.b32.xlu0 %v5318_v11, %s3672_s5 }
 0x542   :  { %v2369_v44 = vpop.permute.xlu2 %2368  ;;  %v1989_v61 = vpop.permute.xlu0 %1988  ;;  %2426 = vrot.lane.b32.xlu1 %v5273_v35, %s3676_s16 }
 0x543   :  { %2402 = vst.msk [vmem:[#allocation2 + $0x2b] sm:$0x1] %vm1861_vm4, %v2369_v44 }
 0x544   :  { %2021 = vst.msk [vmem:[#allocation2 + $0x33] sm:$0x1] %vm1861_vm4, %v1989_v61  ;;  %v2177_v48 = vpop.permute.xlu1 %2176 }
 0x545   :  { %2211 = vst.msk [vmem:[#allocation2 + $0x17] sm:$0x1] %vm1861_vm4, %v2177_v48 }
 0x548   :  { %1998 = vrot.lane.b32.xlu2 %v1882_v41, %s3672_s5  ;;  %2376 = vrot.lane.b32.xlu0 %v5331_v45, %s3672_s5 }
 0x54a   :  { %v2375_v26 = vpop.permute.xlu2 %2374  ;;  %v1995_v59 = vpop.permute.xlu0 %1994  ;;  %2462 = vrot.lane.b32.xlu1 %v5247_v16, %s3675_s15 }
 0x54b   :  { %2405 = vst.msk [vmem:[#allocation2 + $0x5b] sm:$0x1] %vm1861_vm4, %v2375_v26 }
 0x54c   :  { %2024 = vst.msk [vmem:[#allocation2 + $0x63] sm:$0x1] %vm1861_vm4, %v1995_v59  ;;  %v2183_v51 = vpop.permute.xlu1 %2182  ;;  %v2267_v59 = vperm.slane %v2233_v57, 0 }
 0x54d   :  { %2214 = vst.msk [vmem:[#allocation2 + $0x47] sm:$0x1] %vm1861_vm4, %v2183_v51 }
 0x550   :  { %2046 = vrot.lane.b32.xlu2 %v1882_v41, %s3676_s16  ;;  %2418 = vrot.lane.b32.xlu0 %v5318_v11, %s3676_s16 }
 0x552   :  { %v2417_v15 = vpop.permute.xlu2 %2416  ;;  %v2037_v22 = vpop.permute.xlu0 %2036  ;;  %2468 = vrot.lane.b32.xlu1 %v5260_v32, %s3675_s15 }
 0x553   :  { %2450 = vst.msk [vmem:[#allocation2 + $0x2c] sm:$0x1] %vm1861_vm4, %v2417_v15 }
 0x554   :  { %2069 = vst.msk [vmem:[#allocation2 + $0x34] sm:$0x1] %vm1861_vm4, %v2037_v22  ;;  %v2189_v13 = vpop.permute.xlu1 %2188 }
 0x555   :  { %2217 = vst.msk [vmem:[#allocation2 + $0x77] sm:$0x1] %vm1861_vm4, %v2189_v13 }
 0x558   :  { %2094 = vrot.lane.b32.xlu2 %v1882_v41, %s3675_s15  ;;  %2424 = vrot.lane.b32.xlu0 %v5331_v45, %s3676_s16 }
 0x55a   :  { %v2423_v42 = vpop.permute.xlu2 %2422  ;;  %v2043_v19 = vpop.permute.xlu0 %2042  ;;  %2474 = vrot.lane.b32.xlu1 %v5273_v35, %s3675_s15 }
 0x55b   :  { %2453 = vst.msk [vmem:[#allocation2 + $0x5c] sm:$0x1] %vm1861_vm4, %v2423_v42 }
 0x55c   :  { %2072 = vst.msk [vmem:[#allocation2 + $0x64] sm:$0x1] %vm1861_vm4, %v2043_v19  ;;  %v2271_v21 = vpop.permute.xlu1 %2270 }
 0x55d   :  { %2305 = vst.msk [vmem:[#allocation2 + $0x19] sm:$0x1] %vm1861_vm4, %v2271_v21 }
 0x560   :  { %2142 = vrot.lane.b32.xlu2 %v1882_v41, %s3673_s7  ;;  %2466 = vrot.lane.b32.xlu0 %v5318_v11, %s3675_s15 }
 0x562   :  { %v2465_v7 = vpop.permute.xlu2 %2464  ;;  %v2085_v3 = vpop.permute.xlu0 %2084  ;;  %2510 = vrot.lane.b32.xlu1 %v5247_v16, %s3673_s7 }
 0x563   :  { %2498 = vst.msk [vmem:[#allocation2 + $0x2d] sm:$0x1] %vm1861_vm4, %v2465_v7 }
 0x564   :  { %2117 = vst.msk [vmem:[#allocation2 + $0x35] sm:$0x1] %vm1861_vm4, %v2085_v3  ;;  %v2277_v31 = vpop.permute.xlu1 %2276 }
 0x565   :  { %2308 = vst.msk [vmem:[#allocation2 + $0x49] sm:$0x1] %vm1861_vm4, %v2277_v31 }
 0x568   :  { %2190 = vrot.lane.b32.xlu2 %v1882_v41, %s3674_s14  ;;  %2472 = vrot.lane.b32.xlu0 %v5331_v45, %s3675_s15  ;;  %v2266_v41 = vperm.slane %v2232_v6, 0 }
 0x56a   :  { %v2471_v60 = vpop.permute.xlu2 %2470  ;;  %v2091_v18 = vpop.permute.xlu0 %2090  ;;  %2516 = vrot.lane.b32.xlu1 %v5260_v32, %s3673_s7 }
 0x56b   :  { %2501 = vst.msk [vmem:[#allocation2 + $0x5d] sm:$0x1] %vm1861_vm4, %v2471_v60 }
 0x56c   :  { %2120 = vst.msk [vmem:[#allocation2 + $0x65] sm:$0x1] %vm1861_vm4, %v2091_v18  ;;  %v2283_v47 = vpop.permute.xlu1 %2282 }
 0x56d   :  { %2311 = vst.msk [vmem:[#allocation2 + $0x79] sm:$0x1] %vm1861_vm4, %v2283_v47 }
 0x570   :  { %2284 = vrot.lane.b32.xlu2 %v2264_v12, %s3678_s18  ;;  %2514 = vrot.lane.b32.xlu0 %v5318_v11, %s3673_s7 }
 0x572   :  { %v2513_v30 = vpop.permute.xlu2 %2512  ;;  %v2133_v23 = vpop.permute.xlu0 %2132  ;;  %2522 = vrot.lane.b32.xlu1 %v5273_v35, %s3673_s7 }
 0x573   :  { %2546 = vst.msk [vmem:[#allocation2 + $0x2e] sm:$0x1] %vm1861_vm4, %v2513_v30 }
 0x574   :  { %2165 = vst.msk [vmem:[#allocation2 + $0x36] sm:$0x1] %vm1861_vm4, %v2133_v23  ;;  %v2319_v43 = vpop.permute.xlu1 %2318 }
 0x575   :  { %2353 = vst.msk [vmem:[#allocation2 + $0x1a] sm:$0x1] %vm1861_vm4, %v2319_v43 }
 0x578   :  { %2332 = vrot.lane.b32.xlu2 %v2264_v12, %s3677_s17  ;;  %2520 = vrot.lane.b32.xlu0 %v5331_v45, %s3673_s7 }
 0x57a   :  { %v2519_v39 = vpop.permute.xlu2 %2518  ;;  %v2139_v54 = vpop.permute.xlu0 %2138  ;;  %2558 = vrot.lane.b32.xlu1 %v5247_v16, %s3674_s14 }
 0x57b   :  { %2549 = vst.msk [vmem:[#allocation2 + $0x5e] sm:$0x1] %vm1861_vm4, %v2519_v39 }
 0x57c   :  { %2168 = vst.msk [vmem:[#allocation2 + $0x66] sm:$0x1] %vm1861_vm4, %v2139_v54  ;;  %v2325_v33 = vpop.permute.xlu1 %2324 }
 0x57d   :  { %2356 = vst.msk [vmem:[#allocation2 + $0x4a] sm:$0x1] %vm1861_vm4, %v2325_v33 }
 0x580   :  { %2380 = vrot.lane.b32.xlu2 %v2264_v12, %s3672_s5  ;;  %2562 = vrot.lane.b32.xlu0 %v5318_v11, %s3674_s14 }
 0x582   :  { %v2561_v53 = vpop.permute.xlu2 %2560  ;;  %v2181_v38 = vpop.permute.xlu0 %2180  ;;  %2564 = vrot.lane.b32.xlu1 %v5260_v32, %s3674_s14 }
 0x583   :  { %2594 = vst.msk [vmem:[#allocation2 + $0x2f] sm:$0x1] %vm1861_vm4, %v2561_v53 }
 0x584   :  { %2213 = vst.msk [vmem:[#allocation2 + $0x37] sm:$0x1] %vm1861_vm4, %v2181_v38  ;;  %v2331_v16 = vpop.permute.xlu1 %2330 }
 0x585   :  { %2359 = vst.msk [vmem:[#allocation2 + $0x7a] sm:$0x1] %vm1861_vm4, %v2331_v16  ;;  %v2604_v16 = vld [vmem:[#allocation2] sm:$0xff] }
 0x588   :  { %2428 = vrot.lane.b32.xlu2 %v2264_v12, %s3676_s16  ;;  %2568 = vrot.lane.b32.xlu0 %v5331_v45, %s3674_s14 }
 0x58a   :  { %v2567_v1 = vpop.permute.xlu2 %2566  ;;  %v2187_v34 = vpop.permute.xlu0 %2186  ;;  %2570 = vrot.lane.b32.xlu1 %v5273_v35, %s3674_s14 }
 0x58b   :  { %2597 = vst.msk [vmem:[#allocation2 + $0x5f] sm:$0x1] %vm1861_vm4, %v2567_v1  ;;  %v2605_v1 = vld [vmem:[#allocation2 + $0x8] sm:$0xff] }
 0x58c   :  { %2216 = vst.msk [vmem:[#allocation2 + $0x67] sm:$0x1] %vm1861_vm4, %v2187_v34  ;;  %v2367_v32 = vpop.permute.xlu1 %2366  ;;  %v2628_v34 = vsel %vm6258_vm0, %v2604_v16, 0.0 }
 0x58d   :  { %2401 = vst.msk [vmem:[#allocation2 + $0x1b] sm:$0x1] %vm1861_vm4, %v2367_v32 }
 0x590   :  { %2476 = vrot.lane.b32.xlu2 %v2264_v12, %s3675_s15  ;;  %1904 = vrot.lane.b32.xlu0 %v1883_v46, %s3678_s18 }
 0x592   :  { %v1903_v4 = vpop.permute.xlu2 %1902  ;;  %v2275_v37 = vpop.permute.xlu0 %2274  ;;  %1906 = vrot.lane.b32.xlu1 %v1884_v62, %s3678_s18 }
 0x593   :  { %1930 = vst.msk [vmem:[#allocation2 + $0x81] sm:$0x1] %vm1861_vm4, %v1903_v4 }
 0x594   :  { %2307 = vst.msk [vmem:[#allocation2 + $0x39] sm:$0x1] %vm1861_vm4, %v2275_v37  ;;  %v2373_v35 = vpop.permute.xlu1 %2372 }
 0x595   :  { %2404 = vst.msk [vmem:[#allocation2 + $0x4b] sm:$0x1] %vm1861_vm4, %v2373_v35  ;;  %v2608_v35 = vld [vmem:[#allocation2 + $0x20] sm:$0xff] }
 0x598   :  { %2524 = vrot.lane.b32.xlu2 %v2264_v12, %s3673_s7  ;;  %1952 = vrot.lane.b32.xlu0 %v1883_v46, %s3677_s17 }
 0x59a   :  { %v1951_v52 = vpop.permute.xlu2 %1950  ;;  %v2281_v0 = vpop.permute.xlu0 %2280  ;;  %1954 = vrot.lane.b32.xlu1 %v1884_v62, %s3677_s17 }
 0x59b   :  { %1978 = vst.msk [vmem:[#allocation2 + $0x82] sm:$0x1] %vm1861_vm4, %v1951_v52 }
 0x59c   :  { %2310 = vst.msk [vmem:[#allocation2 + $0x69] sm:$0x1] %vm1861_vm4, %v2281_v0  ;;  %v2379_v36 = vpop.permute.xlu1 %2378 }
 0x59d   :  { %2407 = vst.msk [vmem:[#allocation2 + $0x7b] sm:$0x1] %vm1861_vm4, %v2379_v36 }
 0x5a0   :  { %2572 = vrot.lane.b32.xlu2 %v2264_v12, %s3674_s14  ;;  %2000 = vrot.lane.b32.xlu0 %v1883_v46, %s3672_s5 }
 0x5a2   :  { %v1999_v14 = vpop.permute.xlu2 %1998  ;;  %v2323_v29 = vpop.permute.xlu0 %2322  ;;  %2002 = vrot.lane.b32.xlu1 %v1884_v62, %s3672_s5 }
 0x5a3   :  { %2026 = vst.msk [vmem:[#allocation2 + $0x83] sm:$0x1] %vm1861_vm4, %v1999_v14  ;;  %v2640_v14 = vsel %vm6258_vm0, %v2608_v35, 0.0 }
 0x5a4   :  { %2355 = vst.msk [vmem:[#allocation2 + $0x3a] sm:$0x1] %vm1861_vm4, %v2323_v29  ;;  %v2415_v27 = vpop.permute.xlu1 %2414 }
 0x5a5   :  { %2449 = vst.msk [vmem:[#allocation2 + $0x1c] sm:$0x1] %vm1861_vm4, %v2415_v27  ;;  %v2610_v27 = vld [vmem:[#allocation2 + $0x30] sm:$0xff] }
 0x5a8   :  { %1908 = vrot.lane.b32.xlu2 %v1885_v9, %s3678_s18  ;;  %2048 = vrot.lane.b32.xlu0 %v1883_v46, %s3676_s16 }
 0x5aa   :  { %v2047_v11 = vpop.permute.xlu2 %2046  ;;  %v2329_v56 = vpop.permute.xlu0 %2328  ;;  %2050 = vrot.lane.b32.xlu1 %v1884_v62, %s3676_s16 }
 0x5ab   :  { %2074 = vst.msk [vmem:[#allocation2 + $0x84] sm:$0x1] %vm1861_vm4, %v2047_v11  ;;  %v2646_v11 = vsel %vm6258_vm0, %v2610_v27, 0.0 }
 0x5ac   :  { %2358 = vst.msk [vmem:[#allocation2 + $0x6a] sm:$0x1] %vm1861_vm4, %v2329_v56  ;;  %v2421_v10 = vpop.permute.xlu1 %2420 }
 0x5ad   :  { %2452 = vst.msk [vmem:[#allocation2 + $0x4c] sm:$0x1] %vm1861_vm4, %v2421_v10 }
 0x5b0   :  { %1956 = vrot.lane.b32.xlu2 %v1885_v9, %s3677_s17  ;;  %2096 = vrot.lane.b32.xlu0 %v1883_v46, %s3675_s15 }
 0x5b2   :  { %v2095_v24 = vpop.permute.xlu2 %2094  ;;  %v2371_v49 = vpop.permute.xlu0 %2370  ;;  %2098 = vrot.lane.b32.xlu1 %v1884_v62, %s3675_s15 }
 0x5b3   :  { %2122 = vst.msk [vmem:[#allocation2 + $0x85] sm:$0x1] %vm1861_vm4, %v2095_v24 }
 0x5b4   :  { %2403 = vst.msk [vmem:[#allocation2 + $0x3b] sm:$0x1] %vm1861_vm4, %v2371_v49  ;;  %v2427_v50 = vpop.permute.xlu1 %2426 }
 0x5b5   :  { %2455 = vst.msk [vmem:[#allocation2 + $0x7c] sm:$0x1] %vm1861_vm4, %v2427_v50  ;;  %v2606_v50 = vld [vmem:[#allocation2 + $0x10] sm:$0xff] }
 0x5b8   :  { %2004 = vrot.lane.b32.xlu2 %v1885_v9, %s3672_s5  ;;  %2144 = vrot.lane.b32.xlu0 %v1883_v46, %s3673_s7 }
 0x5ba   :  { %v2143_v45 = vpop.permute.xlu2 %2142  ;;  %v2377_v25 = vpop.permute.xlu0 %2376  ;;  %2146 = vrot.lane.b32.xlu1 %v1884_v62, %s3673_s7 }
 0x5bb   :  { %2170 = vst.msk [vmem:[#allocation2 + $0x86] sm:$0x1] %vm1861_vm4, %v2143_v45 }
 0x5bc   :  { %2406 = vst.msk [vmem:[#allocation2 + $0x6b] sm:$0x1] %vm1861_vm4, %v2377_v25  ;;  %v2463_v20 = vpop.permute.xlu1 %2462  ;;  %v2634_v25 = vsel %vm6258_vm0, %v2606_v50, 0.0 }
 0x5bd   :  { %2497 = vst.msk [vmem:[#allocation2 + $0x1d] sm:$0x1] %vm1861_vm4, %v2463_v20  ;;  %v2614_v20 = vld [vmem:[#allocation2 + $0x50] sm:$0xff] }
 0x5c0   :  { %2052 = vrot.lane.b32.xlu2 %v1885_v9, %s3676_s16  ;;  %2192 = vrot.lane.b32.xlu0 %v1883_v46, %s3674_s14 }
 0x5c2   :  { %v2191_v63 = vpop.permute.xlu2 %2190  ;;  %v2419_v40 = vpop.permute.xlu0 %2418  ;;  %2194 = vrot.lane.b32.xlu1 %v1884_v62, %s3674_s14  ;;  %v2631_v62 = vsel %vm6258_vm0, %v2605_v1, 0.0 }
 0x5c3   :  { %2218 = vst.msk [vmem:[#allocation2 + $0x87] sm:$0x1] %vm1861_vm4, %v2191_v63 }
 0x5c4   :  { %2451 = vst.msk [vmem:[#allocation2 + $0x3c] sm:$0x1] %vm1861_vm4, %v2419_v40  ;;  %v2469_v8 = vpop.permute.xlu1 %2468 }
 0x5c5   :  { %2500 = vst.msk [vmem:[#allocation2 + $0x4d] sm:$0x1] %vm1861_vm4, %v2469_v8 }
 0x5c8   :  { %2100 = vrot.lane.b32.xlu2 %v1885_v9, %s3675_s15  ;;  %2286 = vrot.lane.b32.xlu0 %v2265_v17, %s3678_s18 }
 0x5ca   :  { %v2285_v5 = vpop.permute.xlu2 %2284  ;;  %v2425_v2 = vpop.permute.xlu0 %2424  ;;  %2288 = vrot.lane.b32.xlu1 %v2266_v41, %s3678_s18 }
 0x5cb   :  { %2312 = vst.msk [vmem:[#allocation2 + $0x89] sm:$0x1] %vm1861_vm4, %v2285_v5  ;;  %v2609_v5 = vld [vmem:[#allocation2 + $0x28] sm:$0xff] }
 0x5cc   :  { %2454 = vst.msk [vmem:[#allocation2 + $0x6c] sm:$0x1] %vm1861_vm4, %v2425_v2  ;;  %v2475_v28 = vpop.permute.xlu1 %2474  ;;  %v2616_v2 = vld [vmem:[#allocation2 + $0x60] sm:$0xff] }
 0x5cd   :  { %2503 = vst.msk [vmem:[#allocation2 + $0x7d] sm:$0x1] %vm1861_vm4, %v2475_v28  ;;  %v2643_v28 = vsel %vm6258_vm0, %v2609_v5, 0.0 }
 0x5d0   :  { %2148 = vrot.lane.b32.xlu2 %v1885_v9, %s3673_s7  ;;  %2334 = vrot.lane.b32.xlu0 %v2265_v17, %s3677_s17 }
 0x5d2   :  { %v2333_v55 = vpop.permute.xlu2 %2332  ;;  %v2467_v6 = vpop.permute.xlu0 %2466  ;;  %2336 = vrot.lane.b32.xlu1 %v2266_v41, %s3677_s17 }
 0x5d3   :  { %2360 = vst.msk [vmem:[#allocation2 + $0x8a] sm:$0x1] %vm1861_vm4, %v2333_v55 }
 0x5d4   :  { %2499 = vst.msk [vmem:[#allocation2 + $0x3d] sm:$0x1] %vm1861_vm4, %v2467_v6  ;;  %v2511_v44 = vpop.permute.xlu1 %2510  ;;  %v2664_v6 = vsel %vm6258_vm0, %v2616_v2, 0.0 }
 0x5d5   :  { %2545 = vst.msk [vmem:[#allocation2 + $0x1e] sm:$0x1] %vm1861_vm4, %v2511_v44 }
 0x5d8   :  { %2196 = vrot.lane.b32.xlu2 %v1885_v9, %s3674_s14  ;;  %2382 = vrot.lane.b32.xlu0 %v2265_v17, %s3672_s5 }
 0x5da   :  { %v2381_v61 = vpop.permute.xlu2 %2380  ;;  %v2473_v48 = vpop.permute.xlu0 %2472  ;;  %2384 = vrot.lane.b32.xlu1 %v2266_v41, %s3672_s5 }
 0x5db   :  { %2408 = vst.msk [vmem:[#allocation2 + $0x8b] sm:$0x1] %vm1861_vm4, %v2381_v61 }
 0x5dc   :  { %2502 = vst.msk [vmem:[#allocation2 + $0x6d] sm:$0x1] %vm1861_vm4, %v2473_v48  ;;  %v2517_v26 = vpop.permute.xlu1 %2516 }
 0x5dd   :  { %2548 = vst.msk [vmem:[#allocation2 + $0x4e] sm:$0x1] %vm1861_vm4, %v2517_v26 }
 0x5e0   :  { %2290 = vrot.lane.b32.xlu2 %v2267_v59, %s3678_s18  ;;  %2430 = vrot.lane.b32.xlu0 %v2265_v17, %s3676_s16 }
 0x5e2   :  { %v2429_v51 = vpop.permute.xlu2 %2428  ;;  %v2515_v15 = vpop.permute.xlu0 %2514  ;;  %2432 = vrot.lane.b32.xlu1 %v2266_v41, %s3676_s16 }
 0x5e3   :  { %2456 = vst.msk [vmem:[#allocation2 + $0x8c] sm:$0x1] %vm1861_vm4, %v2429_v51 }
 0x5e4   :  { %2547 = vst.msk [vmem:[#allocation2 + $0x3e] sm:$0x1] %vm1861_vm4, %v2515_v15  ;;  %v2523_v22 = vpop.permute.xlu1 %2522 }
 0x5e5   :  { %2551 = vst.msk [vmem:[#allocation2 + $0x7e] sm:$0x1] %vm1861_vm4, %v2523_v22  ;;  %v2620_v22 = vld [vmem:[#allocation2 + $0x80] sm:$0xff] }
 0x5e8   :  { %2338 = vrot.lane.b32.xlu2 %v2267_v59, %s3677_s17  ;;  %2478 = vrot.lane.b32.xlu0 %v2265_v17, %s3675_s15 }
 0x5ea   :  { %v2477_v58 = vpop.permute.xlu2 %2476  ;;  %v2521_v57 = vpop.permute.xlu0 %2520  ;;  %2480 = vrot.lane.b32.xlu1 %v2266_v41, %s3675_s15 }
 0x5eb   :  { %2504 = vst.msk [vmem:[#allocation2 + $0x8d] sm:$0x1] %vm1861_vm4, %v2477_v58 }
 0x5ec   :  { %2550 = vst.msk [vmem:[#allocation2 + $0x6e] sm:$0x1] %vm1861_vm4, %v2521_v57  ;;  %v2559_v13 = vpop.permute.xlu1 %2558 }
 0x5ed   :  { %2593 = vst.msk [vmem:[#allocation2 + $0x1f] sm:$0x1] %vm1861_vm4, %v2559_v13 }
 0x5f0   :  { %2386 = vrot.lane.b32.xlu2 %v2267_v59, %s3672_s5  ;;  %2526 = vrot.lane.b32.xlu0 %v2265_v17, %s3673_s7 }
 0x5f2   :  { %v2525_v42 = vpop.permute.xlu2 %2524  ;;  %v2563_v19 = vpop.permute.xlu0 %2562  ;;  %2528 = vrot.lane.b32.xlu1 %v2266_v41, %s3673_s7 }
 0x5f3   :  { %2552 = vst.msk [vmem:[#allocation2 + $0x8e] sm:$0x1] %vm1861_vm4, %v2525_v42  ;;  %v2676_v42 = vsel %vm6258_vm0, %v2620_v22, 0.0 }
 0x5f4   :  { %2595 = vst.msk [vmem:[#allocation2 + $0x3f] sm:$0x1] %vm1861_vm4, %v2563_v19  ;;  %v2565_v21 = vpop.permute.xlu1 %2564  ;;  %v2607_v37 = vld [vmem:[#allocation2 + $0x18] sm:$0xff] }
 0x5f5   :  { %2596 = vst.msk [vmem:[#allocation2 + $0x4f] sm:$0x1] %vm1861_vm4, %v2565_v21  ;;  %v2637_v52 = vsel %vm6258_vm0, %v2607_v37, 0.0  ;;  %v2615_v21 = vld [vmem:[#allocation2 + $0x58] sm:$0xff] }
 0x5f8   :  { %2434 = vrot.lane.b32.xlu2 %v2267_v59, %s3676_s16  ;;  %2574 = vrot.lane.b32.xlu0 %v2265_v17, %s3674_s14  ;;  %v2658_v17 = vsel %vm6258_vm0, %v2614_v20, 0.0 }
 0x5fa   :  { %v2573_v7 = vpop.permute.xlu2 %2572  ;;  %v2569_v3 = vpop.permute.xlu0 %2568  ;;  %2576 = vrot.lane.b32.xlu1 %v2266_v41, %s3674_s14 }
 0x5fb   :  { %2600 = vst.msk [vmem:[#allocation2 + $0x8f] sm:$0x1] %vm1861_vm4, %v2573_v7  ;;  %v2611_v9 = vld [vmem:[#allocation2 + $0x38] sm:$0xff] }
 0x5fc   :  { %2598 = vst.msk [vmem:[#allocation2 + $0x6f] sm:$0x1] %vm1861_vm4, %v2569_v3  ;;  %v2571_v31 = vpop.permute.xlu1 %2570  ;;  %v2649_v24 = vsel %vm6258_vm0, %v2611_v9, 0.0  ;;  %v2613_v45 = vld [vmem:[#allocation2 + $0x48] sm:$0xff]  ;;  %v2661_v3 = vsel %vm6258_vm0, %v2615_v21, 0.0 }
 0x5fd   :  { %2599 = vst.msk [vmem:[#allocation2 + $0x7f] sm:$0x1] %vm1861_vm4, %v2571_v31  ;;  %v2655_v63 = vsel %vm6258_vm0, %v2613_v45, 0.0 }
 0x600   :  { %2482 = vrot.lane.b32.xlu2 %v2267_v59, %s3675_s15 }
 0x602   :  { %v1909_v60 = vpop.permute.xlu2 %1908  ;;  %v1905_v18 = vpop.permute.xlu0 %1904 }
 0x603   :  { %1933 = vst.msk [vmem:[#allocation2 + $0xb1] sm:$0x1] %vm1861_vm4, %v1909_v60  ;;  %v2617_v55 = vld [vmem:[#allocation2 + $0x68] sm:$0xff] }
 0x604   :  { %1931 = vst.msk [vmem:[#allocation2 + $0x91] sm:$0x1] %vm1861_vm4, %v1905_v18  ;;  %v1907_v47 = vpop.permute.xlu1 %1906  ;;  %v2667_v48 = vsel %vm6258_vm0, %v2617_v55, 0.0  ;;  %v2619_v51 = vld [vmem:[#allocation2 + $0x78] sm:$0xff] }
 0x605   :  { %1932 = vst.msk [vmem:[#allocation2 + $0xa1] sm:$0x1] %vm1861_vm4, %v1907_v47  ;;  %v2673_v58 = vsel %vm6258_vm0, %v2619_v51, 0.0 }
 0x608   :  { %2530 = vrot.lane.b32.xlu2 %v2267_v59, %s3673_s7 }
 0x60a   :  { %v1957_v12 = vpop.permute.xlu2 %1956  ;;  %v1953_v30 = vpop.permute.xlu0 %1952 }
 0x60b   :  { %1981 = vst.msk [vmem:[#allocation2 + $0xb2] sm:$0x1] %vm1861_vm4, %v1957_v12  ;;  %v2618_v12 = vld [vmem:[#allocation2 + $0x70] sm:$0xff] }
 0x60c   :  { %1979 = vst.msk [vmem:[#allocation2 + $0x92] sm:$0x1] %vm1861_vm4, %v1953_v30  ;;  %v1955_v23 = vpop.permute.xlu1 %1954  ;;  %v2670_v30 = vsel %vm6258_vm0, %v2618_v12, 0.0 }
 0x60d   :  { %1980 = vst.msk [vmem:[#allocation2 + $0xa2] sm:$0x1] %vm1861_vm4, %v1955_v23 }
 0x610   :  { %2578 = vrot.lane.b32.xlu2 %v2267_v59, %s3674_s14  ;;  %v2612_v59 = vld [vmem:[#allocation2 + $0x40] sm:$0xff] }
 0x611   :  { %v2652_v15 = vsel %vm6258_vm0, %v2612_v59, 0.0 }
 0x612   :  { %v2005_v43 = vpop.permute.xlu2 %2004  ;;  %v2001_v39 = vpop.permute.xlu0 %2000 }
 0x613   :  { %2029 = vst.msk [vmem:[#allocation2 + $0xb3] sm:$0x1] %vm1861_vm4, %v2005_v43 }
 0x614   :  { %2027 = vst.msk [vmem:[#allocation2 + $0x93] sm:$0x1] %vm1861_vm4, %v2001_v39  ;;  %v2003_v54 = vpop.permute.xlu1 %2002 }
 0x615   :  { %2028 = vst.msk [vmem:[#allocation2 + $0xa3] sm:$0x1] %vm1861_vm4, %v2003_v54  ;;  %v2621_v54 = vld [vmem:[#allocation2 + $0x88] sm:$0xff] }
 0x61a   :  { %v2053_v33 = vpop.permute.xlu2 %2052  ;;  %v2049_v53 = vpop.permute.xlu0 %2048 }
 0x61b   :  { %2077 = vst.msk [vmem:[#allocation2 + $0xb4] sm:$0x1] %vm1861_vm4, %v2053_v33  ;;  %v2679_v33 = vsel %vm6258_vm0, %v2621_v54, 0.0 }
 0x61c   :  { %2075 = vst.msk [vmem:[#allocation2 + $0x94] sm:$0x1] %vm1861_vm4, %v2049_v53  ;;  %v2051_v38 = vpop.permute.xlu1 %2050 }
 0x61d   :  { %2076 = vst.msk [vmem:[#allocation2 + $0xa4] sm:$0x1] %vm1861_vm4, %v2051_v38 }
 0x622   :  { %v2101_v32 = vpop.permute.xlu2 %2100  ;;  %2629 = vadd.xlane.f32.xlu0 %v2628_v34  ;;  %v2097_v46 = vpop.permute.xlu0 %2096 }
 0x623   :  { %2125 = vst.msk [vmem:[#allocation2 + $0xb5] sm:$0x1] %vm1861_vm4, %v2101_v32 }
 0x624   :  { %2123 = vst.msk [vmem:[#allocation2 + $0x95] sm:$0x1] %vm1861_vm4, %v2097_v46  ;;  %2632 = vadd.xlane.f32.xlu1 %v2631_v62  ;;  %v2099_v4 = vpop.permute.xlu1 %2098 }
 0x625   :  { %2124 = vst.msk [vmem:[#allocation2 + $0xa5] sm:$0x1] %vm1861_vm4, %v2099_v4 }
 0x62a   :  { %v2149_v0 = vpop.permute.xlu2 %2148  ;;  %v2145_v36 = vpop.permute.xlu0 %2144  ;;  %2638 = vadd.xlane.f32.xlu0 %v2637_v52 }
 0x62b   :  { %2173 = vst.msk [vmem:[#allocation2 + $0xb6] sm:$0x1] %vm1861_vm4, %v2149_v0 }
 0x62c   :  { %2171 = vst.msk [vmem:[#allocation2 + $0x96] sm:$0x1] %vm1861_vm4, %v2145_v36  ;;  %2641 = vadd.xlane.f32.xlu1 %v2640_v14  ;;  %v2147_v29 = vpop.permute.xlu1 %2146 }
 0x62d   :  { %2172 = vst.msk [vmem:[#allocation2 + $0xa6] sm:$0x1] %vm1861_vm4, %v2147_v29 }
 0x632   :  { %v2197_v56 = vpop.permute.xlu2 %2196  ;;  %v2193_v10 = vpop.permute.xlu0 %2192  ;;  %2647 = vadd.xlane.f32.xlu0 %v2646_v11 }
 0x633   :  { %2221 = vst.msk [vmem:[#allocation2 + $0xb7] sm:$0x1] %vm1861_vm4, %v2197_v56  ;;  %v3681_v56 = vmov 16.0  }
 0x634   :  { %2219 = vst.msk [vmem:[#allocation2 + $0x97] sm:$0x1] %vm1861_vm4, %v2193_v10  ;;  %2650 = vadd.xlane.f32.xlu1 %v2649_v24  ;;  %v2195_v49 = vpop.permute.xlu1 %2194  ;;  %3597 = vrcp.f32 %v3681_v56 }
 0x635   :  { %2220 = vst.msk [vmem:[#allocation2 + $0xa7] sm:$0x1] %vm1861_vm4, %v2195_v49 }
 0x639   :  { %2635 = vadd.xlane.f32.xlu2 %v2634_v25 }
 0x63a   :  { %v2291_v40 = vpop.permute.xlu2 %2290  ;;  %v2287_v8 = vpop.permute.xlu0 %2286  ;;  %2656 = vadd.xlane.f32.xlu0 %v2655_v63  ;;  %v2626_v14 = vld [vmem:[#allocation2 + $0xb0] sm:$0xff] }
 0x63b   :  { %2315 = vst.msk [vmem:[#allocation2 + $0xb9] sm:$0x1] %vm1861_vm4, %v2291_v40  ;;  %v2622_v7 = vld [vmem:[#allocation2 + $0x90] sm:$0xff]  ;;  %v2694_v29 = vsel %vm6258_vm0, %v2626_v14, 0.0  ;;  %v3598_v24 = vpop.eup %3597 }
 0x63c   :  { %2313 = vst.msk [vmem:[#allocation2 + $0x99] sm:$0x1] %vm1861_vm4, %v2287_v8  ;;  %2659 = vadd.xlane.f32.xlu1 %v2658_v17  ;;  %v2289_v41 = vpop.permute.xlu1 %2288  ;;  %v2682_v31 = vsel %vm6258_vm0, %v2622_v7, 0.0  ;;  %v2624_v1 = vld [vmem:[#allocation2 + $0xa0] sm:$0xff]  ;;  %v2701_v50 = vmul.f32 16.0, %v3598_v24  ;;  %vm2705_vm6 = vweird.f32 %v3598_v24 }
 0x63d   :  { %2314 = vst.msk [vmem:[#allocation2 + $0xa9] sm:$0x1] %vm1861_vm4, %v2289_v41  ;;  %v2688_v34 = vsel %vm6258_vm0, %v2624_v1, 0.0  ;;  %v2779_v41 = vlaneseq }
 0x63e   :  { %v2702_v25 = vsub.f32 1.0, %v2701_v50 }
 0x640   :  { %v2703_v63 = vmul.f32 %v3598_v24, %v2702_v25 }
 0x641   :  { %2644 = vadd.xlane.f32.xlu2 %v2643_v28 }
 0x642   :  { %v2339_v44 = vpop.permute.xlu2 %2338  ;;  %v2335_v61 = vpop.permute.xlu0 %2334  ;;  %2665 = vadd.xlane.f32.xlu0 %v2664_v6  ;;  %v2704_v17 = vadd.f32 %v3598_v24, %v2703_v63 }
 0x643   :  { %2363 = vst.msk [vmem:[#allocation2 + $0xba] sm:$0x1] %vm1861_vm4, %v2339_v44 }
 0x644   :  { %2361 = vst.msk [vmem:[#allocation2 + $0x9a] sm:$0x1] %vm1861_vm4, %v2335_v61  ;;  %2668 = vadd.xlane.f32.xlu1 %v2667_v48  ;;  %v2337_v26 = vpop.permute.xlu1 %2336  ;;  %v5606_v2 = vsel %vm2705_vm6, %v3598_v24, %v2704_v17  ;;  %v5610_v61 = vand.u32 127, %v2779_v41 }
 0x645   :  { %2362 = vst.msk [vmem:[#allocation2 + $0xaa] sm:$0x1] %vm1861_vm4, %v2337_v26 }
 0x646   :  { %6337 = vst [vmem:[#allocation10_spill] sm:$0xff] %v5610_v61 }
 0x649   :  { %2653 = vadd.xlane.f32.xlu2 %v2652_v15 }
 0x64a   :  { %v2387_v57 = vpop.permute.xlu2 %2386  ;;  %v2383_v13 = vpop.permute.xlu0 %2382  ;;  %2674 = vadd.xlane.f32.xlu0 %v2673_v58 }
 0x64b   :  { %2411 = vst.msk [vmem:[#allocation2 + $0xbb] sm:$0x1] %vm1861_vm4, %v2387_v57  ;;  %v5622_v57 = vadd.s32 4294967288, %v5610_v61 }
 0x64c   :  { %2409 = vst.msk [vmem:[#allocation2 + $0x9b] sm:$0x1] %vm1861_vm4, %v2383_v13  ;;  %2677 = vadd.xlane.f32.xlu1 %v2676_v42  ;;  %v2385_v19 = vpop.permute.xlu1 %2384 }
 0x64d   :  { %2410 = vst.msk [vmem:[#allocation2 + $0xab] sm:$0x1] %vm1861_vm4, %v2385_v19 }
 0x64e   :  { %6338 = vst [vmem:[#allocation12_spill] sm:$0xff] %v5622_v57 }
 0x651   :  { %2662 = vadd.xlane.f32.xlu2 %v2661_v3 }
 0x652   :  { %v2435_v60 = vpop.permute.xlu2 %2434  ;;  %v2431_v18 = vpop.permute.xlu0 %2430  ;;  %2683 = vadd.xlane.f32.xlu0 %v2682_v31 }
 0x653   :  { %2459 = vst.msk [vmem:[#allocation2 + $0xbc] sm:$0x1] %vm1861_vm4, %v2435_v60 }
 0x654   :  { %2457 = vst.msk [vmem:[#allocation2 + $0x9c] sm:$0x1] %vm1861_vm4, %v2431_v18  ;;  %v2433_v47 = vpop.permute.xlu1 %2432 }
 0x655   :  { %2458 = vst.msk [vmem:[#allocation2 + $0xac] sm:$0x1] %vm1861_vm4, %v2433_v47 }
 0x659   :  { %2671 = vadd.xlane.f32.xlu2 %v2670_v30 }
 0x65a   :  { %v2483_v23 = vpop.permute.xlu2 %2482  ;;  %v2479_v43 = vpop.permute.xlu0 %2478 }
 0x65b   :  { %2507 = vst.msk [vmem:[#allocation2 + $0xbd] sm:$0x1] %vm1861_vm4, %v2483_v23 }
 0x65c   :  { %2505 = vst.msk [vmem:[#allocation2 + $0x9d] sm:$0x1] %vm1861_vm4, %v2479_v43  ;;  %v2481_v39 = vpop.permute.xlu1 %2480 }
 0x65d   :  { %2506 = vst.msk [vmem:[#allocation2 + $0xad] sm:$0x1] %vm1861_vm4, %v2481_v39 }
 0x661   :  { %2680 = vadd.xlane.f32.xlu2 %v2679_v33 }
 0x662   :  { %v2531_v53 = vpop.permute.xlu2 %2530  ;;  %v2527_v38 = vpop.permute.xlu0 %2526 }
 0x663   :  { %2555 = vst.msk [vmem:[#allocation2 + $0xbe] sm:$0x1] %vm1861_vm4, %v2531_v53 }
 0x664   :  { %2553 = vst.msk [vmem:[#allocation2 + $0x9e] sm:$0x1] %vm1861_vm4, %v2527_v38  ;;  %v2529_v16 = vpop.permute.xlu1 %2528 }
 0x665   :  { %2554 = vst.msk [vmem:[#allocation2 + $0xae] sm:$0x1] %vm1861_vm4, %v2529_v16 }
 0x669   :  { %2689 = vadd.xlane.f32.xlu2 %v2688_v34 }
 0x66a   :  { %v2579_v32 = vpop.permute.xlu2 %2578  ;;  %v2575_v46 = vpop.permute.xlu0 %2574 }
 0x66b   :  { %2603 = vst.msk [vmem:[#allocation2 + $0xbf] sm:$0x1] %vm1861_vm4, %v2579_v32 }
 0x66c   :  { %2601 = vst.msk [vmem:[#allocation2 + $0x9f] sm:$0x1] %vm1861_vm4, %v2575_v46  ;;  %v2577_v62 = vpop.permute.xlu1 %2576 }
 0x66d   :  { %2602 = vst.msk [vmem:[#allocation2 + $0xaf] sm:$0x1] %vm1861_vm4, %v2577_v62 }
 0x672   :  { %v2627_v4 = vld [vmem:[#allocation2 + $0xb8] sm:$0xff] }
 0x673   :  { %v2623_v37 = vld [vmem:[#allocation2 + $0x98] sm:$0xff]  ;;  %v2697_v35 = vsel %vm6258_vm0, %v2627_v4, 0.0 }
 0x674   :  { %v2685_v52 = vsel %vm6258_vm0, %v2623_v37, 0.0  ;;  %2698 = vadd.xlane.f32.xlu2 %v2697_v35  ;;  %v2625_v0 = vld [vmem:[#allocation2 + $0xa8] sm:$0xff] }
 0x675   :  { %2686 = vadd.xlane.f32.xlu1 %v2685_v52  ;;  %v2691_v36 = vsel %vm6258_vm0, %v2625_v0, 0.0 }
 0x676   :  { %2692 = vadd.xlane.f32.xlu0 %v2691_v36 }
 0x67d   :  { %2695 = vadd.xlane.f32.xlu1 %v2694_v29 }
 0x695   :  { %v2630_v27 = vpop.xlane.xlu0 %2629 }
 0x696   :  { %v2707_v59 = vmul.f32 %v5606_v2, %v2630_v27 }
 0x697   :  { %v2633_v9 = vpop.xlane.xlu1 %2632 }
 0x698   :  { %v2708_v48 = vmul.f32 %v5606_v2, %v2633_v9  ;;  %v5629_v21 = vmul.f32 20.0, %v2707_v59 }
 0x69a   :  { %v5624_v13 = vmul.f32 20.0, %v2708_v48  ;;  %v2781_v53 = vperm.slane %v5629_v21, %v5610_v61 }
 0x69c   :  { %v2783_v43 = vperm.slane %v5624_v13, %v5622_v57 }
 0x69d   :  { %v2639_v11 = vpop.xlane.xlu0 %2638 }
 0x69e   :  { %v2710_v26 = vmul.f32 %v5606_v2, %v2639_v11  ;;  %v2785_v0 = vsel %vm2784_vm12, %v2783_v43, %v2781_v53 }
 0x69f   :  { %v2642_v10 = vpop.xlane.xlu1 %2641 }
 0x6a0   :  { %v2711_v51 = vmul.f32 %v5606_v2, %v2642_v10  ;;  %v5626_v42 = vmul.f32 20.0, %v2710_v26 }
 0x6a2   :  { %v5631_v7 = vmul.f32 20.0, %v2711_v51  ;;  %v2787_v39 = vperm.slane %v5626_v42, %v5622_v57 }
 0x6a4   :  { %v2789_v38 = vperm.slane %v5631_v7, %v5610_v61 }
 0x6a5   :  { %v2648_v49 = vpop.xlane.xlu0 %2647 }
 0x6a6   :  { %v2713_v31 = vmul.f32 %v5606_v2, %v2648_v49 }
 0x6a7   :  { %v2651_v20 = vpop.xlane.xlu1 %2650 }
 0x6a8   :  { %v2714_v19 = vmul.f32 %v5606_v2, %v2651_v20  ;;  %v5656_v32 = vmul.f32 20.0, %v2713_v31 }
 0x6aa   :  { %v5646_v54 = vmul.f32 20.0, %v2714_v19  ;;  %v2792_v56 = vperm.slane %v5656_v32, %v5610_v61 }
 0x6ac   :  { %v2636_v45 = vpop.xlane.xlu2 %2635  ;;  %v2793_v36 = vperm.slane %v5646_v54, %v5622_v57 }
 0x6ad   :  { %v2657_v40 = vpop.xlane.xlu0 %2656  ;;  %v2709_v28 = vmul.f32 %v5606_v2, %v2636_v45 }
 0x6ae   :  { %v2716_v3 = vmul.f32 %v5606_v2, %v2657_v40  ;;  %v2794_v25 = vsel %vm2784_vm12, %v2793_v36, %v2792_v56 }
 0x6af   :  { %v2660_v5 = vpop.xlane.xlu1 %2659  ;;  %v5616_v15 = vmul.f32 20.0, %v2709_v28 }
 0x6b0   :  { %v2717_v18 = vmul.f32 %v5606_v2, %v2660_v5  ;;  %v5653_v16 = vmul.f32 20.0, %v2716_v3 }
 0x6b1   :  { %v2786_v60 = vperm.slane %v5616_v15, %v5610_v61 }
 0x6b2   :  { %v5659_v62 = vmul.f32 20.0, %v2717_v18  ;;  %v2796_v9 = vperm.slane %v5653_v16, %v5622_v57 }
 0x6b3   :  { %v2788_v46 = vsel %vm2784_vm12, %v2787_v39, %v2786_v60 }
 0x6b4   :  { %v2645_v8 = vpop.xlane.xlu2 %2644  ;;  %v2819_v27 = vsel %vm6265_vm8, %v2788_v46, %v2785_v0  ;;  %v2798_v10 = vperm.slane %v5659_v62, %v5610_v61 }
 0x6b5   :  { %v2712_v55 = vmul.f32 %v5606_v2, %v2645_v8  ;;  %v2666_v6 = vpop.xlane.xlu0 %2665 }
 0x6b6   :  { %v2719_v35 = vmul.f32 %v5606_v2, %v2666_v6 }
 0x6b7   :  { %v5618_v22 = vmul.f32 20.0, %v2712_v55  ;;  %v2669_v47 = vpop.xlane.xlu1 %2668 }
 0x6b8   :  { %v2720_v1 = vmul.f32 %v5606_v2, %v2669_v47  ;;  %v5683_v49 = vmul.f32 20.0, %v2719_v35 }
 0x6b9   :  { %v2790_v12 = vperm.slane %v5618_v22, %v5622_v57 }
 0x6ba   :  { %v5676_v11 = vmul.f32 20.0, %v2720_v1  ;;  %v2801_v28 = vperm.slane %v5683_v49, %v5610_v61 }
 0x6bb   :  { %v2791_v37 = vsel %vm2784_vm12, %v2790_v12, %v2789_v38 }
 0x6bc   :  { %v2654_v44 = vpop.xlane.xlu2 %2653  ;;  %v2820_v24 = vsel %vm6264_vm7, %v2791_v37, %v2819_v27  ;;  %v2802_v8 = vperm.slane %v5676_v11, %v5622_v57 }
 0x6bd   :  { %v2715_v58 = vmul.f32 %v5606_v2, %v2654_v44  ;;  %v2675_v34 = vpop.xlane.xlu0 %2674  ;;  %v2821_v17 = vsel %vm6263_vm9, %v2794_v25, %v2820_v24 }
 0x6be   :  { %v2722_v14 = vmul.f32 %v5606_v2, %v2675_v34  ;;  %v2803_v48 = vsel %vm2784_vm12, %v2802_v8, %v2801_v28 }
 0x6bf   :  { %v5640_v30 = vmul.f32 20.0, %v2715_v58  ;;  %v2678_v3 = vpop.xlane.xlu1 %2677 }
 0x6c0   :  { %v5687_v20 = vmul.f32 20.0, %v2722_v14 }
 0x6c1   :  { %v2795_v52 = vperm.slane %v5640_v30, %v5610_v61 }
 0x6c2   :  { %v2805_v6 = vperm.slane %v5687_v20, %v5622_v57 }
 0x6c3   :  { %v2797_v50 = vsel %vm2784_vm12, %v2796_v9, %v2795_v52 }
 0x6c4   :  { %v2663_v23 = vpop.xlane.xlu2 %2662  ;;  %v2822_v5 = vsel %vm6262_vm11, %v2797_v50, %v2821_v17 }
 0x6c5   :  { %v2718_v33 = vmul.f32 %v5606_v2, %v2663_v23  ;;  %v2684_v31 = vpop.xlane.xlu0 %2683  ;;  %v2723_v23 = vmul.f32 %v5606_v2, %v2678_v3 }
 0x6c6   :  { %v2725_v18 = vmul.f32 %v5606_v2, %v2684_v31 }
 0x6c7   :  { %v5661_v4 = vmul.f32 20.0, %v2718_v33  ;;  %v5723_v35 = vmul.f32 20.0, %v2723_v23 }
 0x6c8   :  { %v5715_v1 = vmul.f32 20.0, %v2725_v18 }
 0x6c9   :  { %v2799_v29 = vperm.slane %v5661_v4, %v5622_v57  ;;  %v2807_v56 = vperm.slane %v5723_v35, %v5610_v61 }
 0x6ca   :  { %v2810_v14 = vperm.slane %v5715_v1, %v5610_v61 }
 0x6cb   :  { %v2800_v63 = vsel %vm2784_vm12, %v2799_v29, %v2798_v10 }
 0x6cc   :  { %v2672_v45 = vpop.xlane.xlu2 %2671  ;;  %v2823_v55 = vsel %vm6261_vm15, %v2800_v63, %v2822_v5 }
 0x6cd   :  { %v2721_v40 = vmul.f32 %v5606_v2, %v2672_v45  ;;  %v2824_v59 = vsel %vm6260_vm2, %v2803_v48, %v2823_v55 }
 0x6cf   :  { %v5694_v41 = vmul.f32 20.0, %v2721_v40 }
 0x6d1   :  { %v2804_v44 = vperm.slane %v5694_v41, %v5610_v61 }
 0x6d3   :  { %v2806_v26 = vsel %vm2784_vm12, %v2805_v6, %v2804_v44 }
 0x6d4   :  { %v2825_v51 = vsel %vm6259_vm13, %v2806_v26, %v2824_v59  ;;  %v2681_v19 = vpop.xlane.xlu2 %2680 }
 0x6d5   :  { %v2831_v58 = vsel %vm6258_vm0, %v2825_v51, -inf  ;;  %v2724_v47 = vmul.f32 %v5606_v2, %v2681_v19 }
 0x6d6   :  { %2832 = vmax.xlane.f32.xlu0 %v2831_v58 }
 0x6d7   :  { %v5717_v34 = vmul.f32 20.0, %v2724_v47 }
 0x6d9   :  { %v2808_v29 = vperm.slane %v5717_v34, %v5622_v57 }
 0x6db   :  { %v2809_v25 = vsel %vm2784_vm12, %v2808_v29, %v2807_v56 }
 0x6dc   :  { %v2690_v60 = vpop.xlane.xlu2 %2689 }
 0x6dd   :  { %v2727_v33 = vmul.f32 %v5606_v2, %v2690_v60 }
 0x6df   :  { %v5728_v36 = vmul.f32 20.0, %v2727_v33 }
 0x6e1   :  { %v2813_v45 = vperm.slane %v5728_v36, %v5610_v61 }
 0x6e7   :  { %v2699_v53 = vpop.xlane.xlu2 %2698 }
 0x6e8   :  { %v2687_v12 = vpop.xlane.xlu1 %2686  ;;  %v2730_v0 = vmul.f32 %v5606_v2, %v2699_v53 }
 0x6e9   :  { %v2726_v43 = vmul.f32 %v5606_v2, %v2687_v12  ;;  %v2693_v39 = vpop.xlane.xlu0 %2692 }
 0x6ea   :  { %v2728_v38 = vmul.f32 %v5606_v2, %v2693_v39  ;;  %v5739_v24 = vmul.f32 20.0, %v2730_v0 }
 0x6eb   :  { %v5719_v46 = vmul.f32 20.0, %v2726_v43 }
 0x6ec   :  { %v5721_v37 = vmul.f32 20.0, %v2728_v38  ;;  %v2817_v17 = vperm.slane %v5739_v24, %v5622_v57 }
 0x6ed   :  { %v2811_v52 = vperm.slane %v5719_v46, %v5622_v57 }
 0x6ee   :  { %v2814_v27 = vperm.slane %v5721_v37, %v5622_v57 }
 0x6ef   :  { %v2812_v10 = vsel %vm2784_vm12, %v2811_v52, %v2810_v14 }
 0x6f0   :  { %v2696_v9 = vpop.xlane.xlu1 %2695  ;;  %v2815_v40 = vsel %vm2784_vm12, %v2814_v27, %v2813_v45  ;;  %v2826_v8 = vsel %vm6265_vm8, %v2812_v10, %v2809_v25 }
 0x6f1   :  { %v2729_v50 = vmul.f32 %v5606_v2, %v2696_v9  ;;  %v2827_v2 = vsel %vm6264_vm7, %v2815_v40, %v2826_v8 }
 0x6f3   :  { %v5745_v63 = vmul.f32 20.0, %v2729_v50 }
 0x6f5   :  { %v2816_v5 = vperm.slane %v5745_v63, %v5610_v61 }
 0x6f7   :  { %v2818_v28 = vsel %vm2784_vm12, %v2817_v17, %v2816_v5 }
 0x6f8   :  { %v2828_v55 = vsel %vm6263_vm9, %v2818_v28, %v2827_v2 }
 0x6f9   :  { %v2834_v6 = vsel %vm6339_vm3, %v2828_v55, -inf }
 0x6fa   :  { %2835 = vmax.xlane.f32.xlu1 %v2834_v6 }
 0x749   :  { %v5757_v44 = vpop.xlane.xlu0 %2832 }
 0x74a   :  { %v2839_v48 = vperm.slane %v5757_v44, 0  ;;  %v2840_v26 = vperm.slane %v5757_v44, 1  ;;  %v2841_v19 = vperm.slane %v5757_v44, 2  ;;  %v2843_v3 = vperm.slane %v5757_v44, 4 }
 0x74b   :  { %v2842_v39 = vperm.slane %v5757_v44, 3  ;;  %v2846_v0 = vperm.slane %v5757_v44, 7  ;;  %v2845_v25 = vperm.slane %v5757_v44, 6 }
 0x74c   :  { %v2863_v59 = vsub.f32 %v5629_v21, %v2839_v48  ;;  %v2864_v51 = vsub.f32 %v5624_v13, %v2839_v48  ;;  %v2865_v58 = vsub.f32 %v5616_v15, %v2840_v26  ;;  %v2866_v47 = vsub.f32 %v5626_v42, %v2840_v26 }
 0x74d   :  { %v2871_v12 = vsub.f32 %v5640_v30, %v2843_v3  ;;  %v2867_v23 = vsub.f32 %v5631_v7, %v2841_v19  ;;  %v2844_v13 = vperm.slane %v5757_v44, 5  ;;  %v2868_v30 = vsub.f32 %v5618_v22, %v2841_v19 }
 0x74e   :  { %v2887_v31 = vmul.f32 1.442695, %v2863_v59  ;;  %v2889_v60 = vmul.f32 1.442695, %v2864_v51  ;;  %v2891_v18 = vmul.f32 1.442695, %v2865_v58  ;;  %v2869_v38 = vsub.f32 %v5656_v32, %v2842_v39 }
 0x74f   :  { %v2893_v21 = vmul.f32 1.442695, %v2866_v47  ;;  %v2903_v15 = vmul.f32 1.442695, %v2871_v12  ;;  %v2895_v33 = vmul.f32 1.442695, %v2867_v23  ;;  %v2874_v7 = vsub.f32 %v5661_v4, %v2844_v13 }
 0x750   :  { %3599 = vpow2.f32 %v2887_v31  ;;  %v2897_v52 = vmul.f32 1.442695, %v2868_v30  ;;  %v2899_v27 = vmul.f32 1.442695, %v2869_v38  ;;  %v2870_v4 = vsub.f32 %v5646_v54, %v2842_v39 }
 0x751   :  { %3601 = vpow2.f32 %v2889_v60  ;;  %v2909_v14 = vmul.f32 1.442695, %v2874_v7  ;;  %v2877_v32 = vsub.f32 %v5694_v41, %v2846_v0  ;;  %v2872_v56 = vsub.f32 %v5653_v16, %v2843_v3 }
 0x752   :  { %3603 = vpow2.f32 %v2891_v18  ;;  %v2901_v10 = vmul.f32 1.442695, %v2870_v4  ;;  %v2873_v41 = vsub.f32 %v5659_v62, %v2844_v13  ;;  %v2875_v16 = vsub.f32 %v5683_v49, %v2845_v25 }
 0x753   :  { %3605 = vpow2.f32 %v2893_v21  ;;  %v2915_v50 = vmul.f32 1.442695, %v2877_v32  ;;  %v2905_v40 = vmul.f32 1.442695, %v2872_v56  ;;  %v2876_v26 = vsub.f32 %v5676_v11, %v2845_v25 }
 0x754   :  { %3607 = vpow2.f32 %v2903_v15  ;;  %v2907_v5 = vmul.f32 1.442695, %v2873_v41  ;;  %v2911_v55 = vmul.f32 1.442695, %v2875_v16  ;;  %v2878_v59 = vsub.f32 %v5687_v20, %v2846_v0 }
 0x755   :  { %3609 = vpow2.f32 %v2895_v33  ;;  %v2913_v51 = vmul.f32 1.442695, %v2876_v26 }
 0x756   :  { %v5770_v43 = vpop.eup %3599  ;;  %3611 = vpow2.f32 %v2897_v52  ;;  %v2917_v19 = vmul.f32 1.442695, %v2878_v59 }
 0x757   :  { %v5773_v53 = vpop.eup %3601  ;;  %2960 = vperm.xlu2 %3542, %v5770_v43   ;;  %3613 = vpow2.f32 %v2909_v14 }
 0x758   :  { %v5776_v42 = vpop.eup %3603  ;;  %2963 = vperm.xlu0 %3543, %v5773_v53   ;;  %3615 = vpow2.f32 %v2899_v27 }
 0x759   :  { %2966 = vperm.xlu1 %3544, %v5776_v42   ;;  %v5784_v29 = vpop.eup %3605  ;;  %3617 = vpow2.f32 %v2901_v10 }
 0x75a   :  { %v5786_v9 = vpop.eup %3607  ;;  %3619 = vpow2.f32 %v2915_v50 }
 0x75b   :  { %v5789_v22 = vpop.eup %3609  ;;  %3621 = vpow2.f32 %v2905_v40 }
 0x75c   :  { %v5796_v45 = vpop.eup %3611  ;;  %3623 = vpow2.f32 %v2907_v5 }
 0x75d   :  { %v5799_v8 = vpop.eup %3613  ;;  %3625 = vpow2.f32 %v2911_v55 }
 0x75e   :  { %v5802_v54 = vpop.eup %3615 }
 0x75f   :  { %2969 = vperm.xlu2 %3542, %v5784_v29   ;;  %v5808_v2 = vpop.eup %3617 }
 0x760   :  { %2984 = vperm.xlu0 %3543, %v5786_v9   ;;  %v5811_v44 = vpop.eup %3619 }
 0x761   :  { %2972 = vperm.xlu1 %3544, %v5789_v22   ;;  %v5814_v48 = vpop.eup %3621 }
 0x762   :  { %v5821_v58 = vpop.eup %3623 }
 0x763   :  { %v5824_v11 = vpop.eup %3625 }
 0x767   :  { %2975 = vperm.xlu2 %3542, %v5796_v45  }
 0x768   :  { %2993 = vperm.xlu0 %3543, %v5799_v8  }
 0x769   :  { %2978 = vperm.xlu1 %3544, %v5802_v54  }
 0x76d   :  { %v2836_v17 = vpop.xlane.xlu1 %2835 }
 0x76e   :  { %v2847_v28 = vperm.slane %v2836_v17, 0  ;;  %v2849_v62 = vperm.slane %v2836_v17, 2  ;;  %v2848_v3 = vperm.slane %v2836_v17, 1  ;;  %v2850_v31 = vperm.slane %v2836_v17, 3 }
 0x76f   :  { %2981 = vperm.xlu2 %3542, %v5808_v2  }
 0x770   :  { %v2880_v6 = vsub.f32 %v5717_v34, %v2847_v28  ;;  %3002 = vperm.xlu0 %3543, %v5811_v44   ;;  %v2883_v34 = vsub.f32 %v5728_v36, %v2849_v62  ;;  %v2879_v18 = vsub.f32 %v5723_v35, %v2847_v28  ;;  %v2881_v20 = vsub.f32 %v5715_v1, %v2848_v3 }
 0x771   :  { %2987 = vperm.xlu1 %3544, %v5814_v48   ;;  %v2886_v36 = vsub.f32 %v5739_v24, %v2850_v31  ;;  %v2882_v15 = vsub.f32 %v5719_v46, %v2848_v3  ;;  %v2884_v1 = vsub.f32 %v5721_v37, %v2849_v62  ;;  %v2885_v46 = vsub.f32 %v5745_v63, %v2850_v31 }
 0x772   :  { %v2921_v49 = vmul.f32 1.442695, %v2880_v6  ;;  %v2927_v60 = vmul.f32 1.442695, %v2883_v34  ;;  %v2919_v12 = vmul.f32 1.442695, %v2879_v18 }
 0x773   :  { %v2923_v21 = vmul.f32 1.442695, %v2881_v20  ;;  %v2933_v13 = vmul.f32 1.442695, %v2886_v36  ;;  %v2925_v24 = vmul.f32 1.442695, %v2882_v15 }
 0x774   :  { %3627 = vpow2.f32 %v2921_v49  ;;  %v2929_v30 = vmul.f32 1.442695, %v2884_v1  ;;  %v2931_v37 = vmul.f32 1.442695, %v2885_v46 }
 0x775   :  { %3629 = vpow2.f32 %v2913_v51 }
 0x776   :  { %3631 = vpow2.f32 %v2917_v19 }
 0x777   :  { %2990 = vperm.xlu2 %3542, %v5821_v58   ;;  %3633 = vpow2.f32 %v2927_v60 }
 0x778   :  { %3635 = vpow2.f32 %v2919_v12 }
 0x779   :  { %2996 = vperm.xlu1 %3544, %v5824_v11   ;;  %3637 = vpow2.f32 %v2923_v21 }
 0x77a   :  { %v5827_v47 = vpop.eup %3627  ;;  %3639 = vpow2.f32 %v2933_v13 }
 0x77b   :  { %3011 = vperm.xlu0 %3543, %v5827_v47   ;;  %v5833_v23 = vpop.eup %3629  ;;  %3641 = vpow2.f32 %v2925_v24 }
 0x77c   :  { %v5836_v35 = vpop.eup %3631  ;;  %3643 = vpow2.f32 %v2929_v30 }
 0x77d   :  { %v5839_v39 = vpop.eup %3633  ;;  %3645 = vpow2.f32 %v2931_v37 }
 0x77e   :  { %v5844_v33 = vpop.eup %3635 }
 0x77f   :  { %2999 = vperm.xlu2 %3542, %v5833_v23   ;;  %v5847_v7 = vpop.eup %3637 }
 0x780   :  { %v5850_v38 = vpop.eup %3639 }
 0x781   :  { %3005 = vperm.xlu1 %3544, %v5836_v35   ;;  %v5854_v52 = vpop.eup %3641 }
 0x782   :  { %v5857_v0 = vpop.eup %3643 }
 0x783   :  { %3020 = vperm.xlu0 %3543, %v5839_v39   ;;  %v5860_v14 = vpop.eup %3645 }
 0x787   :  { %3008 = vperm.xlu2 %3542, %v5844_v33  }
 0x789   :  { %3014 = vperm.xlu1 %3544, %v5847_v7  }
 0x78b   :  { %3029 = vperm.xlu0 %3543, %v5850_v38  }
 0x78f   :  { %3017 = vperm.xlu2 %3542, %v5854_v52  }
 0x791   :  { %3023 = vperm.xlu1 %3544, %v5857_v0  }
 0x797   :  { %3026 = vperm.xlu2 %3542, %v5860_v14  }
 0x7b1   :  { %v2961_v63 = vpop.permute.xlu2 %2960 }
 0x7b2   :  { %v3031_v26 = vperm.slane %v2961_v63, %v5610_v61 }
 0x7b9   :  { %v2970_v27 = vpop.permute.xlu2 %2969 }
 0x7ba   :  { %v3035_v49 = vperm.slane %v2970_v27, %v5622_v57 }
 0x7c1   :  { %v2976_v4 = vpop.permute.xlu2 %2975 }
 0x7c2   :  { %v3038_v34 = vperm.slane %v2976_v4, %v5622_v57 }
 0x7c9   :  { %v2982_v10 = vpop.permute.xlu2 %2981 }
 0x7ca   :  { %v2964_v32 = vpop.permute.xlu0 %2963  ;;  %v3041_v60 = vperm.slane %v2982_v10, %v5622_v57 }
 0x7cb   :  { %v2967_v56 = vpop.permute.xlu1 %2966  ;;  %v3032_v55 = vperm.slane %v2964_v32, %v5622_v57 }
 0x7cc   :  { %v3034_v6 = vperm.slane %v2967_v56, %v5610_v61 }
 0x7cd   :  { %v3033_v3 = vsel %vm2784_vm12, %v3032_v55, %v3031_v26 }
 0x7ce   :  { %v3036_v31 = vsel %vm2784_vm12, %v3035_v49, %v3034_v6 }
 0x7cf   :  { %v3067_v13 = vsel %vm6265_vm8, %v3036_v31, %v3033_v3 }
 0x7d1   :  { %v2991_v40 = vpop.permute.xlu2 %2990 }
 0x7d2   :  { %v2985_v50 = vpop.permute.xlu0 %2984  ;;  %v3046_v63 = vperm.slane %v2991_v40, %v5610_v61 }
 0x7d3   :  { %v2973_v25 = vpop.permute.xlu1 %2972  ;;  %v3043_v20 = vperm.slane %v2985_v50, %v5610_v61 }
 0x7d4   :  { %v3037_v62 = vperm.slane %v2973_v25, %v5610_v61 }
 0x7d6   :  { %v3039_v36 = vsel %vm2784_vm12, %v3038_v34, %v3037_v62 }
 0x7d7   :  { %v3068_v24 = vsel %vm6264_vm7, %v3039_v36, %v3067_v13 }
 0x7d9   :  { %v3000_v5 = vpop.permute.xlu2 %2999 }
 0x7da   :  { %v2994_v41 = vpop.permute.xlu0 %2993  ;;  %v3050_v37 = vperm.slane %v3000_v5, %v5622_v57 }
 0x7db   :  { %v2979_v16 = vpop.permute.xlu1 %2978  ;;  %v3047_v30 = vperm.slane %v2994_v41, %v5622_v57 }
 0x7dc   :  { %v3040_v59 = vperm.slane %v2979_v16, %v5610_v61 }
 0x7dd   :  { %v3048_v56 = vsel %vm2784_vm12, %v3047_v30, %v3046_v63 }
 0x7de   :  { %v3042_v12 = vsel %vm2784_vm12, %v3041_v60, %v3040_v59 }
 0x7df   :  { %v3069_v46 = vsel %vm6263_vm9, %v3042_v12, %v3068_v24 }
 0x7e1   :  { %v3009_v21 = vpop.permute.xlu2 %3008 }
 0x7e2   :  { %v3003_v28 = vpop.permute.xlu0 %3002  ;;  %v3055_v34 = vperm.slane %v3009_v21, %v5610_v61 }
 0x7e3   :  { %v2988_v17 = vpop.permute.xlu1 %2987  ;;  %v3052_v10 = vperm.slane %v3003_v28, %v5610_v61 }
 0x7e4   :  { %v3044_v51 = vperm.slane %v2988_v17, %v5622_v57 }
 0x7e6   :  { %v3045_v15 = vsel %vm2784_vm12, %v3044_v51, %v3043_v20 }
 0x7e7   :  { %v3070_v27 = vsel %vm6262_vm11, %v3045_v15, %v3069_v46 }
 0x7e8   :  { %v3071_v25 = vsel %vm6261_vm15, %v3048_v56, %v3070_v27 }
 0x7e9   :  { %v3018_v5 = vpop.permute.xlu2 %3017 }
 0x7ea   :  { %v3059_v28 = vperm.slane %v3018_v5, %v5622_v57 }
 0x7eb   :  { %v2997_v19 = vpop.permute.xlu1 %2996 }
 0x7ec   :  { %v3049_v1 = vperm.slane %v2997_v19, %v5610_v61 }
 0x7ed   :  { %v3012_v18 = vpop.permute.xlu0 %3011 }
 0x7ee   :  { %v3051_v4 = vsel %vm2784_vm12, %v3050_v37, %v3049_v1  ;;  %v3056_v49 = vperm.slane %v3012_v18, %v5622_v57 }
 0x7ef   :  { %v3072_v17 = vsel %vm6260_vm2, %v3051_v4, %v3071_v25 }
 0x7f0   :  { %v3057_v20 = vsel %vm2784_vm12, %v3056_v49, %v3055_v34 }
 0x7f1   :  { %v3027_v59 = vpop.permute.xlu2 %3026 }
 0x7f2   :  { %v3064_v36 = vperm.slane %v3027_v59, %v5610_v61 }
 0x7f3   :  { %v3006_v32 = vpop.permute.xlu1 %3005 }
 0x7f4   :  { %v3053_v50 = vperm.slane %v3006_v32, %v5622_v57 }
 0x7f5   :  { %v3021_v41 = vpop.permute.xlu0 %3020 }
 0x7f6   :  { %v3054_v16 = vsel %vm2784_vm12, %v3053_v50, %v3052_v10  ;;  %v3061_v31 = vperm.slane %v3021_v41, %v5610_v61 }
 0x7f7   :  { %v3073_v40 = vsel %vm6259_vm13, %v3054_v16, %v3072_v17 }
 0x7f8   :  { %v3079_v55 = vsel %vm6258_vm0, %v3073_v40, 0.0 }
 0x7f9   :  { %3080 = vadd.xlane.f32.xlu1 %v3079_v55 }
 0x7fb   :  { %v3015_v6 = vpop.permute.xlu1 %3014 }
 0x7fc   :  { %v3058_v62 = vperm.slane %v3015_v6, %v5610_v61 }
 0x7fd   :  { %v3030_v26 = vpop.permute.xlu0 %3029 }
 0x7fe   :  { %v3060_v51 = vsel %vm2784_vm12, %v3059_v28, %v3058_v62  ;;  %v3065_v19 = vperm.slane %v3030_v26, %v5622_v57 }
 0x7ff   :  { %v3074_v18 = vsel %vm6265_vm8, %v3060_v51, %v3057_v20 }
 0x800   :  { %v3066_v13 = vsel %vm2784_vm12, %v3065_v19, %v3064_v36 }
 0x803   :  { %v3024_v3 = vpop.permute.xlu1 %3023 }
 0x804   :  { %v3062_v60 = vperm.slane %v3024_v3, %v5622_v57 }
 0x806   :  { %v3063_v12 = vsel %vm2784_vm12, %v3062_v60, %v3061_v31 }
 0x807   :  { %v3075_v21 = vsel %vm6264_vm7, %v3063_v12, %v3074_v18 }
 0x808   :  { %v3076_v15 = vsel %vm6263_vm9, %v3066_v13, %v3075_v21 }
 0x809   :  { %v3082_v1 = vsel %vm6340_vm5, %v3076_v15, 0.0 }
 0x80a   :  { %3083 = vadd.xlane.f32.xlu2 %v3082_v1 }
 0x86c   :  { %v5911_v24 = vpop.xlane.xlu1 %3080 }
 0x86d   :  { %v5914_v30 = vperm.slane %v5911_v24, 0  ;;  %v5917_v46 = vperm.slane %v5911_v24, 1  ;;  %v5920_v37 = vperm.slane %v5911_v24, 2  ;;  %v5923_v63 = vperm.slane %v5911_v24, 3 }
 0x86e   :  { %v5927_v27 = vperm.slane %v5911_v24, 5  ;;  %v5931_v4 = vperm.slane %v5911_v24, 6  ;;  %v5943_v41 = vperm.slane %v5911_v24, 7 }
 0x86f   :  { %3647 = vrcp.f32 %v5914_v30  ;;  %v3154_v32 = vand.u32 2147483648, %v5920_v37  ;;  %v3120_v56 = vand.u32 2147483647, %v5914_v30  ;;  %v3122_v10 = vand.u32 2147483648, %v5914_v30 }
 0x870   :  { %3649 = vrcp.f32 %v5917_v46  ;;  %v3170_v50 = vand.u32 2147483648, %v5923_v63  ;;  %v3152_v16 = vand.u32 2147483647, %v5920_v37  ;;  %v3168_v17 = vand.u32 2147483647, %v5923_v63 }
 0x871   :  { %3651 = vrcp.f32 %v5920_v37  ;;  %vm3148_vm10 = vweird.f32 %v5920_v37  ;;  %v5951_v5 = vor.u32 1.1754944e-38, %v3154_v32  ;;  %vm3116_vm14 = vweird.f32 %v5914_v30 }
 0x872   :  { %3653 = vrcp.f32 %v5923_v63  ;;  %v3202_v6 = vand.u32 2147483648, %v5927_v27  ;;  %vm5957_vm1 = vcmp.eq.f32.partialorder %v3120_v56, 8.507059e+37  ;;  %v3123_v28 = vor.u32 1.1754944e-38, %v3122_v10 }
 0x873   :  { %3655 = vrcp.f32 %v5927_v27  ;;  %vm3164_vm4 = vweird.f32 %v5923_v63  ;;  %v3171_v19 = vor.u32 1.1754944e-38, %v3170_v50  ;;  %v3200_v3 = vand.u32 2147483647, %v5927_v27 }
 0x874   :  { %3657 = vrcp.f32 %v5931_v4  ;;  %vm5967_vm6 = vcmp.eq.f32.partialorder %v3152_v16, 8.507059e+37  ;;  %vm5973_vm5 = vcmp.eq.f32.partialorder %v3168_v17, 8.507059e+37  ;;  %vm3196_vm0 = vweird.f32 %v5927_v27 }
 0x875   :  { %v5940_v25 = vpop.eup %3647  ;;  %3659 = vrcp.f32 %v5943_v41  ;;  %v3203_v21 = vor.u32 1.1754944e-38, %v3202_v6  ;;  %vm5985_vm2 = vcmp.eq.f32.partialorder %v3200_v3, 8.507059e+37  ;;  %vm3132_vm9 = vweird.f32 %v5917_v46 }
 0x876   :  { %v5948_v40 = vpop.eup %3649  ;;  %v3112_v55 = vmul.f32 %v5940_v25, %v5914_v30  ;;  %vm3117_vm3 = vweird.f32 %v5940_v25 }
 0x877   :  { %v3652_v62 = vpop.eup %3651  ;;  %v3128_v49 = vmul.f32 %v5948_v40, %v5917_v46  ;;  %vm3133_vm15 = vweird.f32 %v5948_v40  ;;  %vm3118_vm7 = vmor %vm3116_vm14, %vm3117_vm3 }
 0x878   :  { %v3654_v59 = vpop.eup %3653  ;;  %v3144_v34 = vmul.f32 %v3652_v62, %v5920_v37  ;;  %v3113_v51 = vsub.f32 1.0, %v3112_v55  ;;  %vm3149_vm13 = vweird.f32 %v3652_v62 }
 0x879   :  { %v3160_v60 = vmul.f32 %v3654_v59, %v5923_v63  ;;  %v3656_v12 = vpop.eup %3655  ;;  %v3129_v15 = vsub.f32 1.0, %v3128_v49  ;;  %vm3165_vm11 = vweird.f32 %v3654_v59  ;;  %vm3150_vm8 = vmor %vm3148_vm10, %vm3149_vm13  ;;  %vm3228_vm10 = vweird.f32 %v5943_v41 }
 0x87a   :  { %v3145_v18 = vsub.f32 1.0, %v3144_v34  ;;  %v3114_v13 = vmul.f32 %v5940_v25, %v3113_v51  ;;  %v5980_v1 = vpop.eup %3657  ;;  %v3192_v56 = vmul.f32 %v3656_v12, %v5927_v27  ;;  %v3136_v51 = vand.u32 2147483647, %v5917_v46  ;;  %vm3166_vm14 = vmor %vm3164_vm4, %vm3165_vm11 }
 0x87b   :  { %v3161_v32 = vsub.f32 1.0, %v3160_v60  ;;  %v3208_v55 = vmul.f32 %v5980_v1, %v5931_v4  ;;  %vm3197_vm3 = vweird.f32 %v3656_v12  ;;  %vm6056_vm11 = vmor %vm3132_vm9, %vm3133_vm15 }
 0x87c   :  { %v3146_v50 = vmul.f32 %v3652_v62, %v3145_v18  ;;  %v3115_v16 = vadd.f32 %v5940_v25, %v3114_v13  ;;  %v3193_v34 = vsub.f32 1.0, %v3192_v56  ;;  %v3130_v13 = vmul.f32 %v5948_v40, %v3129_v15 }
 0x87d   :  { %v3084_v6 = vpop.xlane.xlu2 %3083  ;;  %v3162_v49 = vmul.f32 %v3654_v59, %v3161_v32  ;;  %v6005_v32 = vpop.eup %3659  ;;  %v3209_v30 = vsub.f32 1.0, %v3208_v55 }
 0x87e   :  { %v5994_v60 = vperm.slane %v3084_v6, 0  ;;  %v5996_v18 = vperm.slane %v3084_v6, 1  ;;  %v5998_v3 = vperm.slane %v3084_v6, 2  ;;  %v3147_v56 = vadd.f32 %v3652_v62, %v3146_v50 }
 0x87f   :  { %v3119_v10 = vsel %vm3118_vm7, %v5940_v25, %v3115_v16  ;;  %v3163_v36 = vadd.f32 %v3654_v59, %v3162_v49  ;;  %v3194_v61 = vmul.f32 %v3656_v12, %v3193_v34  ;;  %v3210_v31 = vmul.f32 %v5980_v1, %v3209_v30 }
 0x880   :  { %3661 = vrcp.f32 %v5994_v60  ;;  %v3124_v57 = vsel %vm5957_vm1, %v3123_v28, %v3119_v10  ;;  %v3151_v15 = vsel %vm3150_vm8, %v3652_v62, %v3147_v56  ;;  %vm3198_vm8 = vmor %vm3196_vm0, %vm3197_vm3  ;;  %v3131_v62 = vadd.f32 %v5948_v40, %v3130_v13 }
 0x881   :  { %3663 = vrcp.f32 %v5996_v18  ;;  %v3125_v37 = vmul.f32 %v5770_v43, %v3124_v57  ;;  %v3167_v50 = vsel %vm3166_vm14, %v3654_v59, %v3163_v36  ;;  %v6023_v25 = vsel %vm5967_vm6, %v5951_v5, %v3151_v15 }
 0x882   :  { %3665 = vrcp.f32 %v5998_v3  ;;  %v6027_v26 = vsel %vm5973_vm5, %v3171_v19, %v3167_v50  ;;  %v3195_v63 = vadd.f32 %v3656_v12, %v3194_v61  ;;  %v3158_v28 = vmul.f32 %v5796_v45, %v6023_v25 }
 0x883   :  { %v3303_v10 = vadd.f32 1.0, %v3125_v37  ;;  %v3173_v43 = vmul.f32 %v5802_v54, %v6027_v26  ;;  %v6036_v59 = vperm.slane %v3084_v6, 3  ;;  %v3138_v19 = vand.u32 2147483648, %v5917_v46 }
 0x884   :  { %v3199_v5 = vsel %vm3198_vm8, %v3656_v12, %v3195_v63  ;;  %v3308_v61 = vadd.f32 1.0, %v3158_v28  ;;  %v3224_v54 = vmul.f32 %v6005_v32, %v5943_v41  ;;  %v6047_v36 = vperm.slane %v5911_v24, 4 }
 0x885   :  { %3352 = vperm.xlu0 %3543, %v3303_v10   ;;  %v3309_v20 = vadd.f32 1.0, %v3173_v43  ;;  %v3204_v45 = vsel %vm5985_vm2, %v3203_v21, %v3199_v5  ;;  %v3211_v12 = vadd.f32 %v5980_v1, %v3210_v31  ;;  %vm3212_vm0 = vweird.f32 %v5931_v4 }
 0x886   :  { %v6044_v27 = vpop.eup %3661  ;;  %vm3213_vm7 = vweird.f32 %v5980_v1  ;;  %3367 = vperm.xlu1 %3544, %v3308_v61   ;;  %v3126_v17 = vmul.f32 %v5773_v53, %v3124_v57  ;;  %v3135_v55 = vsel %vm6056_vm11, %v5948_v40, %v3131_v62  ;;  %v3225_v6 = vsub.f32 1.0, %v3224_v54 }
 0x887   :  { %v6060_v16 = vpop.eup %3663  ;;  %v3240_v24 = vmul.f32 %v6044_v27, %v5994_v60  ;;  %3370 = vperm.xlu2 %3542, %v3309_v20   ;;  %v3205_v46 = vmul.f32 %v5821_v58, %v3204_v45  ;;  %v6351_v34 = vand.u32 2147483647, %v5931_v4  ;;  %v6354_v56 = vand.u32 2147483648, %v5931_v4  ;;  %vm6085_vm15 = vmor %vm3212_vm0, %vm3213_vm7 }
 0x888   :  { %v6068_v49 = vpop.eup %3665  ;;  %v3139_v15 = vor.u32 1.1754944e-38, %v3138_v19  ;;  %3667 = vrcp.f32 %v6036_v59  ;;  %v3206_v53 = vmul.f32 %v5799_v8, %v3204_v45  ;;  %vm3137_vm2 = vcmp.eq.f32.partialorder %v3136_v51, 8.507059e+37 }
 0x889   :  { %vm6073_vm9 = vcmp.eq.f32.partialorder %v6351_v34, 8.507059e+37  ;;  %v3219_v30 = vor.u32 1.1754944e-38, %v6354_v56  ;;  %v3241_v57 = vsub.f32 1.0, %v3240_v24  ;;  %v3272_v40 = vmul.f32 %v6068_v49, %v5998_v3 }
 0x88a   :  { %v3215_v37 = vsel %vm6085_vm15, %v5980_v1, %v3211_v12  ;;  %v3140_v50 = vsel %vm3137_vm2, %v3139_v15, %v3135_v55  ;;  %v3226_v63 = vmul.f32 %v6005_v32, %v3225_v6  ;;  %v3256_v8 = vmul.f32 %v6060_v16, %v5996_v18 }
 0x88b   :  { %v3304_v28 = vadd.f32 1.0, %v3126_v17  ;;  %vm3229_vm13 = vweird.f32 %v6005_v32  ;;  %v3232_v4 = vand.u32 2147483647, %v5943_v41  ;;  %v3313_v10 = vadd.f32 1.0, %v3205_v46 }
 0x88c   :  { %v3227_v51 = vadd.f32 %v6005_v32, %v3226_v63  ;;  %v3234_v43 = vand.u32 2147483648, %v5943_v41  ;;  %v3314_v1 = vadd.f32 1.0, %v3206_v53  ;;  %v6104_v62 = vsel %vm6073_vm9, %v3219_v30, %v3215_v37  ;;  %vm3230_vm1 = vmor %vm3228_vm10, %vm3229_vm13 }
 0x88d   :  { %3355 = vperm.xlu0 %3543, %v3304_v28   ;;  %v3141_v5 = vmul.f32 %v5776_v42, %v3140_v50  ;;  %v3242_v31 = vmul.f32 %v6044_v27, %v3241_v57  ;;  %v3273_v19 = vsub.f32 1.0, %v3272_v40  ;;  %vm3245_vm4 = vweird.f32 %v6044_v27 }
 0x88e   :  { %v3231_v61 = vsel %vm3230_vm1, %v6005_v32, %v3227_v51  ;;  %v3235_v20 = vor.u32 1.1754944e-38, %v3234_v43  ;;  %v6110_v45 = vpop.eup %3667  ;;  %v3257_v41 = vsub.f32 1.0, %v3256_v8  ;;  %3382 = vperm.xlu1 %3544, %v3313_v10   ;;  %vm3233_vm6 = vcmp.eq.f32.partialorder %v3232_v4, 8.507059e+37 }
 0x88f   :  { %3385 = vperm.xlu2 %3542, %v3314_v1   ;;  %v3243_v54 = vadd.f32 %v6044_v27, %v3242_v31  ;;  %v3250_v12 = vand.u32 2147483648, %v5994_v60  ;;  %vm3244_vm5 = vweird.f32 %v5994_v60  ;;  %v3248_v21 = vand.u32 2147483647, %v5994_v60 }
 0x890   :  { %v6114_v42 = vsel %vm3233_vm6, %v3235_v20, %v3231_v61  ;;  %3669 = vrcp.f32 %v6047_v36  ;;  %v3222_v32 = vmul.f32 %v5833_v23, %v6104_v62  ;;  %vm3246_vm14 = vmor %vm3244_vm5, %vm3245_vm4  ;;  %v3288_v17 = vmul.f32 %v6110_v45, %v6036_v59 }
 0x891   :  { %v3237_v24 = vmul.f32 %v5811_v44, %v6114_v42  ;;  %v3247_v55 = vsel %vm3246_vm14, %v6044_v27, %v3243_v54  ;;  %v3274_v6 = vmul.f32 %v6068_v49, %v3273_v19  ;;  %v3305_v46 = vadd.f32 1.0, %v3141_v5 }
 0x892   :  { %v3251_v34 = vor.u32 1.1754944e-38, %v3250_v12  ;;  %v3258_v60 = vmul.f32 %v6060_v16, %v3257_v41  ;;  %vm3249_vm3 = vcmp.eq.f32.partialorder %v3248_v21, 8.507059e+37  ;;  %v3316_v13 = vadd.f32 1.0, %v3222_v32 }
 0x893   :  { %v3317_v56 = vadd.f32 1.0, %v3237_v24  ;;  %v3289_v30 = vsub.f32 1.0, %v3288_v17  ;;  %v3275_v44 = vadd.f32 %v6068_v49, %v3274_v6  ;;  %vm3277_vm8 = vweird.f32 %v6068_v49 }
 0x894   :  { %v3252_v23 = vsel %vm3249_vm3, %v3251_v34, %v3247_v55  ;;  %v3142_v27 = vmul.f32 %v5784_v29, %v3140_v50  ;;  %v3282_v57 = vand.u32 2147483648, %v5998_v3  ;;  %v3259_v53 = vadd.f32 %v6060_v16, %v3258_v60 }
 0x895   :  { %3358 = vperm.xlu0 %3543, %v3305_v46   ;;  %vm3261_vm0 = vweird.f32 %v6060_v16  ;;  %v3254_v58 = vmul.f32 %v5827_v47, %v3252_v23  ;;  %vm3276_vm7 = vweird.f32 %v5998_v3  ;;  %v3280_v40 = vand.u32 2147483647, %v5998_v3 }
 0x896   :  { %v6130_v15 = vpop.eup %3669  ;;  %3391 = vperm.xlu1 %3544, %v3316_v13   ;;  %v3266_v37 = vand.u32 2147483648, %v5996_v18  ;;  %v3253_v63 = vmul.f32 %v5844_v33, %v3252_v23  ;;  %vm6141_vm11 = vmor %vm3276_vm7, %vm3277_vm8  ;;  %vm3260_vm9 = vweird.f32 %v5996_v18  ;;  %v3264_v29 = vand.u32 2147483647, %v5996_v18 }
 0x897   :  { %3394 = vperm.xlu2 %3542, %v3317_v56   ;;  %v3279_v47 = vsel %vm6141_vm11, %v6068_v49, %v3275_v44  ;;  %vm3262_vm15 = vmor %vm3260_vm9, %vm3261_vm0  ;;  %v3176_v3 = vmul.f32 %v6130_v15, %v6047_v36  ;;  %v3306_v50 = vadd.f32 1.0, %v3142_v27  ;;  %v3283_v28 = vor.u32 1.1754944e-38, %v3282_v57 }
 0x898   :  { %v3263_v33 = vsel %vm3262_vm15, %v6060_v16, %v3259_v53  ;;  %v3290_v4 = vmul.f32 %v6110_v45, %v3289_v30  ;;  %v3320_v10 = vadd.f32 1.0, %v3254_v58  ;;  %vm3281_vm2 = vcmp.eq.f32.partialorder %v3280_v40, 8.507059e+37 }
 0x899   :  { %v3267_v51 = vor.u32 1.1754944e-38, %v3266_v37  ;;  %v3319_v43 = vadd.f32 1.0, %v3253_v63  ;;  %v3284_v18 = vsel %vm3281_vm2, %v3283_v28, %v3279_v47  ;;  %vm3265_vm13 = vcmp.eq.f32.partialorder %v3264_v29, 8.507059e+37  ;;  %v6359_v47 = vld [vmem:[#allocation12_spill] sm:$0xff] }
 0x89a   :  { %v3177_v1 = vsub.f32 1.0, %v3176_v3  ;;  %v3157_v49 = vmul.f32 %v5789_v22, %v6023_v25  ;;  %v3291_v31 = vadd.f32 %v6110_v45, %v3290_v4  ;;  %vm3293_vm10 = vweird.f32 %v6110_v45 }
 0x89b   :  { %v3268_v5 = vsel %vm3265_vm13, %v3267_v51, %v3263_v33  ;;  %v3285_v16 = vmul.f32 %v5839_v39, %v3284_v18  ;;  %v3298_v19 = vand.u32 2147483648, %v6036_v59  ;;  %vm3292_vm1 = vweird.f32 %v6036_v59 }
 0x89c   :  { %v3270_v61 = vmul.f32 %v5854_v52, %v3268_v5  ;;  %v3296_v20 = vand.u32 2147483647, %v6036_v59  ;;  %v3178_v41 = vmul.f32 %v6130_v15, %v3177_v1  ;;  %vm3294_vm4 = vmor %vm3292_vm1, %vm3293_vm10  ;;  %v3307_v54 = vadd.f32 1.0, %v3157_v49 }
 0x89d   :  { %3361 = vperm.xlu0 %3543, %v3306_v50   ;;  %v3295_v22 = vsel %vm3294_vm4, %v6110_v45, %v3291_v31  ;;  %v3323_v25 = vadd.f32 1.0, %v3285_v16  ;;  %v3299_v12 = vor.u32 1.1754944e-38, %v3298_v19  ;;  %vm3181_vm5 = vweird.f32 %v6130_v15  ;;  %v6360_v50 = vld [vmem:[#allocation10_spill] sm:$0xff] }
 0x89e   :  { %3400 = vperm.xlu1 %3544, %v3319_v43   ;;  %v3322_v21 = vadd.f32 1.0, %v3270_v61  ;;  %vm3297_vm6 = vcmp.eq.f32.partialorder %v3296_v20, 8.507059e+37  ;;  %v3179_v39 = vadd.f32 %v6130_v15, %v3178_v41  ;;  %v3186_v32 = vand.u32 2147483648, %v6047_v36 }
 0x89f   :  { %3403 = vperm.xlu2 %3542, %v3320_v10   ;;  %v3300_v52 = vsel %vm3297_vm6, %v3299_v12, %v3295_v22  ;;  %v3174_v59 = vmul.f32 %v5808_v2, %v6027_v26  ;;  %vm3180_vm14 = vweird.f32 %v6047_v36  ;;  %v3184_v45 = vand.u32 2147483647, %v6047_v36 }
 0x8a0   :  { %vm3182_vm3 = vmor %vm3180_vm14, %vm3181_vm5  ;;  %v3302_v24 = vmul.f32 %v5850_v38, %v3300_v52  ;;  %v3301_v17 = vmul.f32 %v5860_v14, %v3300_v52  ;;  %v3187_v6 = vor.u32 1.1754944e-38, %v3186_v32  ;;  %v3221_v14 = vmul.f32 %v5824_v11, %v6104_v62 }
 0x8a1   :  { %v3183_v55 = vsel %vm3182_vm3, %v6130_v15, %v3179_v39  ;;  %v3310_v46 = vadd.f32 1.0, %v3174_v59  ;;  %vm3185_vm8 = vcmp.eq.f32.partialorder %v3184_v45, 8.507059e+37  ;;  %v3238_v23 = vmul.f32 %v5836_v35, %v6114_v42 }
 0x8a2   :  { %v3188_v34 = vsel %vm3185_vm8, %v3187_v6, %v3183_v55  ;;  %v3326_v60 = vadd.f32 1.0, %v3302_v24  ;;  %v3325_v13 = vadd.f32 1.0, %v3301_v17  ;;  %v3315_v56 = vadd.f32 1.0, %v3221_v14 }
 0x8a3   :  { %v3189_v2 = vmul.f32 %v5786_v9, %v3188_v34  ;;  %v3190_v36 = vmul.f32 %v5814_v48, %v3188_v34  ;;  %v3318_v30 = vadd.f32 1.0, %v3238_v23  ;;  %v3269_v44 = vmul.f32 %v5847_v7, %v3268_v5 }
 0x8a4   :  { %v3286_v9 = vmul.f32 %v5857_v0, %v3284_v18  ;;  %vm6361_vm0 = vcmask 1041409   ;;  %vm6362_vm7 = vcmask 1042434   ;;  %vm6363_vm11 = vcmask 1043459  }
 0x8a5   :  { %3364 = vperm.xlu0 %3543, %v3307_v54   ;;  %v3311_v26 = vadd.f32 1.0, %v3189_v2  ;;  %v3312_v38 = vadd.f32 1.0, %v3190_v36  ;;  %v3321_v15 = vadd.f32 1.0, %v3269_v44  ;;  %vm6364_vm9 = vcmask 1044484   ;;  %vm6369_vm1 = vmmov %vm6361_vm0 }
 0x8a6   :  { %3409 = vperm.xlu1 %3544, %v3322_v21   ;;  %v3324_v27 = vadd.f32 1.0, %v3286_v9  ;;  %vm6365_vm15 = vcmask 1045509   ;;  %vm6366_vm2 = vcmask 1046534   ;;  %vm6367_vm13 = vcmask 1047559   ;;  %vm6370_vm4 = vmmov %vm6362_vm7 }
 0x8a7   :  { %3412 = vperm.xlu2 %3542, %v3323_v25   ;;  %vm6368_vm10 = vcmask 130048   ;;  %vm6371_vm6 = vmmov %vm6363_vm11  ;;  %vm6372_vm5 = vcmask 125952  }
 0x8ad   :  { %3373 = vperm.xlu0 %3543, %v3310_v46  }
 0x8ae   :  { %3418 = vperm.xlu1 %3544, %v3325_v13  }
 0x8af   :  { %3421 = vperm.xlu2 %3542, %v3326_v60  }
 0x8b5   :  { %3376 = vperm.xlu0 %3543, %v3311_v26  }
 0x8bd   :  { %3379 = vperm.xlu0 %3543, %v3312_v38  }
 0x8c5   :  { %3388 = vperm.xlu0 %3543, %v3315_v56  }
 0x8cd   :  { %3397 = vperm.xlu0 %3543, %v3318_v30  }
 0x8d5   :  { %3406 = vperm.xlu0 %3543, %v3321_v15  }
 0x8dd   :  { %3415 = vperm.xlu0 %3543, %v3324_v27  }
 0x8e1   :  { %v3371_v40 = vpop.permute.xlu2 %3370 }
 0x8e2   :  { %v3432_v18 = vperm.slane %v3371_v40, %v6360_v50 }
 0x8e9   :  { %v3386_v35 = vpop.permute.xlu2 %3385 }
 0x8ea   :  { %v3439_v52 = vperm.slane %v3386_v35, %v6359_v47 }
 0x8f1   :  { %v3395_v7 = vpop.permute.xlu2 %3394 }
 0x8f2   :  { %v3444_v24 = vperm.slane %v3395_v7, %v6360_v50 }
 0x8f7   :  { %v3353_v48 = vpop.permute.xlu0 %3352 }
 0x8f8   :  { %v3368_v62 = vpop.permute.xlu1 %3367  ;;  %v3423_v1 = vperm.slane %v3353_v48, %v6360_v50 }
 0x8f9   :  { %v3430_v10 = vperm.slane %v3368_v62, %v6359_v47  ;;  %v3404_v19 = vpop.permute.xlu2 %3403 }
 0x8fa   :  { %v3448_v30 = vperm.slane %v3404_v19, %v6359_v47 }
 0x8ff   :  { %v3356_v57 = vpop.permute.xlu0 %3355 }
 0x900   :  { %v3383_v63 = vpop.permute.xlu1 %3382  ;;  %v3424_v28 = vperm.slane %v3356_v57, %v6359_v47 }
 0x901   :  { %v3438_v25 = vperm.slane %v3383_v63, %v6360_v50  ;;  %v3413_v2 = vpop.permute.xlu2 %3412 }
 0x902   :  { %v3425_v61 = vsel %vm2784_vm12, %v3424_v28, %v3423_v1  ;;  %v3453_v27 = vperm.slane %v3413_v2, %v6360_v50 }
 0x903   :  { %v3440_v17 = vsel %vm2784_vm12, %v3439_v52, %v3438_v25 }
 0x907   :  { %v3359_v53 = vpop.permute.xlu0 %3358 }
 0x908   :  { %v3392_v8 = vpop.permute.xlu1 %3391  ;;  %v3426_v33 = vperm.slane %v3359_v53, %v6360_v50 }
 0x909   :  { %v3442_v21 = vperm.slane %v3392_v8, %v6359_v47  ;;  %v3422_v23 = vpop.permute.xlu2 %3421 }
 0x90a   :  { %v3457_v57 = vperm.slane %v3422_v23, %v6359_v47 }
 0x90f   :  { %v3362_v58 = vpop.permute.xlu0 %3361 }
 0x910   :  { %v3427_v3 = vperm.slane %v3362_v58, %v6359_v47  ;;  %v3401_v49 = vpop.permute.xlu1 %3400 }
 0x911   :  { %v3447_v14 = vperm.slane %v3401_v49, %v6360_v50 }
 0x912   :  { %v3428_v5 = vsel %vm2784_vm12, %v3427_v3, %v3426_v33 }
 0x913   :  { %v3459_v41 = vsel %vm6361_vm0, %v3428_v5, %v3425_v61  ;;  %v3449_v53 = vsel %vm2784_vm12, %v3448_v30, %v3447_v14 }
 0x917   :  { %v3365_v11 = vpop.permute.xlu0 %3364 }
 0x918   :  { %v3429_v0 = vperm.slane %v3365_v11, %v6360_v50  ;;  %v3410_v46 = vpop.permute.xlu1 %3409 }
 0x919   :  { %v3451_v56 = vperm.slane %v3410_v46, %v6359_v47 }
 0x91a   :  { %v3431_v31 = vsel %vm2784_vm12, %v3430_v10, %v3429_v0 }
 0x91b   :  { %v3460_v12 = vsel %vm6362_vm7, %v3431_v31, %v3459_v41 }
 0x91f   :  { %v3374_v37 = vpop.permute.xlu0 %3373 }
 0x920   :  { %v3433_v4 = vperm.slane %v3374_v37, %v6359_v47  ;;  %v3419_v38 = vpop.permute.xlu1 %3418 }
 0x921   :  { %v3456_v44 = vperm.slane %v3419_v38, %v6360_v50 }
 0x922   :  { %v3434_v20 = vsel %vm2784_vm12, %v3433_v4, %v3432_v18 }
 0x923   :  { %v3461_v39 = vsel %vm6363_vm11, %v3434_v20, %v3460_v12  ;;  %v3458_v62 = vsel %vm2784_vm12, %v3457_v57, %v3456_v44 }
 0x927   :  { %v3377_v42 = vpop.permute.xlu0 %3376 }
 0x928   :  { %v3435_v16 = vperm.slane %v3377_v42, %v6360_v50 }
 0x92f   :  { %v3380_v29 = vpop.permute.xlu0 %3379 }
 0x930   :  { %v3436_v51 = vperm.slane %v3380_v29, %v6359_v47 }
 0x932   :  { %v3437_v54 = vsel %vm2784_vm12, %v3436_v51, %v3435_v16 }
 0x933   :  { %v3462_v32 = vsel %vm6364_vm9, %v3437_v54, %v3461_v39 }
 0x934   :  { %v3463_v6 = vsel %vm6365_vm15, %v3440_v17, %v3462_v32 }
 0x937   :  { %v3389_v43 = vpop.permute.xlu0 %3388 }
 0x938   :  { %v3441_v22 = vperm.slane %v3389_v43, %v6360_v50 }
 0x93a   :  { %v3443_v59 = vsel %vm2784_vm12, %v3442_v21, %v3441_v22 }
 0x93b   :  { %v3464_v34 = vsel %vm6366_vm2, %v3443_v59, %v3463_v6 }
 0x93f   :  { %v3398_v45 = vpop.permute.xlu0 %3397 }
 0x940   :  { %v3445_v55 = vperm.slane %v3398_v45, %v6359_v47 }
 0x942   :  { %v3446_v60 = vsel %vm2784_vm12, %v3445_v55, %v3444_v24 }
 0x943   :  { %v3465_v13 = vsel %vm6367_vm13, %v3446_v60, %v3464_v34 }
 0x944   :  { %3471 = vst.msk [vmem:[%s6245_s8] sm:$0xff] %vm6368_vm10, %v3465_v13 }
 0x947   :  { %v3407_v26 = vpop.permute.xlu0 %3406 }
 0x948   :  { %v3450_v36 = vperm.slane %v3407_v26, %v6360_v50 }
 0x94a   :  { %v3452_v15 = vsel %vm2784_vm12, %v3451_v56, %v3450_v36 }
 0x94b   :  { %v3466_v58 = vsel %vm6369_vm1, %v3452_v15, %v3449_v53 }
 0x94f   :  { %v3416_v9 = vpop.permute.xlu0 %3415 }
 0x950   :  { %v3454_v48 = vperm.slane %v3416_v9, %v6359_v47 }
 0x952   :  { %v3455_v11 = vsel %vm2784_vm12, %v3454_v48, %v3453_v27 }
 0x953   :  { %v3467_v40 = vsel %vm6370_vm4, %v3455_v11, %v3466_v58 }
 0x954   :  { %v3468_v37 = vsel %vm6371_vm6, %v3458_v62, %v3467_v40 }
 0x955   :  { %3472 = vst.msk [vmem:[%s6245_s8 + $0x8] sm:$0xf] %vm6372_vm5, %v3468_v37 }

</bundles_post_ra>
